<compile_context>
chip_gen: v6e
topology: v6e:2x2x1
jax: 0.10.0
libtpu: 0.0.40
codegen_flags: <defaults>
</compile_context>

<pallas_src>
import numpy as np

import jax
import jax.numpy as jnp
from jax import lax
from jax.experimental import pallas as pl
from jax.experimental.pallas import tpu as pltpu

C1 = 512        # conv1 out channels
C2 = 512        # conv2 out channels
F1 = 256        # fc hidden 1
F2 = 256        # fc hidden 2
K_PAD = 32      # first-layer K, padded 25 -> 32 (sublane multiple)
LANE_PAD = 128  # lane-dense padding of the final N=1 output
MAX_TB = 256    # max batch-tile rows (MXU-row friendly, VMEM safe on v7x)
BN_EPS = 1e-5
W_DTYPE = jnp.bfloat16   # weight storage dtype (HBM traffic is the bottleneck)


# ---------------------------------------------------------------------------
# Fused Pallas kernel: the entire forward pass for one batch tile.
# Weights are bf16; dots accumulate in f32; bias+ReLU epilogues stay f32.
# ---------------------------------------------------------------------------
def _fused_forward_kernel(x_ref, a1_ref, c1_ref, a2_ref, c2_ref, a3_ref, c3_ref,
                          a4_ref, c4_ref, a5_ref, c5_ref, o_ref):
    y = x_ref[...]                                                   # (TB, 32) f32

    # conv1 (im2col folded into weight) + bias + ReLU              -> (TB, 9*512)
    y = jnp.maximum(
        jnp.dot(y.astype(W_DTYPE), a1_ref[...],
                preferred_element_type=jnp.float32) + c1_ref[...], 0.0)
    # BN1 folded into a2/c2; conv2 (centre 3x3 taps) + bias + ReLU -> (TB, 512)
    y = jnp.maximum(
        jnp.dot(y.astype(W_DTYPE), a2_ref[...],
                preferred_element_type=jnp.float32) + c2_ref[...], 0.0)
    # BN2 folded; fc_layer2 + ReLU                                 -> (TB, 256)
    y = jnp.maximum(
        jnp.dot(y.astype(W_DTYPE), a3_ref[...],
                preferred_element_type=jnp.float32) + c3_ref[...], 0.0)
    # fc_bn_256_1 folded; fc_layer3 + ReLU                         -> (TB, 256)
    y = jnp.maximum(
        jnp.dot(y.astype(W_DTYPE), a4_ref[...],
                preferred_element_type=jnp.float32) + c4_ref[...], 0.0)
    # fc_bn_256_2 folded; fc_layer4 (lane-padded to 128 cols)      -> (TB, 128)
    o_ref[...] = (jnp.dot(y.astype(W_DTYPE), a5_ref[...],
                          preferred_element_type=jnp.float32)
                  + c5_ref[...]).astype(o_ref.dtype)


def _batch_tiling(b):
    """Pick (batch_tile, padded_batch) — static python ints."""
    if b <= MAX_TB:
        tb = max(8, ((b + 7) // 8) * 8)      # sublane-aligned single tile
        return tb, tb
    b_pad = ((b + MAX_TB - 1) // MAX_TB) * MAX_TB
    return MAX_TB, b_pad


def _const_spec(shape):
    """Weight/bias BlockSpec: full array, same block every grid step (resident)."""
    return pl.BlockSpec(shape, lambda i: tuple(0 for _ in shape))


@jax.jit
def forward_pallas(packed, x):
    """x: (B, 1, 5, 5) float32 NCHW.  Returns (B, 1) float32."""
    b = x.shape[0]
    tb, b_pad = _batch_tiling(b)

    x_flat = x.reshape(b, 25)                                   # no data movement
    # Pad K 25 -> 32 (sublane-aligned) and batch -> multiple of the tile.
    x_flat = jnp.pad(x_flat, ((0, b_pad - b), (0, K_PAD - 25)))

    w_specs = [
        _const_spec((K_PAD, 9 * C1)), _const_spec((1, 9 * C1)),   # a1, c1
        _const_spec((9 * C1, C2)),    _const_spec((1, C2)),       # a2, c2
        _const_spec((C2, F1)),        _const_spec((1, F1)),       # a3, c3
        _const_spec((F1, F2)),        _const_spec((1, F2)),       # a4, c4
        _const_spec((F2, LANE_PAD)),  _const_spec((1, LANE_PAD)), # a5, c5
    ]

    out_pad = pl.pallas_call(
        _fused_forward_kernel,
        out_shape=jax.ShapeDtypeStruct((b_pad, LANE_PAD), jnp.float32),
        grid_spec=pltpu.PrefetchScalarGridSpec(
            num_scalar_prefetch=0,
            grid=(b_pad // tb,),
            in_specs=[pl.BlockSpec((tb, K_PAD), lambda i: (i, 0))] + w_specs,
            out_specs=pl.BlockSpec((tb, LANE_PAD), lambda i: (i, 0)),
        ),
        compiler_params=pltpu.CompilerParams(
            dimension_semantics=("parallel",),        # v7x: shard tiles across 2 TCs
            vmem_limit_bytes=32 * 1024 * 1024,        # actual footprint << 48 MiB
        ),
    )(x_flat, packed["a1"], packed["c1"], packed["a2"], packed["c2"],
      packed["a3"], packed["c3"], packed["a4"], packed["c4"],
      packed["a5"], packed["c5"])
    return out_pad[:b, :1]


# ---------------------------------------------------------------------------
# One-time weight prepacking (host side, outside the jitted forward).
# ---------------------------------------------------------------------------
def pack_params(params):
    f = lambda a: np.asarray(a, dtype=np.float32)

    def bn_affine(name):
        s = f(params[name + "_gamma"]) / np.sqrt(f(params[name + "_var"]) + BN_EPS)
        t = f(params[name + "_beta"]) - f(params[name + "_mean"]) * s
        return s, t

    s1, t1 = bn_affine("bn1")
    s2, t2 = bn_affine("bn2")
    s3, t3 = bn_affine("bnf1")
    s4, t4 = bn_affine("bnf2")

    # conv1: 5x5, pad=1, 5x5 input -> 3x3 output.  Bake im2col into the weight;
    # output columns are ordered (p = oh*3 + ow, out_channel).  K padded to 32.
    w1 = f(params["conv1_w"])                            # (C1, 1, 5, 5)
    a1 = np.zeros((K_PAD, 9 * C1), np.float32)
    for oh in range(3):
        for ow in range(3):
            p = oh * 3 + ow
            for kh in range(5):
                ih = oh + kh - 1                         # input row (padding removed)
                if not 0 <= ih <= 4:
                    continue
                for kw in range(5):
                    iw = ow + kw - 1
                    if not 0 <= iw <= 4:
                        continue
                    a1[ih * 5 + iw, p * C1:(p + 1) * C1] = w1[:, 0, kh, kw]
    bias1 = np.tile(f(params["conv1_b"]), 9)[None, :]    # (1, 9*C1), (p, o) layout

    # conv2: 5x5, pad=1 on a 3x3 input -> 1x1 output; only the centre 3x3 taps see
    # non-padding data, so it is exactly a (9*C1, C2) matmul whose row index
    # (p, cin) matches conv1's output-column layout.  Fold BN1 in (scale -> weight
    # rows, shift -> bias).
    w2 = f(params["conv2_w"])                            # (C2, C1, 5, 5)
    w2c = np.transpose(w2[:, :, 1:4, 1:4], (2, 3, 1, 0)).reshape(9 * C1, C2)
    s1t = np.tile(s1, 9)
    t1t = np.tile(t1, 9)
    a2 = w2c * s1t[:, None]
    bias2 = (t1t @ w2c + f(params["conv2_b"]))[None, :]

    # fc_layer2 with BN2 folded in.
    w3 = f(params["fc2_w"]).T                            # (512, 256)
    a3 = w3 * s2[:, None]
    bias3 = (t2 @ w3 + f(params["fc2_b"]))[None, :]

    # fc_layer3 with fc_bn_256_1 folded in.
    w4 = f(params["fc3_w"]).T                            # (256, 256)
    a4 = w4 * s3[:, None]
    bias4 = (t3 @ w4 + f(params["fc3_b"]))[None, :]

    # fc_layer4 with fc_bn_256_2 folded in; lane-pad N=1 -> 128 for a dense store.
    w5 = f(params["fc4_w"]).T                            # (256, 1)
    a5 = np.zeros((F2, LANE_PAD), np.float32)
    a5[:, :1] = w5 * s4[:, None]
    bias5 = np.zeros((1, LANE_PAD), np.float32)
    bias5[0, 0] = float(t4 @ w5[:, 0] + f(params["fc4_b"])[0])

    # Weights in bf16 (halves HBM weight traffic — the bottleneck); biases in f32
    # so the in-kernel epilogues stay f32.
    weights = {"a1": a1, "a2": a2, "a3": a3, "a4": a4, "a5": a5}
    biases = {"c1": bias1, "c2": bias2, "c3": bias3, "c4": bias4, "c5": bias5}
    packed = {k: jnp.asarray(v, dtype=W_DTYPE) for k, v in weights.items()}
    packed.update({k: jnp.asarray(v, dtype=jnp.float32) for k, v in biases.items()})
    return packed


# ---------------------------------------------------------------------------
# Deterministic parameter init (eval-mode BN stats included).
# ---------------------------------------------------------------------------
def init_params(key):
    ks = jax.random.split(key, 26)

    def nrm(k, shape, scale):
        return scale * jax.random.normal(k, shape, jnp.float32)

    p = {
        "conv1_w": nrm(ks[0], (C1, 1, 5, 5), 0.20),
        "conv1_b": nrm(ks[1], (C1,), 0.10),
        "conv2_w": nrm(ks[2], (C2, C1, 5, 5), 0.02),
        "conv2_b": nrm(ks[3], (C2,), 0.10),
        "fc2_w":   nrm(ks[4], (F1, C2), 0.05),
        "fc2_b":   nrm(ks[5], (F1,), 0.10),
        "fc3_w":   nrm(ks[6], (F2, F1), 0.06),
        "fc3_b":   nrm(ks[7], (F2,), 0.10),
        "fc4_w":   nrm(ks[8], (1, F2), 0.06),
        "fc4_b":   nrm(ks[9], (1,), 0.10),
    }
    for i, (name, c) in enumerate([("bn1", C1), ("bn2", C2), ("bnf1", F1), ("bnf2", F2)]):
        base = 10 + 4 * i
        p[name + "_gamma"] = 1.0 + 0.1 * jax.random.normal(ks[base], (c,), jnp.float32)
        p[name + "_beta"] = 0.1 * jax.random.normal(ks[base + 1], (c,), jnp.float32)
        p[name + "_mean"] = 0.1 * jax.random.normal(ks[base + 2], (c,), jnp.float32)
        p[name + "_var"] = 0.5 + jax.random.uniform(ks[base + 3], (c,), jnp.float32)
    return p


# ---------------------------------------------------------------------------
# Pure-JAX reference (mirrors the PyTorch op order, eval-mode BN, f32 weights).
# ---------------------------------------------------------------------------
def forward_reference(params, x):
    dn = ("NCHW", "OIHW", "NCHW")

    def bn_affine(name):
        s = params[name + "_gamma"] / jnp.sqrt(params[name + "_var"] + BN_EPS)
        t = params[name + "_beta"] - params[name + "_mean"] * s
        return s, t

    s1, t1 = bn_affine("bn1")
    s2, t2 = bn_affine("bn2")
    s3, t3 = bn_affine("bnf1")
    s4, t4 = bn_affine("bnf2")

    y = lax.conv_general_dilated(x, params["conv1_w"], (1, 1), ((1, 1), (1, 1)),
                                 dimension_numbers=dn)
    y = jnp.maximum(y + params["conv1_b"][None, :, None, None], 0.0)
    y = y * s1[None, :, None, None] + t1[None, :, None, None]

    y = lax.conv_general_dilated(y, params["conv2_w"], (1, 1), ((1, 1), (1, 1)),
                                 dimension_numbers=dn)
    y = jnp.maximum(y + params["conv2_b"][None, :, None, None], 0.0)
    y = y * s2[None, :, None, None] + t2[None, :, None, None]

    y = y.reshape(y.shape[0], -1)                                   # (B, 512)
    y = jnp.maximum(y @ params["fc2_w"].T + params["fc2_b"], 0.0)
    y = y * s3 + t3
    y = jnp.maximum(y @ params["fc3_w"].T + params["fc3_b"], 0.0)
    y = y * s4 + t4
    return y @ params["fc4_w"].T + params["fc4_b"]


if __name__ == "__main__":
    BATCH = 8  # fills all 8 sublanes of a vreg row

    key = jax.random.PRNGKey(0)
    x_key, p_key = jax.random.split(key)
    x = jax.random.normal(x_key, (BATCH, 1, 5, 5), jnp.float32)
    params = init_params(p_key)
    packed = pack_params(params)

    out = forward_pallas(packed, x)
    out = jax.block_until_ready(out)
    assert out.shape == (BATCH, 1), out.shape

    ref = forward_reference(params, x)
    # Scale-aware tolerance: kernel uses bf16 weight storage + bf16 MXU operand
    # precision (f32 accumulate); reference runs full-f32 weights.
    err = float(jnp.max(jnp.abs(out - ref)) / (jnp.max(jnp.abs(ref)) + 1e-6))
    assert err < 3e-2, (err, out, ref)

    print("KERNEL_OK")
</pallas_src>

<mosaic_0001>
module attributes {stable_mosaic.version = 11 : i64} {
  func.func @_fused_forward_kernel(%arg0: i32, %arg1: memref<8x32xf32, #tpu.memory_space<vmem>>, %arg2: memref<32x4608xbf16, #tpu.memory_space<vmem>>, %arg3: memref<1x4608xf32, #tpu.memory_space<vmem>>, %arg4: memref<4608x512xbf16, #tpu.memory_space<vmem>>, %arg5: memref<1x512xf32, #tpu.memory_space<vmem>>, %arg6: memref<512x256xbf16, #tpu.memory_space<vmem>>, %arg7: memref<1x256xf32, #tpu.memory_space<vmem>>, %arg8: memref<256x256xbf16, #tpu.memory_space<vmem>>, %arg9: memref<1x256xf32, #tpu.memory_space<vmem>>, %arg10: memref<256x128xbf16, #tpu.memory_space<vmem>>, %arg11: memref<1x128xf32, #tpu.memory_space<vmem>>, %arg12: memref<8x128xf32, #tpu.memory_space<vmem>>) attributes {dimension_semantics = [#tpu.dimension_semantics<parallel>], iteration_bounds = array<i64: 1>, scalar_prefetch = 0 : i64, scratch_operands = 0 : i64, tpu.core_type = #tpu.core_type<tc>, window_params = [{transform_indices = @transform_0, window_bounds = array<i64: 8, 32>}, {pipeline_mode = #tpu.pipeline_mode<synchronous>, transform_indices = @transform_1, window_bounds = array<i64: 32, 4608>}, {pipeline_mode = #tpu.pipeline_mode<synchronous>, transform_indices = @transform_2, window_bounds = array<i64: 1, 4608>}, {pipeline_mode = #tpu.pipeline_mode<synchronous>, transform_indices = @transform_3, window_bounds = array<i64: 4608, 512>}, {pipeline_mode = #tpu.pipeline_mode<synchronous>, transform_indices = @transform_4, window_bounds = array<i64: 1, 512>}, {pipeline_mode = #tpu.pipeline_mode<synchronous>, transform_indices = @transform_5, window_bounds = array<i64: 512, 256>}, {pipeline_mode = #tpu.pipeline_mode<synchronous>, transform_indices = @transform_6, window_bounds = array<i64: 1, 256>}, {pipeline_mode = #tpu.pipeline_mode<synchronous>, transform_indices = @transform_7, window_bounds = array<i64: 256, 256>}, {pipeline_mode = #tpu.pipeline_mode<synchronous>, transform_indices = @transform_8, window_bounds = array<i64: 1, 256>}, {pipeline_mode = #tpu.pipeline_mode<synchronous>, transform_indices = @transform_9, window_bounds = array<i64: 256, 128>}, {pipeline_mode = #tpu.pipeline_mode<synchronous>, transform_indices = @transform_10, window_bounds = array<i64: 1, 128>}, {transform_indices = @transform_11, window_bounds = array<i64: 8, 128>}]} {
    %c0 = arith.constant 0 : index
    %c0_0 = arith.constant 0 : index
    %0 = vector.load %arg1[%c0, %c0_0] : memref<8x32xf32, #tpu.memory_space<vmem>>, vector<8x32xf32>
    %1 = arith.truncf %0 : vector<8x32xf32> to vector<8x32xbf16>
    %c0_1 = arith.constant 0 : index
    %c0_2 = arith.constant 0 : index
    %2 = vector.load %arg2[%c0_1, %c0_2] : memref<32x4608xbf16, #tpu.memory_space<vmem>>, vector<32x4608xbf16>
    %cst = arith.constant dense<0.000000e+00> : vector<8x4608xf32>
    %3 = tpu.matmul %1, %2, %cst {dimension_numbers = #tpu.dot_dimension_numbers<[1], [0], [0], [1], [0, 0, 1, 1], [], []>} : vector<8x32xbf16>, vector<32x4608xbf16>, vector<8x4608xf32> -> vector<8x4608xf32>
    %c0_3 = arith.constant 0 : index
    %c0_4 = arith.constant 0 : index
    %4 = vector.load %arg3[%c0_3, %c0_4] : memref<1x4608xf32, #tpu.memory_space<vmem>>, vector<1x4608xf32>
    %5 = vector.broadcast %4 : vector<1x4608xf32> to vector<8x4608xf32>
    %6 = arith.addf %3, %5 : vector<8x4608xf32>
    %cst_5 = arith.constant 0.000000e+00 : f32
    %7 = vector.broadcast %cst_5 : f32 to vector<8x4608xf32>
    %8 = arith.maximumf %6, %7 : vector<8x4608xf32>
    %9 = arith.truncf %8 : vector<8x4608xf32> to vector<8x4608xbf16>
    %c0_6 = arith.constant 0 : index
    %c0_7 = arith.constant 0 : index
    %10 = vector.load %arg4[%c0_6, %c0_7] : memref<4608x512xbf16, #tpu.memory_space<vmem>>, vector<4608x512xbf16>
    %cst_8 = arith.constant dense<0.000000e+00> : vector<8x512xf32>
    %11 = tpu.matmul %9, %10, %cst_8 {dimension_numbers = #tpu.dot_dimension_numbers<[1], [0], [0], [1], [0, 0, 1, 1], [], []>} : vector<8x4608xbf16>, vector<4608x512xbf16>, vector<8x512xf32> -> vector<8x512xf32>
    %c0_9 = arith.constant 0 : index
    %c0_10 = arith.constant 0 : index
    %12 = vector.load %arg5[%c0_9, %c0_10] : memref<1x512xf32, #tpu.memory_space<vmem>>, vector<1x512xf32>
    %13 = vector.broadcast %12 : vector<1x512xf32> to vector<8x512xf32>
    %14 = arith.addf %11, %13 : vector<8x512xf32>
    %cst_11 = arith.constant 0.000000e+00 : f32
    %15 = vector.broadcast %cst_11 : f32 to vector<8x512xf32>
    %16 = arith.maximumf %14, %15 : vector<8x512xf32>
    %17 = arith.truncf %16 : vector<8x512xf32> to vector<8x512xbf16>
    %c0_12 = arith.constant 0 : index
    %c0_13 = arith.constant 0 : index
    %18 = vector.load %arg6[%c0_12, %c0_13] : memref<512x256xbf16, #tpu.memory_space<vmem>>, vector<512x256xbf16>
    %cst_14 = arith.constant dense<0.000000e+00> : vector<8x256xf32>
    %19 = tpu.matmul %17, %18, %cst_14 {dimension_numbers = #tpu.dot_dimension_numbers<[1], [0], [0], [1], [0, 0, 1, 1], [], []>} : vector<8x512xbf16>, vector<512x256xbf16>, vector<8x256xf32> -> vector<8x256xf32>
    %c0_15 = arith.constant 0 : index
    %c0_16 = arith.constant 0 : index
    %20 = vector.load %arg7[%c0_15, %c0_16] : memref<1x256xf32, #tpu.memory_space<vmem>>, vector<1x256xf32>
    %21 = vector.broadcast %20 : vector<1x256xf32> to vector<8x256xf32>
    %22 = arith.addf %19, %21 : vector<8x256xf32>
    %cst_17 = arith.constant 0.000000e+00 : f32
    %23 = vector.broadcast %cst_17 : f32 to vector<8x256xf32>
    %24 = arith.maximumf %22, %23 : vector<8x256xf32>
    %25 = arith.truncf %24 : vector<8x256xf32> to vector<8x256xbf16>
    %c0_18 = arith.constant 0 : index
    %c0_19 = arith.constant 0 : index
    %26 = vector.load %arg8[%c0_18, %c0_19] : memref<256x256xbf16, #tpu.memory_space<vmem>>, vector<256x256xbf16>
    %cst_20 = arith.constant dense<0.000000e+00> : vector<8x256xf32>
    %27 = tpu.matmul %25, %26, %cst_20 {dimension_numbers = #tpu.dot_dimension_numbers<[1], [0], [0], [1], [0, 0, 1, 1], [], []>} : vector<8x256xbf16>, vector<256x256xbf16>, vector<8x256xf32> -> vector<8x256xf32>
    %c0_21 = arith.constant 0 : index
    %c0_22 = arith.constant 0 : index
    %28 = vector.load %arg9[%c0_21, %c0_22] : memref<1x256xf32, #tpu.memory_space<vmem>>, vector<1x256xf32>
    %29 = vector.broadcast %28 : vector<1x256xf32> to vector<8x256xf32>
    %30 = arith.addf %27, %29 : vector<8x256xf32>
    %cst_23 = arith.constant 0.000000e+00 : f32
    %31 = vector.broadcast %cst_23 : f32 to vector<8x256xf32>
    %32 = arith.maximumf %30, %31 : vector<8x256xf32>
    %33 = arith.truncf %32 : vector<8x256xf32> to vector<8x256xbf16>
    %c0_24 = arith.constant 0 : index
    %c0_25 = arith.constant 0 : index
    %34 = vector.load %arg10[%c0_24, %c0_25] : memref<256x128xbf16, #tpu.memory_space<vmem>>, vector<256x128xbf16>
    %cst_26 = arith.constant dense<0.000000e+00> : vector<8x128xf32>
    %35 = tpu.matmul %33, %34, %cst_26 {dimension_numbers = #tpu.dot_dimension_numbers<[1], [0], [0], [1], [0, 0, 1, 1], [], []>} : vector<8x256xbf16>, vector<256x128xbf16>, vector<8x128xf32> -> vector<8x128xf32>
    %c0_27 = arith.constant 0 : index
    %c0_28 = arith.constant 0 : index
    %36 = vector.load %arg11[%c0_27, %c0_28] : memref<1x128xf32, #tpu.memory_space<vmem>>, vector<1x128xf32>
    %37 = vector.broadcast %36 : vector<1x128xf32> to vector<8x128xf32>
    %38 = arith.addf %35, %37 : vector<8x128xf32>
    %c0_29 = arith.constant 0 : index
    %c0_30 = arith.constant 0 : index
    %39 = vector.load %arg12[%c0_29, %c0_30] : memref<8x128xf32, #tpu.memory_space<vmem>>, vector<8x128xf32>
    tpu.vector_store %arg12[%c0_29, %c0_30], %38 {strides = array<i32>} : memref<8x128xf32, #tpu.memory_space<vmem>>, vector<8x128xf32>,
    return
  }
  func.func @transform_0(%arg0: i32) -> (i32, i32) {
    %c0_i32 = arith.constant 0 : i32
    %c0_i32_0 = arith.constant 0 : i32
    return %arg0, %c0_i32 : i32, i32
  }
  func.func @transform_1(%arg0: i32) -> (i32, i32) {
    %c0_i32 = arith.constant 0 : i32
    %c0_i32_0 = arith.constant 0 : i32
    %c0_i32_1 = arith.constant 0 : i32
    return %c0_i32, %c0_i32_0 : i32, i32
  }
  func.func @transform_2(%arg0: i32) -> (i32, i32) {
    %c0_i32 = arith.constant 0 : i32
    %c0_i32_0 = arith.constant 0 : i32
    %c0_i32_1 = arith.constant 0 : i32
    return %c0_i32, %c0_i32_0 : i32, i32
  }
  func.func @transform_3(%arg0: i32) -> (i32, i32) {
    %c0_i32 = arith.constant 0 : i32
    %c0_i32_0 = arith.constant 0 : i32
    %c0_i32_1 = arith.constant 0 : i32
    return %c0_i32, %c0_i32_0 : i32, i32
  }
  func.func @transform_4(%arg0: i32) -> (i32, i32) {
    %c0_i32 = arith.constant 0 : i32
    %c0_i32_0 = arith.constant 0 : i32
    %c0_i32_1 = arith.constant 0 : i32
    return %c0_i32, %c0_i32_0 : i32, i32
  }
  func.func @transform_5(%arg0: i32) -> (i32, i32) {
    %c0_i32 = arith.constant 0 : i32
    %c0_i32_0 = arith.constant 0 : i32
    %c0_i32_1 = arith.constant 0 : i32
    return %c0_i32, %c0_i32_0 : i32, i32
  }
  func.func @transform_6(%arg0: i32) -> (i32, i32) {
    %c0_i32 = arith.constant 0 : i32
    %c0_i32_0 = arith.constant 0 : i32
    %c0_i32_1 = arith.constant 0 : i32
    return %c0_i32, %c0_i32_0 : i32, i32
  }
  func.func @transform_7(%arg0: i32) -> (i32, i32) {
    %c0_i32 = arith.constant 0 : i32
    %c0_i32_0 = arith.constant 0 : i32
    %c0_i32_1 = arith.constant 0 : i32
    return %c0_i32, %c0_i32_0 : i32, i32
  }
  func.func @transform_8(%arg0: i32) -> (i32, i32) {
    %c0_i32 = arith.constant 0 : i32
    %c0_i32_0 = arith.constant 0 : i32
    %c0_i32_1 = arith.constant 0 : i32
    return %c0_i32, %c0_i32_0 : i32, i32
  }
  func.func @transform_9(%arg0: i32) -> (i32, i32) {
    %c0_i32 = arith.constant 0 : i32
    %c0_i32_0 = arith.constant 0 : i32
    %c0_i32_1 = arith.constant 0 : i32
    return %c0_i32, %c0_i32_0 : i32, i32
  }
  func.func @transform_10(%arg0: i32) -> (i32, i32) {
    %c0_i32 = arith.constant 0 : i32
    %c0_i32_0 = arith.constant 0 : i32
    %c0_i32_1 = arith.constant 0 : i32
    return %c0_i32, %c0_i32_0 : i32, i32
  }
  func.func @transform_11(%arg0: i32) -> (i32, i32) {
    %c0_i32 = arith.constant 0 : i32
    %c0_i32_0 = arith.constant 0 : i32
    return %arg0, %c0_i32 : i32, i32
  }
}

</mosaic_0001>

<bundles_post_ra>
// kernel: forward_pallas.1
= control target key start
LH: loop header
LB: loop body
LE: loop exit
PB: predicated region body
PF: predicated region fallthrough
CT: control target
= control target key end

     0   :  { %16 = vsyncpa [#allocation3], 0  ;;  %s15174_s0 = inlined_call_operand.vmem [shape: f32[8,32], index: 0, kind: input, shape index: {}]   ;;  %s15175_s1 = inlined_call_operand.hbm [shape: bf16[32,4608], index: 1, kind: input, shape index: {}]   ;;  %s15176_s2 = inlined_call_operand.hbm [shape: f32[1,4608], index: 2, kind: input, shape index: {}]   ;;  %s15177_s3 = inlined_call_operand.hbm [shape: bf16[4608,512], index: 3, kind: input, shape index: {}]   ;;  %s15178_s4 = inlined_call_operand.hbm [shape: f32[1,512], index: 4, kind: input, shape index: {}]   ;;  %s15179_s5 = inlined_call_operand.hbm [shape: bf16[512,256], index: 5, kind: input, shape index: {}]   ;;  %s15180_s6 = inlined_call_operand.hbm [shape: f32[1,256], index: 6, kind: input, shape index: {}]   ;;  %s15181_s7 = inlined_call_operand.hbm [shape: bf16[256,256], index: 7, kind: input, shape index: {}]   ;;  %s15182_s8 = inlined_call_operand.hbm [shape: f32[1,256], index: 8, kind: input, shape index: {}]   ;;  %s15183_s9 = inlined_call_operand.hbm [shape: bf16[256,128], index: 9, kind: input, shape index: {}]   ;;  %s15184_s10 = inlined_call_operand.hbm [shape: f32[1,128], index: 10, kind: input, shape index: {}]   ;;  %s15185_s11 = inlined_call_operand.vmem [shape: f32[8,128], index: 11, kind: output, shape index: {}]  }
   0x1   :  { %17 = vsyncpa [#allocation5], 0 }
   0x2   :  { %18 = vsyncpa [#allocation8], 0 }
   0x3   :  { %19 = vsyncpa [#allocation11], 0 }
   0x4   :  { %20 = vsyncpa [#allocation14], 0 }
   0x5   :  { %21 = vsyncpa [#allocation17], 0  ;;  %s14547_s17 = smov [#allocation4]   ;;  %s14548_s19 = smov [#allocation7]  }
   0x6   :  { %s42_s18 = sshll.u32 %s14547_s17, 4  ;;  %s64_s20 = sshll.u32 %s14548_s19, 4  ;;  %s43_s18 = int_to_ptr.vmem [resolvable:$true] %s42_s18  ;;  %s65_s20 = int_to_ptr.vmem [resolvable:$true] %s64_s20 }
   0x7   :  { %s14343_s21 = scalar_lea.vmem %s43_s18, 576  ;;  %p14348_p1 = scmp.lt.s32.totalorder %s43_s18, %s43_s18 }
   0x8   :  { %p14344_p0 = scmp.ne.s32.totalorder %s43_s18, %s14343_s21  ;;  %p14349_p2 = scmp.lt.s32.totalorder %s14343_s21, %s14343_s21 }
   0xa   :  { %p14350_p3 = por %p14349_p2, %p14348_p1 }
   0xc   :  { %p14351_p4 = pnand %p14350_p3, %p14344_p0 }
   0xe   :  { %14354 = shalt.err (!%p14351_p4)
}
   0xf   :  { %45 = dma.hbm_to_vmem [thread:$0]  %s15176_s2, 576, %s43_s18, [#allocation5]  }
  0x10   :  { %s14363_s24 = scalar_lea.vmem %s65_s20, 64  ;;  %p14368_p6 = scmp.lt.s32.totalorder %s65_s20, %s65_s20 }
  0x11   :  { %p14364_p5 = scmp.ne.s32.totalorder %s65_s20, %s14363_s24  ;;  %p14369_p7 = scmp.lt.s32.totalorder %s14363_s24, %s14363_s24 }
  0x13   :  { %p14370_p8 = por %p14369_p7, %p14368_p6 }
  0x15   :  { %p14371_p9 = pnand %p14370_p8, %p14364_p5 }
  0x17   :  { %14374 = shalt.err (!%p14371_p9)
}
  0x18   :  { %67 = dma.hbm_to_vmem [thread:$0]  %s15178_s4, 64, %s65_s20, [#allocation8]  }
  0x19   :  { %s14549_s27 = smov [#allocation10]   ;;  %s14550_s29 = smov [#allocation13]  }
  0x1a   :  { %s86_s28 = sshll.u32 %s14549_s27, 4  ;;  %s108_s30 = sshll.u32 %s14550_s29, 4  ;;  %s87_s28 = int_to_ptr.vmem [resolvable:$true] %s86_s28  ;;  %s109_s30 = int_to_ptr.vmem [resolvable:$true] %s108_s30 }
  0x1b   :  { %s14383_s12 = scalar_lea.vmem %s87_s28, 32  ;;  %p14388_p11 = scmp.lt.s32.totalorder %s87_s28, %s87_s28 }
  0x1c   :  { %p14384_p10 = scmp.ne.s32.totalorder %s87_s28, %s14383_s12  ;;  %p14389_p12 = scmp.lt.s32.totalorder %s14383_s12, %s14383_s12 }
  0x1e   :  { %p14390_p13 = por %p14389_p12, %p14388_p11 }
  0x20   :  { %p14391_p0 = pnand %p14390_p13, %p14384_p10 }
  0x22   :  { %14394 = shalt.err (!%p14391_p0)
}
  0x23   :  { %89 = dma.hbm_to_vmem [thread:$0]  %s15180_s6, 32, %s87_s28, [#allocation11]  }
  0x24   :  { %s14403_s14 = scalar_lea.vmem %s109_s30, 32  ;;  %p14408_p2 = scmp.lt.s32.totalorder %s109_s30, %s109_s30 }
  0x25   :  { %p14404_p1 = scmp.ne.s32.totalorder %s109_s30, %s14403_s14  ;;  %p14409_p3 = scmp.lt.s32.totalorder %s14403_s14, %s14403_s14 }
  0x27   :  { %p14410_p4 = por %p14409_p3, %p14408_p2 }
  0x29   :  { %p14411_p5 = pnand %p14410_p4, %p14404_p1 }
  0x2b   :  { %14414 = shalt.err (!%p14411_p5)
}
  0x2c   :  { %111 = dma.hbm_to_vmem [thread:$0]  %s15182_s8, 32, %s109_s30, [#allocation14]  }
  0x2d   :  { %s14551_s16 = smov [#allocation2]  }
  0x2e   :  { %s29_s17 = sshll.u32 %s14551_s16, 4  ;;  %s30_s17 = int_to_ptr.vmem [resolvable:$true] %s29_s17 }
  0x2f   :  { %s14423_s18 = scalar_lea.vmem %s30_s17, 9216  ;;  %p14428_p7 = scmp.lt.s32.totalorder %s30_s17, %s30_s17 }
  0x30   :  { %p14424_p6 = scmp.ne.s32.totalorder %s30_s17, %s14423_s18  ;;  %p14429_p8 = scmp.lt.s32.totalorder %s14423_s18, %s14423_s18 }
  0x32   :  { %p14430_p9 = por %p14429_p8, %p14428_p7 }
  0x34   :  { %p14431_p10 = pnand %p14430_p9, %p14424_p6 }
  0x36   :  { %14434 = shalt.err (!%p14431_p10)
}
  0x37   :  { %s14552_s6 = smov 2304   ;;  %s14553_s19 = smov 144  }
  0x38   :  { %35 = dma.hbm_to_vmem [thread:$0]  %s15175_s1, 9216, %s30_s17, [#allocation3], %s14552_s6, %s14552_s6, %s14553_s19  }
  0x39   :  { %s14554_s22 = smov [#allocation6]  }
  0x3a   :  { %s51_s23 = sshll.u32 %s14554_s22, 4  ;;  %s52_s23 = int_to_ptr.vmem [resolvable:$true] %s51_s23 }
  0x3b   :  { %s14443_s8 = scalar_lea.vmem %s52_s23, 147456  ;;  %p14448_p12 = scmp.lt.s32.totalorder %s52_s23, %s52_s23 }
  0x3c   :  { %p14444_p11 = scmp.ne.s32.totalorder %s52_s23, %s14443_s8  ;;  %p14449_p13 = scmp.lt.s32.totalorder %s14443_s8, %s14443_s8 }
  0x3e   :  { %p14450_p0 = por %p14449_p13, %p14448_p12 }
  0x40   :  { %p14451_p1 = pnand %p14450_p0, %p14444_p11 }
  0x42   :  { %14454 = shalt.err (!%p14451_p1)
}
  0x43   :  { %s14555_s24 = smov 256   ;;  %s14556_s25 = smov 16  }
  0x44   :  { %57 = dma.hbm_to_vmem [thread:$0]  %s15177_s3, 147456, %s52_s23, [#allocation5], %s14555_s24, %s14555_s24, %s14556_s25  }
  0x45   :  { %s14557_s28 = smov [#allocation9]  }
  0x46   :  { %s73_s29 = sshll.u32 %s14557_s28, 4  ;;  %s74_s29 = int_to_ptr.vmem [resolvable:$true] %s73_s29 }
  0x47   :  { %s14463_s1 = scalar_lea.vmem %s74_s29, 8192  ;;  %p14468_p3 = scmp.lt.s32.totalorder %s74_s29, %s74_s29 }
  0x48   :  { %p14464_p2 = scmp.ne.s32.totalorder %s74_s29, %s14463_s1  ;;  %p14469_p4 = scmp.lt.s32.totalorder %s14463_s1, %s14463_s1 }
  0x4a   :  { %p14470_p5 = por %p14469_p4, %p14468_p3 }
  0x4c   :  { %p14471_p6 = pnand %p14470_p5, %p14464_p2 }
  0x4e   :  { %14474 = shalt.err (!%p14471_p6)
}
  0x4f   :  { %s14558_s30 = smov 128   ;;  %s14559_s12 = smov 8  }
  0x50   :  { %79 = dma.hbm_to_vmem [thread:$0]  %s15179_s5, 8192, %s74_s29, [#allocation8], %s14558_s30, %s14558_s30, %s14559_s12  }
  0x51   :  { %s14560_s14 = smov [#allocation12]   ;;  %s14561_s3 = smov [#allocation15]  }
  0x52   :  { %s95_s4 = sshll.u32 %s14560_s14, 4  ;;  %s117_s15 = sshll.u32 %s14561_s3, 4  ;;  %s96_s4 = int_to_ptr.vmem [resolvable:$true] %s95_s4  ;;  %s118_s15 = int_to_ptr.vmem [resolvable:$true] %s117_s15 }
  0x53   :  { %s14483_s16 = scalar_lea.vmem %s96_s4, 4096  ;;  %p14488_p8 = scmp.lt.s32.totalorder %s96_s4, %s96_s4 }
  0x54   :  { %p14484_p7 = scmp.ne.s32.totalorder %s96_s4, %s14483_s16  ;;  %p14489_p9 = scmp.lt.s32.totalorder %s14483_s16, %s14483_s16 }
  0x56   :  { %p14490_p10 = por %p14489_p9, %p14488_p8 }
  0x58   :  { %p14491_p11 = pnand %p14490_p10, %p14484_p7 }
  0x5a   :  { %14494 = shalt.err (!%p14491_p11)
}
  0x5b   :  { %101 = dma.hbm_to_vmem [thread:$0]  %s15181_s7, 4096, %s96_s4, [#allocation11], %s14558_s30, %s14558_s30, %s14559_s12  }
  0x5c   :  { %s14503_s6 = scalar_lea.vmem %s118_s15, 2048  ;;  %p14508_p13 = scmp.lt.s32.totalorder %s118_s15, %s118_s15 }
  0x5d   :  { %p14504_p12 = scmp.ne.s32.totalorder %s118_s15, %s14503_s6  ;;  %p14509_p0 = scmp.lt.s32.totalorder %s14503_s6, %s14503_s6 }
  0x5f   :  { %p14510_p1 = por %p14509_p0, %p14508_p13 }
  0x61   :  { %p14511_p2 = pnand %p14510_p1, %p14504_p12 }
  0x63   :  { %14514 = shalt.err (!%p14511_p2)
}
  0x64   :  { %s14562_s5 = smov 64   ;;  %s14563_s19 = smov 4  }
  0x65   :  { %123 = dma.hbm_to_vmem [thread:$0]  %s15183_s9, 2048, %s118_s15, [#allocation14], %s14562_s5, %s14562_s5, %s14563_s19  }
  0x66   :  { %s14564_s22 = smov [#allocation16]  }
  0x67   :  { %s130_s23 = sshll.u32 %s14564_s22, 4  ;;  %s131_s23 = int_to_ptr.vmem [resolvable:$true] %s130_s23 }
  0x68   :  { %s14523_s8 = scalar_lea.vmem %s131_s23, 16  ;;  %s14527_s7 = scalar_lea.vmem %s131_s23, 32 }
  0x69   :  { %p14524_p3 = scmp.ne.s32.totalorder %s131_s23, %s14523_s8  ;;  %p14528_p4 = scmp.lt.s32.totalorder %s131_s23, %s131_s23 }
  0x6a   :  { %p14529_p5 = scmp.lt.s32.totalorder %s14527_s7, %s14523_s8 }
  0x6c   :  { %p14530_p6 = por %p14529_p5, %p14528_p4 }
  0x6e   :  { %p14531_p7 = pnand %p14530_p6, %p14524_p3 }
  0x70   :  { %14534 = shalt.err (!%p14531_p7)
}
  0x71   :  { %133 = dma.hbm_to_vmem [thread:$0]  %s15184_s10, 16, %s131_s23, [#allocation17]  }
  0x72   :  { %14535 = dma.done.wait [#allocation3], 9216  }
  0x73   :  { %14536 = vsyncadd [#allocation3], 4294958080 }
  0x74   :  { %14537 = dma.done.wait [#allocation5], 148032  }
  0x75   :  { %14538 = vsyncadd [#allocation5], 4294819264 }
  0x76   :  { %14539 = dma.done.wait [#allocation8], 8256  }
  0x77   :  { %14540 = vsyncadd [#allocation8], 4294959040 }
  0x78   :  { %14541 = dma.done.wait [#allocation11], 4128  }
  0x79   :  { %14542 = vsyncadd [#allocation11], 4294963168 }
  0x7a   :  { %14543 = dma.done.wait [#allocation14], 2080  }
  0x7b   :  { %14544 = vsyncadd [#allocation14], 4294965216 }
  0x7c   :  { %14545 = dma.done.wait [#allocation17], 16  }
  0x7d   :  { %14546 = vsyncadd [#allocation17], 4294967280  ;;  %v14565_v0 = vmov 0   ;;  %v12334_v1 = vld [vmem:[#allocation2 + $0x124] ss:$144 sps:$4 sm:$0xff]   ;;  %vm789_vm0 = vcmask 261120  }
  0x7e   :  { %825 = vmatprep.mubr.bf16.mxu1 %v14565_v0  ;;  %989 = vmatprep.mubr.bf16.mxu0 %v14565_v0  ;;  %v12336_v2 = vld [vmem:[#allocation2 + $0x120] ss:$144 sps:$4 sm:$0xff]   ;;  %v12337_v3 = vld [vmem:[#allocation2 + $0x4] ss:$144 sps:$4 sm:$0xff]   ;;  %v12342_v6 = vld [vmem:[#allocation2 + $0x12c] ss:$144 sps:$4 sm:$0xff]  }
  0x7f   :  { %805 = vmatprep.subr.bf16.mxu1 %v12334_v1  ;;  %v12339_v4 = vld [vmem:[#allocation2] ss:$144 sps:$4 sm:$0xff]   ;;  %v12340_v8 = vld [vmem:[#allocation2 + $0x128] ss:$144 sps:$4 sm:$0xff]   ;;  %v12345_v9 = vld [vmem:[#allocation2 + $0xc] ss:$144 sps:$4 sm:$0xff]  }
  0x80   :  { %806 = vmatpush1.bf16.msra.mxu1 %v12336_v2  ;;  %v165_v5 = vld [vmem:[%s15174_s0] sm:$0xff]  ;;  %v12343_v10 = vld [vmem:[#allocation2 + $0x8] ss:$144 sps:$4 sm:$0xff]   ;;  %v12354_v22 = vld [vmem:[#allocation2 + $0x13c] ss:$144 sps:$4 sm:$0xff]  }
  0x81   :  { %807 = vmatprep.subr.bf16.mxu1 %v12337_v3  ;;  %v14661_v7 = vpack.c.bf16 %v165_v5, %v165_v5  ;;  %v12348_v11 = vld [vmem:[#allocation2 + $0x134] ss:$144 sps:$4 sm:$0xff]   ;;  %v12360_v13 = vld [vmem:[#allocation2 + $0x140] ss:$144 sps:$4 sm:$0xff]   ;;  %v12352_v23 = vld [vmem:[#allocation2 + $0x138] ss:$144 sps:$4 sm:$0xff]  }
  0x82   :  { %v12358_v12 = vld [vmem:[#allocation2 + $0x144] ss:$144 sps:$4 sm:$0xff]   ;;  %v12366_v15 = vld [vmem:[#allocation2 + $0x20] ss:$144 sps:$4 sm:$0xff]   ;;  %v12357_v25 = vld [vmem:[#allocation2 + $0x1c] ss:$144 sps:$4 sm:$0xff]  }
  0x83   :  { %969 = vmatprep.subr.bf16.mxu0 %v12358_v12  ;;  %v12361_v14 = vld [vmem:[#allocation2 + $0x24] ss:$144 sps:$4 sm:$0xff]   ;;  %v12346_v16 = vld [vmem:[#allocation2 + $0x130] ss:$144 sps:$4 sm:$0xff]   ;;  %v12355_v27 = vld [vmem:[#allocation2 + $0x18] ss:$144 sps:$4 sm:$0xff]  }
  0x84   :  { %808 = vmatpush1.bf16.msra.mxu1 %v12339_v4  ;;  %970 = vmatpush1.bf16.msra.mxu0 %v12360_v13  ;;  %v12351_v17 = vld [vmem:[#allocation2 + $0x14] ss:$144 sps:$4 sm:$0xff]   ;;  %v12349_v19 = vld [vmem:[#allocation2 + $0x10] ss:$144 sps:$4 sm:$0xff]   ;;  %v12365_v30 = vld [vmem:[#allocation2 + $0x14c] ss:$144 sps:$4 sm:$0xff]  }
  0x85   :  { %846 = vmatprep.subr.bf16.mxu1 %v12342_v6  ;;  %971 = vmatprep.subr.bf16.mxu0 %v12361_v14  ;;  %v12372_v18 = vld [vmem:[#allocation2 + $0x154] ss:$144 sps:$4 sm:$0xff]   ;;  %v12370_v20 = vld [vmem:[#allocation2 + $0x150] ss:$144 sps:$4 sm:$0xff]   ;;  %v12363_v31 = vld [vmem:[#allocation2 + $0x148] ss:$144 sps:$4 sm:$0xff]  }
  0x86   :  { %v12375_v21 = vld [vmem:[#allocation2 + $0x34] ss:$144 sps:$4 sm:$0xff]   ;;  %v12373_v24 = vld [vmem:[#allocation2 + $0x30] ss:$144 sps:$4 sm:$0xff]   ;;  %v12369_v33 = vld [vmem:[#allocation2 + $0x2c] ss:$144 sps:$4 sm:$0xff]  }
  0x87   :  { %11010 = vmatmul.mubr.msk.bf16.vlgmr.msra.gmra.mxu1 %vm789_vm0, %v14661_v7  ;;  %v12384_v26 = vld [vmem:[#allocation2 + $0x164] ss:$144 sps:$4 sm:$0xff]   ;;  %v12382_v28 = vld [vmem:[#allocation2 + $0x160] ss:$144 sps:$4 sm:$0xff]   ;;  %v12367_v35 = vld [vmem:[#allocation2 + $0x28] ss:$144 sps:$4 sm:$0xff]  }
  0x88   :  { %847 = vmatpush1.bf16.msra.mxu1 %v12340_v8  ;;  %866 = vmatprep.mubr.bf16.mxu1 %v14565_v0  ;;  %v12387_v29 = vld [vmem:[#allocation2 + $0x44] ss:$144 sps:$4 sm:$0xff]   ;;  %v12385_v32 = vld [vmem:[#allocation2 + $0x40] ss:$144 sps:$4 sm:$0xff]   ;;  %v12378_v38 = vld [vmem:[#allocation2 + $0x15c] ss:$144 sps:$4 sm:$0xff]  }
  0x89   :  { %848 = vmatprep.subr.bf16.mxu1 %v12345_v9  ;;  %972 = vmatpush1.bf16.msra.mxu0 %v12366_v15  ;;  %v12396_v34 = vld [vmem:[#allocation2 + $0x174] ss:$144 sps:$4 sm:$0xff]   ;;  %v12394_v36 = vld [vmem:[#allocation2 + $0x170] ss:$144 sps:$4 sm:$0xff]   ;;  %v12376_v39 = vld [vmem:[#allocation2 + $0x158] ss:$144 sps:$4 sm:$0xff]  }
  0x8a   :  { %1051 = vmatprep.subr.bf16.mxu0 %v12372_v18  ;;  %v12399_v37 = vld [vmem:[#allocation2 + $0x54] ss:$144 sps:$4 sm:$0xff]   ;;  %v12397_v40 = vld [vmem:[#allocation2 + $0x50] ss:$144 sps:$4 sm:$0xff]   ;;  %v12381_v41 = vld [vmem:[#allocation2 + $0x3c] ss:$144 sps:$4 sm:$0xff]  }
  0x8b   :  { %v12408_v42 = vld [vmem:[#allocation2 + $0x184] ss:$144 sps:$4 sm:$0xff]   ;;  %v12379_v43 = vld [vmem:[#allocation2 + $0x38] ss:$144 sps:$4 sm:$0xff]   ;;  %v12406_v44 = vld [vmem:[#allocation2 + $0x180] ss:$144 sps:$4 sm:$0xff]  }
  0x8c   :  { %849 = vmatpush1.bf16.msra.mxu1 %v12343_v10  ;;  %11014 = vmatmul.mubr.msk.bf16.vlgmr.msra.gmra.mxu0 %vm789_vm0, %v14661_v7  ;;  %v12411_v45 = vld [vmem:[#allocation2 + $0x64] ss:$144 sps:$4 sm:$0xff]   ;;  %v12390_v46 = vld [vmem:[#allocation2 + $0x16c] ss:$144 sps:$4 sm:$0xff]   ;;  %v12388_v47 = vld [vmem:[#allocation2 + $0x168] ss:$144 sps:$4 sm:$0xff]  }
  0x8d   :  { %887 = vmatprep.subr.bf16.mxu1 %v12348_v11  ;;  %1052 = vmatpush1.bf16.msra.mxu0 %v12370_v20  ;;  %v12409_v48 = vld [vmem:[#allocation2 + $0x60] ss:$144 sps:$4 sm:$0xff]   ;;  %v12393_v49 = vld [vmem:[#allocation2 + $0x4c] ss:$144 sps:$4 sm:$0xff]   ;;  %v12420_v50 = vld [vmem:[#allocation2 + $0x194] ss:$144 sps:$4 sm:$0xff]  }
  0x8e   :  { %1071 = vmatprep.mubr.bf16.mxu0 %v14565_v0  ;;  %1053 = vmatprep.subr.bf16.mxu0 %v12375_v21  ;;  %v12391_v51 = vld [vmem:[#allocation2 + $0x48] ss:$144 sps:$4 sm:$0xff]   ;;  %v12418_v52 = vld [vmem:[#allocation2 + $0x190] ss:$144 sps:$4 sm:$0xff]   ;;  %v12423_v53 = vld [vmem:[#allocation2 + $0x74] ss:$144 sps:$4 sm:$0xff]  }
  0x8f   :  { %11011 = vmatmul.mubr.msk.bf16.vlgmr.msra.gmra.mxu1 %vm789_vm0, %v14661_v7  ;;  %v12402_v54 = vld [vmem:[#allocation2 + $0x17c] ss:$144 sps:$4 sm:$0xff]   ;;  %v12400_v55 = vld [vmem:[#allocation2 + $0x178] ss:$144 sps:$4 sm:$0xff]   ;;  %v12421_v56 = vld [vmem:[#allocation2 + $0x70] ss:$144 sps:$4 sm:$0xff]  }
  0x90   :  { %888 = vmatpush1.bf16.msra.mxu1 %v12346_v16  ;;  %907 = vmatprep.mubr.bf16.mxu1 %v14565_v0  ;;  %v12405_v57 = vld [vmem:[#allocation2 + $0x5c] ss:$144 sps:$4 sm:$0xff]   ;;  %v12432_v58 = vld [vmem:[#allocation2 + $0x1a4] ss:$144 sps:$4 sm:$0xff]   ;;  %v12403_v59 = vld [vmem:[#allocation2 + $0x58] ss:$144 sps:$4 sm:$0xff]  }
  0x91   :  { %889 = vmatprep.subr.bf16.mxu1 %v12351_v17  ;;  %1054 = vmatpush1.bf16.msra.mxu0 %v12373_v24  ;;  %v12430_v60 = vld [vmem:[#allocation2 + $0x1a0] ss:$144 sps:$4 sm:$0xff]   ;;  %v12435_v61 = vld [vmem:[#allocation2 + $0x84] ss:$144 sps:$4 sm:$0xff]   ;;  %v12414_v62 = vld [vmem:[#allocation2 + $0x18c] ss:$144 sps:$4 sm:$0xff]  }
  0x92   :  { %1133 = vmatprep.subr.bf16.mxu0 %v12384_v26  ;;  %v12412_v63 = vld [vmem:[#allocation2 + $0x188] ss:$144 sps:$4 sm:$0xff]   ;;  %v12433_v1 = vld [vmem:[#allocation2 + $0x80] ss:$144 sps:$4 sm:$0xff]   ;;  %v12417_v2 = vld [vmem:[#allocation2 + $0x6c] ss:$144 sps:$4 sm:$0xff]  }
  0x93   :  { %v12444_v3 = vld [vmem:[#allocation6 + $0xe4] ss:$16 sps:$4 sm:$0xff]   ;;  %v12442_v5 = vld [vmem:[#allocation6 + $0xe0] ss:$16 sps:$4 sm:$0xff]   ;;  %v12426_v8 = vld [vmem:[#allocation2 + $0x19c] ss:$144 sps:$4 sm:$0xff]  }
  0x94   :  { %890 = vmatpush1.bf16.msra.mxu1 %v12349_v19  ;;  %11016 = vmatmul.mubr.msk.bf16.vlgmr.msra.gmra.mxu0 %vm789_vm0, %v14661_v7  ;;  %v12415_v4 = vld [vmem:[#allocation2 + $0x68] ss:$144 sps:$4 sm:$0xff]   ;;  %v12445_v10 = vld [vmem:[#allocation6 + $0xc0] ss:$16 sps:$4 sm:$0xff]   ;;  %v12429_v11 = vld [vmem:[#allocation2 + $0x7c] ss:$144 sps:$4 sm:$0xff]  }
  0x95   :  { %928 = vmatprep.subr.bf16.mxu1 %v12354_v22  ;;  %1134 = vmatpush1.bf16.msra.mxu0 %v12382_v28  ;;  %v12447_v6 = vld [vmem:[#allocation6 + $0xc4] ss:$16 sps:$4 sm:$0xff]   ;;  %v12448_v14 = vld [vmem:[#allocation6 + $0xa0] ss:$16 sps:$4 sm:$0xff]   ;;  %v12438_v16 = vld [vmem:[#allocation2 + $0x1ac] ss:$144 sps:$4 sm:$0xff]  }
  0x96   :  { %1153 = vmatprep.mubr.bf16.mxu0 %v14565_v0  ;;  %1135 = vmatprep.subr.bf16.mxu0 %v12387_v29  ;;  %v12424_v9 = vld [vmem:[#allocation2 + $0x198] ss:$144 sps:$4 sm:$0xff]   ;;  %v12454_v18 = vld [vmem:[#allocation6 + $0x80] ss:$16 sps:$4 sm:$0xff]   ;;  %v12441_v19 = vld [vmem:[#allocation2 + $0x8c] ss:$144 sps:$4 sm:$0xff]  }
  0x97   :  { %11012 = vmatmul.mubr.msk.bf16.vlgmr.msra.gmra.mxu1 %vm789_vm0, %v14661_v7  ;;  %v12450_v12 = vld [vmem:[#allocation6 + $0xa4] ss:$16 sps:$4 sm:$0xff]   ;;  %v12460_v22 = vld [vmem:[#allocation6 + $0x60] ss:$16 sps:$4 sm:$0xff]  }
  0x98   :  { %929 = vmatpush1.bf16.msra.mxu1 %v12352_v23  ;;  %948 = vmatprep.mubr.bf16.mxu1 %v14565_v0  ;;  %v12427_v13 = vld [vmem:[#allocation2 + $0x78] ss:$144 sps:$4 sm:$0xff]   ;;  %v12466_v26 = vld [vmem:[#allocation6 + $0x40] ss:$16 sps:$4 sm:$0xff]  }
  0x99   :  { %930 = vmatprep.subr.bf16.mxu1 %v12357_v25  ;;  %1136 = vmatpush1.bf16.msra.mxu0 %v12385_v32  ;;  %v12456_v15 = vld [vmem:[#allocation6 + $0x84] ss:$16 sps:$4 sm:$0xff]   ;;  %v12451_v25 = vld [vmem:[#allocation6 + $0x2e0] ss:$16 sps:$4 sm:$0xff]  }
  0x9a   :  { %1215 = vmatprep.subr.bf16.mxu0 %v12396_v34  ;;  %v12436_v17 = vld [vmem:[#allocation2 + $0x1a8] ss:$144 sps:$4 sm:$0xff]   ;;  %v12457_v29 = vld [vmem:[#allocation6 + $0x2c0] ss:$16 sps:$4 sm:$0xff]  }
  0x9b   :  { %v12462_v20 = vld [vmem:[#allocation6 + $0x64] ss:$16 sps:$4 sm:$0xff]   ;;  %v12463_v32 = vld [vmem:[#allocation6 + $0x2a0] ss:$16 sps:$4 sm:$0xff]  }
  0x9c   :  { %931 = vmatpush1.bf16.msra.mxu1 %v12355_v27  ;;  %11018 = vmatmul.mubr.msk.bf16.vlgmr.msra.gmra.mxu0 %vm789_vm0, %v14661_v7  ;;  %v12439_v21 = vld [vmem:[#allocation2 + $0x88] ss:$144 sps:$4 sm:$0xff]  }
  0x9d   :  { %1010 = vmatprep.subr.bf16.mxu1 %v12365_v30  ;;  %1216 = vmatpush1.bf16.msra.mxu0 %v12394_v36  ;;  %v12468_v23 = vld [vmem:[#allocation6 + $0x44] ss:$16 sps:$4 sm:$0xff]   ;;  %v12472_v30 = vld [vmem:[#allocation6 + $0x20] ss:$16 sps:$4 sm:$0xff]  }
  0x9e   :  { %1235 = vmatprep.mubr.bf16.mxu0 %v14565_v0  ;;  %1217 = vmatprep.subr.bf16.mxu0 %v12399_v37  ;;  %v12453_v24 = vld [vmem:[#allocation6 + $0x2e4] ss:$16 sps:$4 sm:$0xff]   ;;  %v12469_v36 = vld [vmem:[#allocation6 + $0x280] ss:$16 sps:$4 sm:$0xff]  }
  0x9f   :  { %11013 = vmatmul.mubr.msk.bf16.vlgmr.msra.gmra.mxu1 %vm789_vm0, %v14661_v7  ;;  %v12474_v27 = vld [vmem:[#allocation6 + $0x24] ss:$16 sps:$4 sm:$0xff]   ;;  %v12484_v37 = vld [vmem:[#allocation6 + $0x1e0] ss:$16 sps:$4 sm:$0xff]  }
  0xa0   :  { %1011 = vmatpush1.bf16.msra.mxu1 %v12363_v31  ;;  %1030 = vmatprep.mubr.bf16.mxu1 %v14565_v0  ;;  %v12459_v28 = vld [vmem:[#allocation6 + $0x2c4] ss:$16 sps:$4 sm:$0xff]  }
  0xa1   :  { %1012 = vmatprep.subr.bf16.mxu1 %v12369_v33  ;;  %1218 = vmatpush1.bf16.msra.mxu0 %v12397_v40  ;;  %v12465_v31 = vld [vmem:[#allocation6 + $0x2a4] ss:$16 sps:$4 sm:$0xff]   ;;  %v12478_v33 = vld [vmem:[#allocation6] ss:$16 sps:$4 sm:$0xff]  }
  0xa2   :  { %1297 = vmatprep.subr.bf16.mxu0 %v12408_v42  ;;  %v12486_v34 = vld [vmem:[#allocation6 + $0x1e4] ss:$16 sps:$4 sm:$0xff]   ;;  %v12490_v40 = vld [vmem:[#allocation6 + $0x1c0] ss:$16 sps:$4 sm:$0xff]  }
  0xa3   :  { %v12483_v42 = vld [vmem:[#allocation6 + $0x244] ss:$16 sps:$4 sm:$0xff]  }
  0xa4   :  { %1013 = vmatpush1.bf16.msra.mxu1 %v12367_v35  ;;  %11020 = vmatmul.mubr.msk.bf16.vlgmr.msra.gmra.mxu0 %vm789_vm0, %v14661_v7  ;;  %v12471_v35 = vld [vmem:[#allocation6 + $0x284] ss:$16 sps:$4 sm:$0xff]  }
  0xa5   :  { %1092 = vmatprep.subr.bf16.mxu1 %v12378_v38  ;;  %1298 = vmatpush1.bf16.msra.mxu0 %v12406_v44  ;;  %v12477_v38 = vld [vmem:[#allocation6 + $0x264] ss:$16 sps:$4 sm:$0xff]  }
  0xa6   :  { %1317 = vmatprep.mubr.bf16.mxu0 %v14565_v0  ;;  %1299 = vmatprep.subr.bf16.mxu0 %v12411_v45  ;;  %v12489_v44 = vld [vmem:[#allocation6 + $0x224] ss:$16 sps:$4 sm:$0xff]   ;;  %v12496_v45 = vld [vmem:[#allocation6 + $0x1a0] ss:$16 sps:$4 sm:$0xff]  }
  0xa7   :  { %11015 = vmatmul.mubr.msk.bf16.vlgmr.msra.gmra.mxu1 %vm789_vm0, %v14661_v7 }
  0xa8   :  { %1093 = vmatpush1.bf16.msra.mxu1 %v12376_v39  ;;  %1112 = vmatprep.mubr.bf16.mxu1 %v14565_v0  ;;  %v12475_v39 = vld [vmem:[#allocation6 + $0x260] ss:$16 sps:$4 sm:$0xff]  }
  0xa9   :  { %1094 = vmatprep.subr.bf16.mxu1 %v12381_v41  ;;  %1300 = vmatpush1.bf16.msra.mxu0 %v12409_v48  ;;  %v12498_v41 = vld [vmem:[#allocation6 + $0x1a4] ss:$16 sps:$4 sm:$0xff]  }
  0xaa   :  { %1379 = vmatprep.subr.bf16.mxu0 %v12420_v50  ;;  %v12495_v48 = vld [vmem:[#allocation6 + $0x204] ss:$16 sps:$4 sm:$0xff]  }
  0xab   :  { %v12510_v50 = vld [vmem:[#allocation6 + $0x164] ss:$16 sps:$4 sm:$0xff]  }
  0xac   :  { %1095 = vmatpush1.bf16.msra.mxu1 %v12379_v43  ;;  %11022 = vmatmul.mubr.msk.bf16.vlgmr.msra.gmra.mxu0 %vm789_vm0, %v14661_v7  ;;  %v12481_v43 = vld [vmem:[#allocation6 + $0x240] ss:$16 sps:$4 sm:$0xff]  }
  0xad   :  { %1174 = vmatprep.subr.bf16.mxu1 %v12390_v46  ;;  %1380 = vmatpush1.bf16.msra.mxu0 %v12418_v52  ;;  %v12504_v46 = vld [vmem:[#allocation6 + $0x184] ss:$16 sps:$4 sm:$0xff]  }
  0xae   :  { %1399 = vmatprep.mubr.bf16.mxu0 %v14565_v0  ;;  %1381 = vmatprep.subr.bf16.mxu0 %v12423_v53  ;;  %v12501_v52 = vld [vmem:[#allocation6 + $0x3e4] ss:$16 sps:$4 sm:$0xff]   ;;  %v12508_v53 = vld [vmem:[#allocation6 + $0x160] ss:$16 sps:$4 sm:$0xff]  }
  0xaf   :  { %11017 = vmatmul.mubr.msk.bf16.vlgmr.msra.gmra.mxu1 %vm789_vm0, %v14661_v7 }
  0xb0   :  { %1175 = vmatpush1.bf16.msra.mxu1 %v12388_v47  ;;  %1194 = vmatprep.mubr.bf16.mxu1 %v14565_v0  ;;  %v12487_v47 = vld [vmem:[#allocation6 + $0x220] ss:$16 sps:$4 sm:$0xff]  }
  0xb1   :  { %1176 = vmatprep.subr.bf16.mxu1 %v12393_v49  ;;  %1382 = vmatpush1.bf16.msra.mxu0 %v12421_v56  ;;  %v12502_v49 = vld [vmem:[#allocation6 + $0x180] ss:$16 sps:$4 sm:$0xff]   ;;  %v12507_v56 = vld [vmem:[#allocation6 + $0x3c4] ss:$16 sps:$4 sm:$0xff]  }
  0xb2   :  { %1461 = vmatprep.subr.bf16.mxu0 %v12432_v58  ;;  %v12522_v58 = vld [vmem:[#allocation6 + $0x124] ss:$16 sps:$4 sm:$0xff]  }
  0xb4   :  { %1177 = vmatpush1.bf16.msra.mxu1 %v12391_v51  ;;  %11024 = vmatmul.mubr.msk.bf16.vlgmr.msra.gmra.mxu0 %vm789_vm0, %v14661_v7  ;;  %v12493_v51 = vld [vmem:[#allocation6 + $0x200] ss:$16 sps:$4 sm:$0xff]  }
  0xb5   :  { %1256 = vmatprep.subr.bf16.mxu1 %v12402_v54  ;;  %1462 = vmatpush1.bf16.msra.mxu0 %v12430_v60  ;;  %v12516_v54 = vld [vmem:[#allocation6 + $0x144] ss:$16 sps:$4 sm:$0xff]  }
  0xb6   :  { %1481 = vmatprep.mubr.bf16.mxu0 %v14565_v0  ;;  %1463 = vmatprep.subr.bf16.mxu0 %v12435_v61  ;;  %v12513_v60 = vld [vmem:[#allocation6 + $0x3a4] ss:$16 sps:$4 sm:$0xff]   ;;  %v12520_v61 = vld [vmem:[#allocation6 + $0x120] ss:$16 sps:$4 sm:$0xff]  }
  0xb7   :  { %11019 = vmatmul.mubr.msk.bf16.vlgmr.msra.gmra.mxu1 %vm789_vm0, %v14661_v7 }
  0xb8   :  { %1257 = vmatpush1.bf16.msra.mxu1 %v12400_v55  ;;  %1276 = vmatprep.mubr.bf16.mxu1 %v14565_v0  ;;  %v12499_v55 = vld [vmem:[#allocation6 + $0x3e0] ss:$16 sps:$4 sm:$0xff]  }
  0xb9   :  { %1258 = vmatprep.subr.bf16.mxu1 %v12405_v57  ;;  %1464 = vmatpush1.bf16.msra.mxu0 %v12433_v1  ;;  %v12514_v57 = vld [vmem:[#allocation6 + $0x140] ss:$16 sps:$4 sm:$0xff]   ;;  %v12519_v1 = vld [vmem:[#allocation6 + $0x384] ss:$16 sps:$4 sm:$0xff]  }
  0xba   :  { %8537 = vmatprep.subr.bf16.mxu0 %v12444_v3  ;;  %v12537_v3 = vld [vmem:[#allocation6 + $0x4e4] ss:$16 sps:$4 sm:$0xff]  }
  0xbc   :  { %1259 = vmatpush1.bf16.msra.mxu1 %v12403_v59  ;;  %11026 = vmatmul.mubr.msk.bf16.vlgmr.msra.gmra.mxu0 %vm789_vm0, %v14661_v7  ;;  %v12505_v59 = vld [vmem:[#allocation6 + $0x3c0] ss:$16 sps:$4 sm:$0xff]  }
  0xbd   :  { %1338 = vmatprep.subr.bf16.mxu1 %v12414_v62  ;;  %8538 = vmatpush1.bf16.msra.mxu0 %v12442_v5  ;;  %v12528_v62 = vld [vmem:[#allocation6 + $0x104] ss:$16 sps:$4 sm:$0xff]  }
  0xbe   :  { %8539 = vmatprep.subr.bf16.mxu0 %v12447_v6  ;;  %v12525_v5 = vld [vmem:[#allocation6 + $0x364] ss:$16 sps:$4 sm:$0xff]   ;;  %v12523_v6 = vld [vmem:[#allocation6 + $0x360] ss:$16 sps:$4 sm:$0xff]  }
  0xbf   :  { %11021 = vmatmul.mubr.msk.bf16.vlgmr.msra.gmra.mxu1 %vm789_vm0, %v14661_v7 }
  0xc0   :  { %1339 = vmatpush1.bf16.msra.mxu1 %v12412_v63  ;;  %1358 = vmatprep.mubr.bf16.mxu1 %v14565_v0  ;;  %v12511_v63 = vld [vmem:[#allocation6 + $0x3a0] ss:$16 sps:$4 sm:$0xff]  }
  0xc1   :  { %1340 = vmatprep.subr.bf16.mxu1 %v12417_v2  ;;  %8540 = vmatpush1.bf16.msra.mxu0 %v12445_v10  ;;  %v12526_v2 = vld [vmem:[#allocation6 + $0x100] ss:$16 sps:$4 sm:$0xff]   ;;  %v12534_v10 = vld [vmem:[#allocation6 + $0x324] ss:$16 sps:$4 sm:$0xff]  }
  0xc2   :  { %8541 = vmatprep.subr.bf16.mxu0 %v12450_v12  ;;  %v12540_v12 = vld [vmem:[#allocation6 + $0x304] ss:$16 sps:$4 sm:$0xff]  }
  0xc4   :  { %1341 = vmatpush1.bf16.msra.mxu1 %v12415_v4  ;;  %v12517_v4 = vld [vmem:[#allocation6 + $0x380] ss:$16 sps:$4 sm:$0xff]  }
  0xc5   :  { %1420 = vmatprep.subr.bf16.mxu1 %v12426_v8  ;;  %8542 = vmatpush1.bf16.msra.mxu0 %v12448_v14  ;;  %v12531_v8 = vld [vmem:[#allocation6 + $0x344] ss:$16 sps:$4 sm:$0xff]  }
  0xc6   :  { %8543 = vmatprep.subr.bf16.mxu0 %v12456_v15  ;;  %v12549_v14 = vld [vmem:[#allocation6 + $0x6e4] ss:$16 sps:$4 sm:$0xff]   ;;  %v249_v15 = vlaneseq }
  0xc7   :  { %11023 = vmatmul.mubr.msk.bf16.vlgmr.msra.gmra.mxu1 %vm789_vm0, %v14661_v7 }
  0xc8   :  { %1421 = vmatpush1.bf16.msra.mxu1 %v12424_v9  ;;  %1440 = vmatprep.mubr.bf16.mxu1 %v14565_v0  ;;  %v12529_v9 = vld [vmem:[#allocation6 + $0x340] ss:$16 sps:$4 sm:$0xff]  }
  0xc9   :  { %1422 = vmatprep.subr.bf16.mxu1 %v12429_v11  ;;  %8544 = vmatpush1.bf16.msra.mxu0 %v12454_v18  ;;  %v12532_v11 = vld [vmem:[#allocation6 + $0x320] ss:$16 sps:$4 sm:$0xff]  }
  0xca   :  { %8545 = vmatprep.subr.bf16.mxu0 %v12462_v20  ;;  %v14724_v20 = vld [vmem:[#allocation4 + $0x10] sm:$0xff] }
  0xcc   :  { %1423 = vmatpush1.bf16.msra.mxu1 %v12427_v13  ;;  %v12538_v13 = vld [vmem:[#allocation6 + $0x300] ss:$16 sps:$4 sm:$0xff]  }
  0xcd   :  { %1502 = vmatprep.subr.bf16.mxu1 %v12438_v16  ;;  %8546 = vmatpush1.bf16.msra.mxu0 %v12460_v22  ;;  %v14715_v16 = vshrl.u32 %v249_v15, 7  ;;  %v14728_v22 = vld [vmem:[#allocation4] sm:$0xff] }
  0xce   :  { %8547 = vmatprep.subr.bf16.mxu0 %v12468_v23 }
  0xcf   :  { %11025 = vmatmul.mubr.msk.bf16.vlgmr.msra.gmra.mxu1 %vm789_vm0, %v14661_v7  ;;  %v14720_v18 = vsub.s32 6, %v14715_v16  ;;  %v14731_v23 = vsub.s32 0, %v14715_v16 }
  0xd0   :  { %1503 = vmatpush1.bf16.msra.mxu1 %v12436_v17  ;;  %1522 = vmatprep.mubr.bf16.mxu1 %v14565_v0  ;;  %v12480_v0 = vld [vmem:[#allocation6 + $0x4] ss:$16 sps:$4 sm:$0xff]  }
  0xd1   :  { %1504 = vmatprep.subr.bf16.mxu1 %v12441_v19  ;;  %8548 = vmatpush1.bf16.msra.mxu0 %v12466_v26  ;;  %v14717_v17 = vld [vmem:[#allocation4 + $0x8] sm:$0xff] }
  0xd2   :  { %8549 = vmatprep.subr.bf16.mxu0 %v12474_v27  ;;  %v308_v19 = vrot.slane %v14717_v17, %v14720_v18 }
  0xd4   :  { %1505 = vmatpush1.bf16.msra.mxu1 %v12439_v21  ;;  %v340_v21 = vrot.slane %v14724_v20, %v14720_v18 }
  0xd5   :  { %8578 = vmatprep.subr.bf16.mxu1 %v12453_v24  ;;  %8550 = vmatpush1.bf16.msra.mxu0 %v12472_v30  ;;  %v14734_v24 = vsub.s32 1, %v14715_v16 }
  0xd6   :  { %8551 = vmatprep.subr.bf16.mxu0 %v12480_v0 }
  0xd7   :  { %11027 = vmatmul.mubr.msk.bf16.vlgmr.msra.gmra.mxu1 %vm789_vm0, %v14661_v7  ;;  %v12492_v7 = vld [vmem:[#allocation6 + $0x1c4] ss:$16 sps:$4 sm:$0xff]   ;;  %v256_v26 = vrot.slane %v14728_v22, %v14734_v24 }
  0xd8   :  { %8579 = vmatpush1.bf16.msra.mxu1 %v12451_v25  ;;  %v252_v25 = vrot.slane %v14728_v22, %v14731_v23 }
  0xd9   :  { %8580 = vmatprep.subr.bf16.mxu1 %v12459_v28  ;;  %8552 = vmatpush1.bf16.msra.mxu0 %v12478_v33 }
  0xda   :  { %8553 = vmatprep.subr.bf16.mxu0 %v12486_v34 }
  0xdc   :  { %8581 = vmatpush1.bf16.msra.mxu1 %v12457_v29  ;;  %v14741_v29 = vsub.s32 2, %v14715_v16 }
  0xdd   :  { %8582 = vmatprep.subr.bf16.mxu1 %v12465_v31  ;;  %8554 = vmatpush2.bf16.msra.mxu0 %v12484_v37  ;;  %v14744_v31 = vsub.s32 3, %v14715_v16 }
  0xde   :  { %8555 = vmatprep.subr.bf16.mxu0 %v12492_v7  ;;  %v260_v37 = vrot.slane %v14728_v22, %v14741_v29  ;;  %v12535_v7 = vld [vmem:[#allocation6 + $0x4e0] ss:$16 sps:$4 sm:$0xff]  }
  0xe0   :  { %8583 = vmatpush1.bf16.msra.mxu1 %v12463_v32  ;;  %v14746_v32 = vld [vmem:[#allocation4 + $0x18] sm:$0xff] }
  0xe1   :  { %8584 = vmatprep.subr.bf16.mxu1 %v12471_v35  ;;  %8556 = vmatpush2.bf16.msra.mxu0 %v12490_v40  ;;  %v372_v35 = vrot.slane %v14746_v32, %v14720_v18  ;;  %v264_v40 = vrot.slane %v14728_v22, %v14744_v31 }
  0xe2   :  { %8557 = vmatprep.subr.bf16.mxu0 %v12498_v41 }
  0xe4   :  { %8585 = vmatpush1.bf16.msra.mxu1 %v12469_v36 }
  0xe5   :  { %8586 = vmatprep.subr.bf16.mxu1 %v12477_v38  ;;  %8558 = vmatpush2.bf16.msra.mxu0 %v12496_v45  ;;  %v12541_v45 = vld [vmem:[#allocation6 + $0x4c0] ss:$16 sps:$4 sm:$0xff]  }
  0xe6   :  { %8559 = vmatprep.subr.bf16.mxu0 %v12504_v46 }
  0xe8   :  { %8587 = vmatpush1.bf16.msra.mxu1 %v12475_v39 }
  0xe9   :  { %8588 = vmatprep.subr.bf16.mxu1 %v12483_v42  ;;  %8560 = vmatpush2.bf16.msra.mxu0 %v12502_v49 }
  0xea   :  { %8561 = vmatprep.subr.bf16.mxu0 %v12510_v50 }
  0xec   :  { %8589 = vmatpush1.bf16.msra.mxu1 %v12481_v43  ;;  %v12543_v43 = vld [vmem:[#allocation6 + $0x4c4] ss:$16 sps:$4 sm:$0xff]  }
  0xed   :  { %8590 = vmatprep.subr.bf16.mxu1 %v12489_v44  ;;  %8562 = vmatpush2.bf16.msra.mxu0 %v12508_v53 }
  0xee   :  { %8563 = vmatprep.subr.bf16.mxu0 %v12516_v54  ;;  %v12544_v54 = vld [vmem:[#allocation6 + $0x4a0] ss:$16 sps:$4 sm:$0xff]  }
  0xf0   :  { %8591 = vmatpush1.bf16.msra.mxu1 %v12487_v47 }
  0xf1   :  { %8592 = vmatprep.subr.bf16.mxu1 %v12495_v48  ;;  %8564 = vmatpush2.bf16.msra.mxu0 %v12514_v57  ;;  %v14761_v48 = vsub.s32 5, %v14715_v16 }
  0xf2   :  { %8565 = vmatprep.subr.bf16.mxu0 %v12522_v58  ;;  %v12552_v58 = vld [vmem:[#allocation6 + $0x484] ss:$16 sps:$4 sm:$0xff]  }
  0xf4   :  { %8593 = vmatpush1.bf16.msra.mxu1 %v12493_v51 }
  0xf5   :  { %8594 = vmatprep.subr.bf16.mxu1 %v12501_v52  ;;  %8566 = vmatpush2.bf16.msra.mxu0 %v12520_v61  ;;  %v12546_v52 = vld [vmem:[#allocation6 + $0x4a4] ss:$16 sps:$4 sm:$0xff]  }
  0xf6   :  { %8567 = vmatprep.subr.bf16.mxu0 %v12528_v62  ;;  %v272_v62 = vrot.slane %v14728_v22, %v14761_v48 }
  0xf8   :  { %8595 = vmatpush2.bf16.msra.mxu1 %v12499_v55  ;;  %v12547_v55 = vld [vmem:[#allocation6 + $0x6e0] ss:$16 sps:$4 sm:$0xff]  }
  0xf9   :  { %8596 = vmatprep.subr.bf16.mxu1 %v12507_v56  ;;  %8568 = vmatpush2.bf16.msra.mxu0 %v12526_v2 }
  0xfa   :  { %8619 = vmatprep.subr.bf16.mxu0 %v12537_v3 }
  0xfc   :  { %8597 = vmatpush2.bf16.msra.mxu1 %v12505_v59  ;;  %v12555_v59 = vld [vmem:[#allocation6 + $0x6c4] ss:$16 sps:$4 sm:$0xff]  }
  0xfd   :  { %8598 = vmatprep.subr.bf16.mxu1 %v12513_v60  ;;  %v14768_v60 = vsub.s32 4, %v14715_v16 }
  0xff   :  { %v300_v3 = vrot.slane %v14717_v17, %v14768_v60 }
 0x100   :  { %8599 = vmatpush2.bf16.msra.mxu1 %v12511_v63 }
 0x101   :  { %8600 = vmatprep.subr.bf16.mxu1 %v12519_v1 }
 0x104   :  { %8601 = vmatpush2.bf16.msra.mxu1 %v12517_v4 }
 0x105   :  { %8602 = vmatprep.subr.bf16.mxu1 %v12525_v5  ;;  %v12550_v5 = vld [vmem:[#allocation6 + $0x480] ss:$16 sps:$4 sm:$0xff]  }
 0x108   :  { %8603 = vmatpush2.bf16.msra.mxu1 %v12523_v6  ;;  %v12553_v6 = vld [vmem:[#allocation6 + $0x6c0] ss:$16 sps:$4 sm:$0xff]  }
 0x109   :  { %8604 = vmatprep.subr.bf16.mxu1 %v12531_v8 }
 0x10c   :  { %8605 = vmatpush2.bf16.msra.mxu1 %v12529_v9 }
 0x10d   :  { %8606 = vmatprep.subr.bf16.mxu1 %v12534_v10  ;;  %v14783_v10 = vsub.s32 7, %v14715_v16 }
 0x10f   :  { %v280_v16 = vrot.slane %v14728_v22, %v14783_v10 }
 0x110   :  { %8607 = vmatpush2.bf16.msra.mxu1 %v12532_v11 }
 0x111   :  { %8608 = vmatprep.subr.bf16.mxu1 %v12540_v12  ;;  %v12558_v12 = vld [vmem:[#allocation6 + $0x464] ss:$16 sps:$4 sm:$0xff]  }
 0x114   :  { %8609 = vmatpush2.bf16.msra.mxu1 %v12538_v13  ;;  %v12561_v13 = vld [vmem:[#allocation6 + $0x6a4] ss:$16 sps:$4 sm:$0xff]  }
 0x115   :  { %8660 = vmatprep.subr.bf16.mxu1 %v12549_v14 }
 0x147   :  { %v827_v27 = vpop.f32.mrf.mxu1 }
 0x148   :  { %v828_v28 = vadd.f32 %v827_v27, %v252_v25 }
 0x149   :  { %v829_v30 = vpop.f32.mrf.mxu1 }
 0x14a   :  { %v830_v0 = vadd.f32 %v829_v30, %v256_v26  ;;  %v1531_v33 = vmax.f32 %v828_v28, 0.0  ;;  %v12556_v28 = vld [vmem:[#allocation6 + $0x460] ss:$16 sps:$4 sm:$0xff]  }
 0x14b   :  { %v831_v34 = vpop.f32.mrf.mxu1  ;;  %v12559_v30 = vld [vmem:[#allocation6 + $0x6a0] ss:$16 sps:$4 sm:$0xff]  }
 0x14c   :  { %v1532_v36 = vmax.f32 %v830_v0, 0.0  ;;  %v14756_v41 = vpack.c.bf16 %v1531_v33, %v1531_v33  ;;  %v14763_v49 = vpop.f32.mrf.mxu0  ;;  %v12564_v34 = vld [vmem:[#allocation6 + $0x444] ss:$16 sps:$4 sm:$0xff]  }
 0x14d   :  { %v832_v38 = vpop.f32.mrf.mxu1 }
 0x14e   :  { %v14752_v39 = vpack.c.bf16 %v1532_v36, %v1532_v36  ;;  %v14765_v56 = vpop.f32.mrf.mxu0  ;;  %v12567_v36 = vld [vmem:[#allocation6 + $0x684] ss:$16 sps:$4 sm:$0xff]  }
 0x14f   :  { %v868_v42 = vpop.f32.mrf.mxu1 }
 0x150   :  { %v869_v44 = vadd.f32 %v868_v42, %v260_v37  ;;  %8569 = vmatprep.mubr.bf16.mxu0 %v14752_v39  ;;  %v995_v63 = vpop.f32.mrf.mxu0  ;;  %v12565_v42 = vld [vmem:[#allocation6 + $0x680] ss:$16 sps:$4 sm:$0xff]  }
 0x151   :  { %v870_v46 = vpop.f32.mrf.mxu1  ;;  %8570 = vmatmul.mubr.bf16.vlgmr.msra.gmra.mxu0 %v14756_v41 }
 0x152   :  { %v871_v47 = vadd.f32 %v870_v46, %v264_v40  ;;  %8620 = vmatpush1.bf16.msra.mxu0 %v12535_v7  ;;  %v1533_v50 = vmax.f32 %v869_v44, 0.0  ;;  %v996_v4 = vpop.f32.mrf.mxu0  ;;  %v12562_v40 = vld [vmem:[#allocation6 + $0x440] ss:$16 sps:$4 sm:$0xff]   ;;  %v12573_v46 = vld [vmem:[#allocation6 + $0x664] ss:$16 sps:$4 sm:$0xff]  }
 0x153   :  { %v872_v51 = vpop.f32.mrf.mxu1  ;;  %8621 = vmatprep.subr.bf16.mxu0 %v12543_v43 }
 0x154   :  { %v1534_v53 = vmax.f32 %v871_v47, 0.0  ;;  %v14774_v1 = vpack.c.bf16 %v1533_v50, %v1533_v50  ;;  %v1073_v11 = vpop.f32.mrf.mxu0  ;;  %v292_v51 = vrot.slane %v14717_v17, %v14741_v29 }
 0x155   :  { %v873_v57 = vpop.f32.mrf.mxu1  ;;  %v14785_v15 = vadd.f32 %v1073_v11, %v300_v3  ;;  %v332_v3 = vrot.slane %v14724_v20, %v14768_v60  ;;  %v12577_v11 = vld [vmem:[#allocation6 + $0x640] ss:$16 sps:$4 sm:$0xff]  }
 0x156   :  { %v14770_v61 = vpack.c.bf16 %v1534_v53, %v1534_v53  ;;  %8622 = vmatpush1.bf16.msra.mxu0 %v12541_v45  ;;  %v14787_v26 = vpop.f32.mrf.mxu0  ;;  %v12570_v45 = vld [vmem:[#allocation6 + $0x424] ss:$16 sps:$4 sm:$0xff]  }
 0x157   :  { %8623 = vmatprep.subr.bf16.mxu0 %v12546_v52  ;;  %v14776_v2 = vpop.f32.mrf.mxu1 }
 0x158   :  { %8610 = vmatprep.mubr.bf16.mxu1 %v14770_v61  ;;  %v1077_v33 = vpop.f32.mrf.mxu0 }
 0x159   :  { %8611 = vmatmul.mubr.bf16.vlgmr.msra.gmra.mxu1 %v14774_v1  ;;  %v911_v8 = vpop.f32.mrf.mxu1  ;;  %v12580_v33 = vld [vmem:[#allocation6 + $0x5e0] ss:$16 sps:$4 sm:$0xff]  }
 0x15a   :  { %8624 = vmatpush1.bf16.msra.mxu0 %v12544_v54  ;;  %8661 = vmatpush1.bf16.msra.mxu1 %v12547_v55  ;;  %v912_v9 = vadd.f32 %v911_v8, %v272_v62  ;;  %v1078_v7 = vpop.f32.mrf.mxu0  ;;  %v12568_v54 = vld [vmem:[#allocation6 + $0x420] ss:$16 sps:$4 sm:$0xff]   ;;  %v12579_v62 = vld [vmem:[#allocation6 + $0x644] ss:$16 sps:$4 sm:$0xff]   ;;  %v336_v8 = vrot.slane %v14724_v20, %v14761_v48 }
 0x15b   :  { %8625 = vmatprep.subr.bf16.mxu0 %v12552_v58  ;;  %8662 = vmatprep.subr.bf16.mxu1 %v12555_v59  ;;  %v913_v14 = vpop.f32.mrf.mxu1  ;;  %v12571_v55 = vld [vmem:[#allocation6 + $0x660] ss:$16 sps:$4 sm:$0xff]   ;;  %v12576_v59 = vld [vmem:[#allocation6 + $0x404] ss:$16 sps:$4 sm:$0xff]  }
 0x15c   :  { %v1536_v25 = vmax.f32 %v912_v9, 0.0  ;;  %v14796_v44 = vpop.f32.mrf.mxu0  ;;  %v12574_v9 = vld [vmem:[#allocation6 + $0x400] ss:$16 sps:$4 sm:$0xff]   ;;  %v12585_v14 = vld [vmem:[#allocation6 + $0x624] ss:$16 sps:$4 sm:$0xff]  }
 0x15d   :  { %v914_v27 = vpop.f32.mrf.mxu1 }
 0x15e   :  { %8626 = vmatpush1.bf16.msra.mxu0 %v12550_v5  ;;  %8663 = vmatpush1.bf16.msra.mxu1 %v12553_v6  ;;  %v14789_v0 = vpack.c.bf16 %v1536_v25, %v1536_v25  ;;  %v14800_v52 = vpop.f32.mrf.mxu0 }
 0x15f   :  { %8627 = vmatprep.subr.bf16.mxu0 %v12558_v12  ;;  %8664 = vmatprep.subr.bf16.mxu1 %v12561_v13  ;;  %v14793_v37 = vpop.f32.mrf.mxu1  ;;  %v12582_v13 = vld [vmem:[#allocation6 + $0x5e4] ss:$16 sps:$4 sm:$0xff]  }
 0x160   :  { %8651 = vmatprep.mubr.bf16.mxu0 %v14789_v0  ;;  %v1159_v58 = vpop.f32.mrf.mxu0 }
 0x161   :  { %v952_v38 = vpop.f32.mrf.mxu1 }
 0x162   :  { %8628 = vmatpush1.bf16.msra.mxu0 %v12556_v28  ;;  %8665 = vmatpush1.bf16.msra.mxu1 %v12559_v30  ;;  %v953_v43 = vadd.f32 %v952_v38, %v280_v16  ;;  %v1160_v5 = vpop.f32.mrf.mxu0  ;;  %v12588_v38 = vld [vmem:[#allocation6 + $0x5c4] ss:$16 sps:$4 sm:$0xff]  }
 0x163   :  { %8629 = vmatprep.subr.bf16.mxu0 %v12564_v34  ;;  %8666 = vmatprep.subr.bf16.mxu1 %v12567_v36  ;;  %v954_v47 = vpop.f32.mrf.mxu1  ;;  %v12583_v34 = vld [vmem:[#allocation6 + $0x620] ss:$16 sps:$4 sm:$0xff]   ;;  %v312_v36 = vrot.slane %v14717_v17, %v14783_v10 }
 0x164   :  { %v1538_v50 = vmax.f32 %v953_v43, 0.0  ;;  %v1237_v12 = vpop.f32.mrf.mxu0  ;;  %v12586_v47 = vld [vmem:[#allocation6 + $0x5c0] ss:$16 sps:$4 sm:$0xff]  }
 0x165   :  { %v955_v53 = vpop.f32.mrf.mxu1  ;;  %v14813_v27 = vadd.f32 %v1237_v12, %v332_v3  ;;  %v12595_v3 = vld [vmem:[#allocation6 + $0x7e0] ss:$16 sps:$4 sm:$0xff]   ;;  %v364_v12 = vrot.slane %v14746_v32, %v14768_v60 }
 0x166   :  { %8630 = vmatpush1.bf16.msra.mxu0 %v12562_v40  ;;  %8667 = vmatpush1.bf16.msra.mxu1 %v12565_v42  ;;  %v14802_v57 = vpack.c.bf16 %v1538_v50, %v1538_v50  ;;  %v1239_v28 = vpop.f32.mrf.mxu0  ;;  %v12591_v40 = vld [vmem:[#allocation6 + $0x604] ss:$16 sps:$4 sm:$0xff]   ;;  %v12589_v50 = vld [vmem:[#allocation6 + $0x600] ss:$16 sps:$4 sm:$0xff]  }
 0x167   :  { %8631 = vmatprep.subr.bf16.mxu0 %v12570_v45  ;;  %8668 = vmatprep.subr.bf16.mxu1 %v12573_v46  ;;  %v1032_v63 = vpop.f32.mrf.mxu1  ;;  %v14815_v16 = vadd.f32 %v1239_v28, %v336_v8  ;;  %v12600_v8 = vld [vmem:[#allocation6 + $0x584] ss:$16 sps:$4 sm:$0xff]   ;;  %v368_v28 = vrot.slane %v14746_v32, %v14761_v48 }
 0x168   :  { %8692 = vmatprep.mubr.bf16.mxu1 %v14802_v57  ;;  %v14807_v4 = vadd.f32 %v1032_v63, %v292_v51  ;;  %v1241_v7 = vpop.f32.mrf.mxu0  ;;  %v12592_v63 = vld [vmem:[#allocation6 + $0x5a0] ss:$16 sps:$4 sm:$0xff]  }
 0x169   :  { %v14809_v6 = vpop.f32.mrf.mxu1  ;;  %v12609_v7 = vld [vmem:[#allocation6 + $0x7a4] ss:$16 sps:$4 sm:$0xff]  }
 0x16a   :  { %8632 = vmatpush1.bf16.msra.mxu0 %v12568_v54  ;;  %8669 = vmatpush1.bf16.msra.mxu1 %v12571_v55  ;;  %v1242_v45 = vpop.f32.mrf.mxu0  ;;  %v12594_v54 = vld [vmem:[#allocation6 + $0x5a4] ss:$16 sps:$4 sm:$0xff]  }
 0x16b   :  { %8633 = vmatprep.subr.bf16.mxu0 %v12576_v59  ;;  %8670 = vmatprep.subr.bf16.mxu1 %v12579_v62  ;;  %v1036_v25 = vpop.f32.mrf.mxu1  ;;  %v12597_v55 = vld [vmem:[#allocation6 + $0x7e4] ss:$16 sps:$4 sm:$0xff]   ;;  %v324_v59 = vrot.slane %v14724_v20, %v14741_v29 }
 0x16c   :  { %v14826_v53 = vpop.f32.mrf.mxu0 }
 0x16d   :  { %v1037_v30 = vpop.f32.mrf.mxu1 }
 0x16e   :  { %8634 = vmatpush1.bf16.msra.mxu0 %v12574_v9  ;;  %8671 = vmatpush1.bf16.msra.mxu1 %v12577_v11  ;;  %v12603_v9 = vld [vmem:[#allocation6 + $0x7c4] ss:$16 sps:$4 sm:$0xff]   ;;  %v12598_v30 = vld [vmem:[#allocation6 + $0x580] ss:$16 sps:$4 sm:$0xff]  }
 0x16f   :  { %8635 = vmatprep.subr.bf16.mxu0 %v12582_v13  ;;  %8672 = vmatprep.subr.bf16.mxu1 %v12585_v14  ;;  %v1114_v42 = vpop.f32.mrf.mxu1 }
 0x170   :  { %v14822_v43 = vadd.f32 %v1114_v42, %v308_v19  ;;  %v14830_v19 = vpop.f32.mrf.mxu0 }
 0x171   :  { %v1116_v46 = vpop.f32.mrf.mxu1 }
 0x172   :  { %8636 = vmatpush2.bf16.msra.mxu0 %v12580_v33  ;;  %8673 = vmatpush1.bf16.msra.mxu1 %v12583_v34  ;;  %v14824_v51 = vadd.f32 %v1116_v46, %v312_v36  ;;  %v1323_v5 = vpop.f32.mrf.mxu0  ;;  %v12601_v33 = vld [vmem:[#allocation6 + $0x7c0] ss:$16 sps:$4 sm:$0xff]   ;;  %v12606_v36 = vld [vmem:[#allocation6 + $0x564] ss:$16 sps:$4 sm:$0xff]  }
 0x173   :  { %8637 = vmatprep.subr.bf16.mxu0 %v12588_v38  ;;  %8674 = vmatprep.subr.bf16.mxu1 %v12591_v40  ;;  %v1118_v58 = vpop.f32.mrf.mxu1 }
 0x174   :  { %v1324_v14 = vpop.f32.mrf.mxu0  ;;  %v12612_v58 = vld [vmem:[#allocation6 + $0x544] ss:$16 sps:$4 sm:$0xff]  }
 0x175   :  { %v1119_v62 = vpop.f32.mrf.mxu1  ;;  %v268_v14 = vrot.slane %v14728_v22, %v14768_v60 }
 0x176   :  { %8638 = vmatpush2.bf16.msra.mxu0 %v12586_v47  ;;  %8675 = vmatpush1.bf16.msra.mxu1 %v12589_v50  ;;  %v1401_v34 = vpop.f32.mrf.mxu0  ;;  %v12604_v47 = vld [vmem:[#allocation6 + $0x560] ss:$16 sps:$4 sm:$0xff]  }
 0x177   :  { %8639 = vmatprep.subr.bf16.mxu0 %v12594_v54  ;;  %8676 = vmatprep.subr.bf16.mxu1 %v12597_v55  ;;  %v1196_v11 = vpop.f32.mrf.mxu1  ;;  %v14840_v40 = vadd.f32 %v1401_v34, %v364_v12  ;;  %v12607_v50 = vld [vmem:[#allocation6 + $0x7a0] ss:$16 sps:$4 sm:$0xff]   ;;  %v344_v54 = vrot.slane %v14724_v20, %v14783_v10  ;;  %v910_v60 = vadd.f32 %v14776_v2, %v268_v14 }
 0x178   :  { %v14834_v13 = vadd.f32 %v1196_v11, %v324_v59  ;;  %v1403_v42 = vpop.f32.mrf.mxu0  ;;  %v12615_v59 = vld [vmem:[#allocation6 + $0x784] ss:$16 sps:$4 sm:$0xff]   ;;  %v276_v2 = vrot.slane %v14728_v22, %v14720_v18 }
 0x179   :  { %v14836_v25 = vpop.f32.mrf.mxu1  ;;  %v14842_v46 = vadd.f32 %v1403_v42, %v368_v28  ;;  %v12618_v28 = vld [vmem:[#allocation6 + $0x524] ss:$16 sps:$4 sm:$0xff]  }
 0x17a   :  { %8640 = vmatpush2.bf16.msra.mxu0 %v12592_v63  ;;  %8677 = vmatpush2.bf16.msra.mxu1 %v12595_v3  ;;  %v1405_v55 = vpop.f32.mrf.mxu0 }
 0x17b   :  { %8641 = vmatprep.subr.bf16.mxu0 %v12600_v8  ;;  %8678 = vmatprep.subr.bf16.mxu1 %v12603_v9  ;;  %v1200_v38 = vpop.f32.mrf.mxu1  ;;  %v12610_v8 = vld [vmem:[#allocation6 + $0x540] ss:$16 sps:$4 sm:$0xff]  }
 0x17c   :  { %v1406_v3 = vpop.f32.mrf.mxu0  ;;  %v12613_v9 = vld [vmem:[#allocation6 + $0x780] ss:$16 sps:$4 sm:$0xff]  }
 0x17d   :  { %v1201_v45 = vpop.f32.mrf.mxu1  ;;  %v12619_v38 = vld [vmem:[#allocation6 + $0x760] ss:$16 sps:$4 sm:$0xff]  }
 0x17e   :  { %8642 = vmatpush2.bf16.msra.mxu0 %v12598_v30  ;;  %8679 = vmatpush2.bf16.msra.mxu1 %v12601_v33  ;;  %v14853_v12 = vpop.f32.mrf.mxu0  ;;  %v12621_v30 = vld [vmem:[#allocation6 + $0x764] ss:$16 sps:$4 sm:$0xff]   ;;  %v356_v33 = vrot.slane %v14746_v32, %v14741_v29  ;;  %v12625_v3 = vld [vmem:[#allocation6 + $0x740] ss:$16 sps:$4 sm:$0xff]  }
 0x17f   :  { %8643 = vmatprep.subr.bf16.mxu0 %v12606_v36  ;;  %8680 = vmatprep.subr.bf16.mxu1 %v12609_v7  ;;  %v1278_v62 = vpop.f32.mrf.mxu1  ;;  %v12616_v7 = vld [vmem:[#allocation6 + $0x520] ss:$16 sps:$4 sm:$0xff]   ;;  %v12624_v45 = vld [vmem:[#allocation6 + $0x504] ss:$16 sps:$4 sm:$0xff]  }
 0x180   :  { %v14849_v63 = vadd.f32 %v1278_v62, %v340_v21  ;;  %v288_v21 = vrot.slane %v14717_v17, %v14734_v24  ;;  %v14861_v34 = vpop.f32.mrf.mxu0  ;;  %v12622_v62 = vld [vmem:[#allocation6 + $0x500] ss:$16 sps:$4 sm:$0xff]  }
 0x181   :  { %v1280_v5 = vpop.f32.mrf.mxu1 }
 0x182   :  { %8644 = vmatpush2.bf16.msra.mxu0 %v12604_v47  ;;  %8681 = vmatpush2.bf16.msra.mxu1 %v12607_v50  ;;  %v14851_v11 = vadd.f32 %v1280_v5, %v344_v54  ;;  %v1487_v42 = vpop.f32.mrf.mxu0  ;;  %v12627_v47 = vld [vmem:[#allocation6 + $0x744] ss:$16 sps:$4 sm:$0xff]   ;;  %v994_v54 = vadd.f32 %v14765_v56, %v288_v21  ;;  %v1535_v5 = vmax.f32 %v910_v60, 0.0  ;;  %v12631_v56 = vld [vmem:[#allocation6 + $0x8e0] ss:$16 sps:$4 sm:$0xff]  }
 0x183   :  { %8645 = vmatprep.subr.bf16.mxu0 %v12612_v58  ;;  %8682 = vmatprep.subr.bf16.mxu1 %v12615_v59  ;;  %v1282_v20 = vpop.f32.mrf.mxu1  ;;  %v12636_v21 = vld [vmem:[#allocation6 + $0x704] ss:$16 sps:$4 sm:$0xff]   ;;  %v12634_v60 = vld [vmem:[#allocation6 + $0x700] ss:$16 sps:$4 sm:$0xff]  }
 0x184   :  { %v1488_v58 = vpop.f32.mrf.mxu0  ;;  %v296_v20 = vrot.slane %v14717_v17, %v14744_v31  ;;  %v14875_v22 = vpack.c.bf16 %v1535_v5, %v1535_v5 }
 0x185   :  { %v1283_v36 = vpop.f32.mrf.mxu1 }
 0x186   :  { %8646 = vmatpush2.bf16.msra.mxu0 %v12610_v8  ;;  %8683 = vmatpush2.bf16.msra.mxu1 %v12613_v9  ;;  %v12630_v8 = vld [vmem:[#allocation6 + $0x724] ss:$16 sps:$4 sm:$0xff]   ;;  %v1035_v17 = vadd.f32 %v14809_v6, %v296_v20  ;;  %v12640_v6 = vld [vmem:[#allocation6 + $0x8a0] ss:$16 sps:$4 sm:$0xff]  }
 0x187   :  { %8647 = vmatprep.subr.bf16.mxu0 %v12618_v28  ;;  %8684 = vmatprep.subr.bf16.mxu1 %v12621_v30  ;;  %v1360_v50 = vpop.f32.mrf.mxu1  ;;  %v12633_v9 = vld [vmem:[#allocation6 + $0x8e4] ss:$16 sps:$4 sm:$0xff]   ;;  %v12628_v28 = vld [vmem:[#allocation6 + $0x720] ss:$16 sps:$4 sm:$0xff]   ;;  %v1540_v30 = vmax.f32 %v994_v54, 0.0 }
 0x188   :  { %v14865_v55 = vadd.f32 %v1360_v50, %v356_v33  ;;  %v12639_v33 = vld [vmem:[#allocation6 + $0x8c4] ss:$16 sps:$4 sm:$0xff]  }
 0x189   :  { %v14867_v59 = vpop.f32.mrf.mxu1  ;;  %v12645_v54 = vld [vmem:[#allocation6 + $0xae4] ss:$16 sps:$4 sm:$0xff]  }
 0x18a   :  { %8648 = vmatpush2.bf16.msra.mxu0 %v12616_v7  ;;  %8685 = vmatpush2.bf16.msra.mxu1 %v12619_v38  ;;  %v376_v7 = vrot.slane %v14746_v32, %v14783_v10  ;;  %v951_v38 = vadd.f32 %v14793_v37, %v276_v2  ;;  %v12642_v10 = vld [vmem:[#allocation6 + $0x8a4] ss:$16 sps:$4 sm:$0xff]   ;;  %v243_v37 = vld [vmem:[#allocation4 + $0x20] sm:$0xf]  ;;  %v12643_v2 = vld [vmem:[#allocation6 + $0xae0] ss:$16 sps:$4 sm:$0xff]  }
 0x18b   :  { %8649 = vmatprep.subr.bf16.mxu0 %v12624_v45  ;;  %8686 = vmatprep.subr.bf16.mxu1 %v12627_v47  ;;  %v1364_v14 = vpop.f32.mrf.mxu1  ;;  %v12637_v45 = vld [vmem:[#allocation6 + $0x8c0] ss:$16 sps:$4 sm:$0xff]   ;;  %v14878_v47 = vpack.c.bf16 %v1540_v30, %v1540_v30  ;;  %v388_v18 = vrot.slane %v243_v37, %v14741_v29  ;;  %v12648_v32 = vld [vmem:[#allocation6 + $0x884] ss:$16 sps:$4 sm:$0xff]  }
 0x18c   :  { %v12649_v30 = vld [vmem:[#allocation6 + $0xac0] ss:$16 sps:$4 sm:$0xff]   ;;  %v12666_v37 = vld [vmem:[#allocation6 + $0x824] ss:$16 sps:$4 sm:$0xff]  }
 0x18d   :  { %v1365_v36 = vpop.f32.mrf.mxu1 }
 0x18e   :  { %8650 = vmatpush2.bf16.msra.mxu0 %v12622_v62  ;;  %8687 = vmatpush2.bf16.msra.mxu1 %v12625_v3  ;;  %v1537_v3 = vmax.f32 %v951_v38, 0.0  ;;  %v12657_v36 = vld [vmem:[#allocation6 + $0xaa4] ss:$16 sps:$4 sm:$0xff]  }
 0x18f   :  { %8688 = vmatprep.subr.bf16.mxu1 %v12630_v8  ;;  %8701 = vmatprep.subr.bf16.mxu0 %v12633_v9  ;;  %v1442_v42 = vpop.f32.mrf.mxu1  ;;  %v1542_v8 = vmax.f32 %v1035_v17, 0.0  ;;  %v12660_v17 = vld [vmem:[#allocation6 + $0x844] ss:$16 sps:$4 sm:$0xff]  }
 0x190   :  { %v14884_v50 = vadd.f32 %v1442_v42, %v372_v35  ;;  %v12651_v35 = vld [vmem:[#allocation6 + $0xac4] ss:$16 sps:$4 sm:$0xff]   ;;  %v14891_v14 = vpack.c.bf16 %v1537_v3, %v1537_v3  ;;  %v12652_v42 = vld [vmem:[#allocation6 + $0x860] ss:$16 sps:$4 sm:$0xff]  }
 0x191   :  { %8652 = vmatmul.mubr.bf16.vlgmr.msra.gmra.mxu0 %v14875_v22  ;;  %v1444_v58 = vpop.f32.mrf.mxu1  ;;  %v14893_v20 = vpack.c.bf16 %v1542_v8, %v1542_v8  ;;  %v12669_v3 = vld [vmem:[#allocation6 + $0xa64] ss:$16 sps:$4 sm:$0xff]  }
 0x192   :  { %8689 = vmatpush2.bf16.msra.mxu1 %v12628_v28  ;;  %8702 = vmatpush1.bf16.msra.mxu0 %v12631_v56  ;;  %v14887_v62 = vadd.f32 %v1444_v58, %v376_v7  ;;  %v12646_v56 = vld [vmem:[#allocation6 + $0x880] ss:$16 sps:$4 sm:$0xff]   ;;  %v12675_v8 = vld [vmem:[#allocation6 + $0xa44] ss:$16 sps:$4 sm:$0xff]  }
 0x193   :  { %8690 = vmatprep.subr.bf16.mxu1 %v12636_v21  ;;  %8703 = vmatprep.subr.bf16.mxu0 %v12639_v33  ;;  %v1446_v5 = vpop.f32.mrf.mxu1  ;;  %v12654_v33 = vld [vmem:[#allocation6 + $0x864] ss:$16 sps:$4 sm:$0xff]   ;;  %v12661_v58 = vld [vmem:[#allocation6 + $0xa80] ss:$16 sps:$4 sm:$0xff]  }
 0x194   :  { %8733 = vmatprep.mubr.bf16.mxu0 %v14878_v47  ;;  %v12664_v5 = vld [vmem:[#allocation6 + $0x820] ss:$16 sps:$4 sm:$0xff]  }
 0x195   :  { %v1447_v9 = vpop.f32.mrf.mxu1 }
 0x196   :  { %8691 = vmatpush2.bf16.msra.mxu1 %v12634_v60  ;;  %8704 = vmatpush1.bf16.msra.mxu0 %v12637_v45  ;;  %v12655_v60 = vld [vmem:[#allocation6 + $0xaa0] ss:$16 sps:$4 sm:$0xff]   ;;  %v12681_v9 = vld [vmem:[#allocation6 + $0xa24] ss:$16 sps:$4 sm:$0xff]  }
 0x197   :  { %8705 = vmatprep.subr.bf16.mxu0 %v12642_v10  ;;  %8742 = vmatprep.subr.bf16.mxu1 %v12645_v54  ;;  %v1524_v28 = vpop.f32.mrf.mxu1  ;;  %v12663_v10 = vld [vmem:[#allocation6 + $0xa84] ss:$16 sps:$4 sm:$0xff]   ;;  %v12658_v54 = vld [vmem:[#allocation6 + $0x840] ss:$16 sps:$4 sm:$0xff]  }
 0x198   :  { %v14895_v21 = vadd.f32 %v1524_v28, %v388_v18  ;;  %v12670_v18 = vld [vmem:[#allocation6 + $0x800] ss:$16 sps:$4 sm:$0xff]  }
 0x199   :  { %8693 = vmatmul.mubr.bf16.vlgmr.msra.gmra.mxu1 %v14891_v14  ;;  %v14898_v7 = vpop.f32.mrf.mxu1  ;;  %v12676_v28 = vld [vmem:[#allocation6 + $0x9e0] ss:$16 sps:$4 sm:$0xff]  }
 0x19a   :  { %8706 = vmatpush1.bf16.msra.mxu0 %v12640_v6  ;;  %8743 = vmatpush1.bf16.msra.mxu1 %v12643_v2  ;;  %v12667_v6 = vld [vmem:[#allocation6 + $0xa60] ss:$16 sps:$4 sm:$0xff]   ;;  %v12672_v2 = vld [vmem:[#allocation6 + $0x804] ss:$16 sps:$4 sm:$0xff]  }
 0x19b   :  { %8707 = vmatprep.subr.bf16.mxu0 %v12648_v32  ;;  %8744 = vmatprep.subr.bf16.mxu1 %v12651_v35  ;;  %v1528_v38 = vpop.f32.mrf.mxu1  ;;  %v12673_v32 = vld [vmem:[#allocation6 + $0xa40] ss:$16 sps:$4 sm:$0xff]   ;;  %v12678_v35 = vld [vmem:[#allocation6 + $0x9e4] ss:$16 sps:$4 sm:$0xff]  }
 0x19c   :  { %8774 = vmatprep.mubr.bf16.mxu1 %v14893_v20  ;;  %v12685_v38 = vld [vmem:[#allocation6 + $0xa00] ss:$16 sps:$4 sm:$0xff]  }
 0x19d   :  { %v1529_v45 = vpop.f32.mrf.mxu1 }
 0x19e   :  { %8708 = vmatpush1.bf16.msra.mxu0 %v12646_v56  ;;  %8745 = vmatpush1.bf16.msra.mxu1 %v12649_v30  ;;  %v12679_v56 = vld [vmem:[#allocation6 + $0xa20] ss:$16 sps:$4 sm:$0xff]   ;;  %v12684_v30 = vld [vmem:[#allocation6 + $0x9c4] ss:$16 sps:$4 sm:$0xff]  }
 0x19f   :  { %8709 = vmatprep.subr.bf16.mxu0 %v12654_v33  ;;  %8746 = vmatprep.subr.bf16.mxu1 %v12657_v36  ;;  %v12687_v33 = vld [vmem:[#allocation6 + $0xa04] ss:$16 sps:$4 sm:$0xff]   ;;  %v12682_v36 = vld [vmem:[#allocation6 + $0x9c0] ss:$16 sps:$4 sm:$0xff]  }
 0x1a0   :  { %v12688_v45 = vld [vmem:[#allocation6 + $0x9a0] ss:$16 sps:$4 sm:$0xff]  }
 0x1a2   :  { %8710 = vmatpush1.bf16.msra.mxu0 %v12652_v42  ;;  %8747 = vmatpush1.bf16.msra.mxu1 %v12655_v60  ;;  %v12690_v42 = vld [vmem:[#allocation6 + $0x9a4] ss:$16 sps:$4 sm:$0xff]  }
 0x1a3   :  { %8711 = vmatprep.subr.bf16.mxu0 %v12660_v17  ;;  %8748 = vmatprep.subr.bf16.mxu1 %v12663_v10  ;;  %v12693_v60 = vld [vmem:[#allocation6 + $0xbe4] ss:$16 sps:$4 sm:$0xff]   ;;  %v12691_v17 = vld [vmem:[#allocation6 + $0xbe0] ss:$16 sps:$4 sm:$0xff]  }
 0x1a4   :  { %v12696_v10 = vld [vmem:[#allocation6 + $0x984] ss:$16 sps:$4 sm:$0xff]  }
 0x1a6   :  { %8712 = vmatpush1.bf16.msra.mxu0 %v12658_v54  ;;  %8749 = vmatpush1.bf16.msra.mxu1 %v12661_v58  ;;  %v12699_v54 = vld [vmem:[#allocation6 + $0xbc4] ss:$16 sps:$4 sm:$0xff]   ;;  %v12694_v58 = vld [vmem:[#allocation6 + $0x980] ss:$16 sps:$4 sm:$0xff]  }
 0x1a7   :  { %8713 = vmatprep.subr.bf16.mxu0 %v12666_v37  ;;  %8750 = vmatprep.subr.bf16.mxu1 %v12669_v3  ;;  %v12697_v37 = vld [vmem:[#allocation6 + $0xbc0] ss:$16 sps:$4 sm:$0xff]   ;;  %v12702_v3 = vld [vmem:[#allocation6 + $0x964] ss:$16 sps:$4 sm:$0xff]  }
 0x1aa   :  { %8714 = vmatpush1.bf16.msra.mxu0 %v12664_v5  ;;  %8751 = vmatpush1.bf16.msra.mxu1 %v12667_v6  ;;  %v12705_v5 = vld [vmem:[#allocation6 + $0xba4] ss:$16 sps:$4 sm:$0xff]   ;;  %v12700_v6 = vld [vmem:[#allocation6 + $0x960] ss:$16 sps:$4 sm:$0xff]  }
 0x1ab   :  { %8715 = vmatprep.subr.bf16.mxu0 %v12672_v2  ;;  %8752 = vmatprep.subr.bf16.mxu1 %v12675_v8  ;;  %v12703_v2 = vld [vmem:[#allocation6 + $0xba0] ss:$16 sps:$4 sm:$0xff]   ;;  %v12708_v8 = vld [vmem:[#allocation6 + $0x944] ss:$16 sps:$4 sm:$0xff]  }
 0x1ae   :  { %8716 = vmatpush1.bf16.msra.mxu0 %v12670_v18  ;;  %8753 = vmatpush1.bf16.msra.mxu1 %v12673_v32  ;;  %v12711_v18 = vld [vmem:[#allocation6 + $0xb84] ss:$16 sps:$4 sm:$0xff]   ;;  %v12706_v32 = vld [vmem:[#allocation6 + $0x940] ss:$16 sps:$4 sm:$0xff]  }
 0x1af   :  { %8717 = vmatprep.subr.bf16.mxu0 %v12678_v35  ;;  %8754 = vmatprep.subr.bf16.mxu1 %v12681_v9  ;;  %v12709_v35 = vld [vmem:[#allocation6 + $0xb80] ss:$16 sps:$4 sm:$0xff]   ;;  %v14330_v9 = vld [vmem:[#allocation4 + $0x8] sm:$0xff] }
 0x1b2   :  { %8718 = vmatpush2.bf16.msra.mxu0 %v12676_v28  ;;  %8755 = vmatpush1.bf16.msra.mxu1 %v12679_v56  ;;  %v284_v28 = vrot.slane %v14330_v9, %v14731_v23  ;;  %v12714_v56 = vld [vmem:[#allocation6 + $0x924] ss:$16 sps:$4 sm:$0xff]  }
 0x1b3   :  { %8719 = vmatprep.subr.bf16.mxu0 %v12684_v30  ;;  %8756 = vmatprep.subr.bf16.mxu1 %v12687_v33  ;;  %v12717_v30 = vld [vmem:[#allocation6 + $0xb64] ss:$16 sps:$4 sm:$0xff]   ;;  %v304_v33 = vrot.slane %v14330_v9, %v14761_v48 }
 0x1b4   :  { %v12726_v48 = vld [vmem:[#allocation6 + $0xb24] ss:$16 sps:$4 sm:$0xff]  }
 0x1b5   :  { %v12741_v9 = vld [vmem:[#allocation6 + $0xee4] ss:$16 sps:$4 sm:$0xff]  }
 0x1b6   :  { %8720 = vmatpush2.bf16.msra.mxu0 %v12682_v36  ;;  %8757 = vmatpush1.bf16.msra.mxu1 %v12685_v38  ;;  %v12712_v36 = vld [vmem:[#allocation6 + $0x920] ss:$16 sps:$4 sm:$0xff]  }
 0x1b7   :  { %8721 = vmatprep.subr.bf16.mxu0 %v12690_v42  ;;  %8758 = vmatprep.subr.bf16.mxu1 %v12693_v60  ;;  %v12715_v38 = vld [vmem:[#allocation6 + $0xb60] ss:$16 sps:$4 sm:$0xff]   ;;  %v992_v42 = vadd.f32 %v14763_v49, %v284_v28  ;;  %v12720_v60 = vld [vmem:[#allocation6 + $0x904] ss:$16 sps:$4 sm:$0xff]   ;;  %v1541_v28 = vmax.f32 %v14807_v4, 0.0 }
 0x1b8   :  { %v12750_v4 = vld [vmem:[#allocation6 + $0xc64] ss:$16 sps:$4 sm:$0xff]  }
 0x1ba   :  { %8722 = vmatpush2.bf16.msra.mxu0 %v12688_v45  ;;  %8759 = vmatpush2.bf16.msra.mxu1 %v12691_v17  ;;  %v12723_v45 = vld [vmem:[#allocation6 + $0xb44] ss:$16 sps:$4 sm:$0xff]   ;;  %v1076_v17 = vadd.f32 %v14787_v26, %v304_v33  ;;  %v12730_v26 = vld [vmem:[#allocation6 + $0xb00] ss:$16 sps:$4 sm:$0xff]  }
 0x1bb   :  { %8723 = vmatprep.subr.bf16.mxu0 %v12696_v10  ;;  %8760 = vmatprep.subr.bf16.mxu1 %v12699_v54  ;;  %v12718_v10 = vld [vmem:[#allocation6 + $0x900] ss:$16 sps:$4 sm:$0xff]  }
 0x1bc   :  { %v12721_v54 = vld [vmem:[#allocation6 + $0xb40] ss:$16 sps:$4 sm:$0xff]  }
 0x1bd   :  { %v12739_v33 = vld [vmem:[#allocation6 + $0xee0] ss:$16 sps:$4 sm:$0xff]  }
 0x1be   :  { %8724 = vmatpush2.bf16.msra.mxu0 %v12694_v58  ;;  %8761 = vmatpush2.bf16.msra.mxu1 %v12697_v37  ;;  %v1539_v58 = vmax.f32 %v992_v42, 0.0  ;;  %v12729_v37 = vld [vmem:[#allocation6 + $0xce4] ss:$16 sps:$4 sm:$0xff]   ;;  %v12742_v42 = vld [vmem:[#allocation6 + $0xc80] ss:$16 sps:$4 sm:$0xff]  }
 0x1bf   :  { %8725 = vmatprep.subr.bf16.mxu0 %v12702_v3  ;;  %8762 = vmatprep.subr.bf16.mxu1 %v12705_v5  ;;  %v12724_v3 = vld [vmem:[#allocation6 + $0xb20] ss:$16 sps:$4 sm:$0xff]  }
 0x1c0   :  { %v12727_v5 = vld [vmem:[#allocation6 + $0xce0] ss:$16 sps:$4 sm:$0xff]   ;;  %v14905_v49 = vpack.c.bf16 %v1539_v58, %v1539_v58  ;;  %v12756_v58 = vld [vmem:[#allocation6 + $0xc44] ss:$16 sps:$4 sm:$0xff]  }
 0x1c2   :  { %8726 = vmatpush2.bf16.msra.mxu0 %v12700_v6  ;;  %8763 = vmatpush2.bf16.msra.mxu1 %v12703_v2  ;;  %v1544_v6 = vmax.f32 %v1076_v17, 0.0  ;;  %v12732_v2 = vld [vmem:[#allocation6 + $0xb04] ss:$16 sps:$4 sm:$0xff]  }
 0x1c3   :  { %8727 = vmatprep.subr.bf16.mxu0 %v12708_v8  ;;  %8764 = vmatprep.subr.bf16.mxu1 %v12711_v18  ;;  %v12733_v8 = vld [vmem:[#allocation6 + $0xcc0] ss:$16 sps:$4 sm:$0xff]   ;;  %v12735_v18 = vld [vmem:[#allocation6 + $0xcc4] ss:$16 sps:$4 sm:$0xff]  }
 0x1c6   :  { %8728 = vmatpush2.bf16.msra.mxu0 %v12706_v32  ;;  %8765 = vmatpush2.bf16.msra.mxu1 %v12709_v35  ;;  %v14907_v32 = vpack.c.bf16 %v1544_v6, %v1544_v6  ;;  %v12738_v35 = vld [vmem:[#allocation6 + $0xca4] ss:$16 sps:$4 sm:$0xff]  }
 0x1c7   :  { %8729 = vmatprep.subr.bf16.mxu0 %v12714_v56  ;;  %8766 = vmatprep.subr.bf16.mxu1 %v12717_v30  ;;  %v12736_v56 = vld [vmem:[#allocation6 + $0xca0] ss:$16 sps:$4 sm:$0xff]   ;;  %v1546_v30 = vmax.f32 %v14824_v51, 0.0  ;;  %v12765_v6 = vld [vmem:[#allocation6 + $0xe64] ss:$16 sps:$4 sm:$0xff]  }
 0x1c8   :  { %v12748_v51 = vld [vmem:[#allocation6 + $0xc60] ss:$16 sps:$4 sm:$0xff]  }
 0x1c9   :  { %v14915_v17 = vpack.c.bf16 %v1546_v30, %v1546_v30  ;;  %v12772_v30 = vld [vmem:[#allocation6 + $0xde0] ss:$16 sps:$4 sm:$0xff]  }
 0x1ca   :  { %8730 = vmatpush2.bf16.msra.mxu0 %v12712_v36  ;;  %8767 = vmatpush2.bf16.msra.mxu1 %v12715_v38  ;;  %v12744_v36 = vld [vmem:[#allocation6 + $0xc84] ss:$16 sps:$4 sm:$0xff]   ;;  %v14913_v38 = vpack.c.bf16 %v1541_v28, %v1541_v28 }
 0x1cb   :  { %8731 = vmatprep.subr.bf16.mxu0 %v12720_v60  ;;  %8768 = vmatprep.subr.bf16.mxu1 %v12723_v45  ;;  %v12745_v60 = vld [vmem:[#allocation6 + $0xec0] ss:$16 sps:$4 sm:$0xff]   ;;  %v12747_v45 = vld [vmem:[#allocation6 + $0xec4] ss:$16 sps:$4 sm:$0xff]  }
 0x1cc   :  { %v12774_v28 = vld [vmem:[#allocation6 + $0xde4] ss:$16 sps:$4 sm:$0xff]  }
 0x1ce   :  { %8732 = vmatpush2.bf16.msra.mxu0 %v12718_v10  ;;  %8769 = vmatpush2.bf16.msra.mxu1 %v12721_v54  ;;  %v12753_v10 = vld [vmem:[#allocation6 + $0xea4] ss:$16 sps:$4 sm:$0xff]   ;;  %v12751_v54 = vld [vmem:[#allocation6 + $0xea0] ss:$16 sps:$4 sm:$0xff]  }
 0x1cf   :  { %8770 = vmatprep.subr.bf16.mxu1 %v12726_v48  ;;  %8783 = vmatprep.subr.bf16.mxu0 %v12729_v37  ;;  %v12759_v48 = vld [vmem:[#allocation6 + $0xe84] ss:$16 sps:$4 sm:$0xff]   ;;  %v12754_v37 = vld [vmem:[#allocation6 + $0xc40] ss:$16 sps:$4 sm:$0xff]  }
 0x1d1   :  { %8734 = vmatmul.mubr.bf16.vlgmr.msra.gmra.mxu0 %v14905_v49 }
 0x1d2   :  { %8771 = vmatpush2.bf16.msra.mxu1 %v12724_v3  ;;  %8784 = vmatpush1.bf16.msra.mxu0 %v12727_v5  ;;  %v12757_v3 = vld [vmem:[#allocation6 + $0xe80] ss:$16 sps:$4 sm:$0xff]   ;;  %v12762_v5 = vld [vmem:[#allocation6 + $0xc24] ss:$16 sps:$4 sm:$0xff]  }
 0x1d3   :  { %8815 = vmatprep.mubr.bf16.mxu0 %v14907_v32  ;;  %8772 = vmatprep.subr.bf16.mxu1 %v12732_v2  ;;  %v12760_v2 = vld [vmem:[#allocation6 + $0xc20] ss:$16 sps:$4 sm:$0xff]  }
 0x1d4   :  { %8785 = vmatprep.subr.bf16.mxu0 %v12735_v18  ;;  %v12771_v18 = vld [vmem:[#allocation6 + $0xe44] ss:$16 sps:$4 sm:$0xff]  }
 0x1d6   :  { %8773 = vmatpush2.bf16.msra.mxu1 %v12730_v26  ;;  %8786 = vmatpush1.bf16.msra.mxu0 %v12733_v8  ;;  %v12763_v26 = vld [vmem:[#allocation6 + $0xe60] ss:$16 sps:$4 sm:$0xff]   ;;  %v12768_v8 = vld [vmem:[#allocation6 + $0xc04] ss:$16 sps:$4 sm:$0xff]  }
 0x1d7   :  { %8787 = vmatprep.subr.bf16.mxu0 %v12738_v35  ;;  %8824 = vmatprep.subr.bf16.mxu1 %v12741_v9  ;;  %v12766_v35 = vld [vmem:[#allocation6 + $0xc00] ss:$16 sps:$4 sm:$0xff]  }
 0x1d8   :  { %v12769_v9 = vld [vmem:[#allocation6 + $0xe40] ss:$16 sps:$4 sm:$0xff]  }
 0x1d9   :  { %8775 = vmatmul.mubr.bf16.vlgmr.msra.gmra.mxu1 %v14913_v38 }
 0x1da   :  { %8788 = vmatpush1.bf16.msra.mxu0 %v12736_v56  ;;  %8825 = vmatpush1.bf16.msra.mxu1 %v12739_v33  ;;  %v12777_v56 = vld [vmem:[#allocation6 + $0xe24] ss:$16 sps:$4 sm:$0xff]   ;;  %v12775_v33 = vld [vmem:[#allocation6 + $0xe20] ss:$16 sps:$4 sm:$0xff]  }
 0x1db   :  { %8856 = vmatprep.mubr.bf16.mxu1 %v14915_v17  ;;  %8789 = vmatprep.subr.bf16.mxu0 %v12744_v36  ;;  %v12780_v36 = vld [vmem:[#allocation6 + $0xdc4] ss:$16 sps:$4 sm:$0xff]  }
 0x1dc   :  { %8826 = vmatprep.subr.bf16.mxu1 %v12747_v45  ;;  %v12781_v45 = vld [vmem:[#allocation6 + $0xe00] ss:$16 sps:$4 sm:$0xff]  }
 0x1de   :  { %8790 = vmatpush1.bf16.msra.mxu0 %v12742_v42  ;;  %8827 = vmatpush1.bf16.msra.mxu1 %v12745_v60  ;;  %v12783_v42 = vld [vmem:[#allocation6 + $0xe04] ss:$16 sps:$4 sm:$0xff]   ;;  %v12778_v60 = vld [vmem:[#allocation6 + $0xdc0] ss:$16 sps:$4 sm:$0xff]  }
 0x1df   :  { %8791 = vmatprep.subr.bf16.mxu0 %v12750_v4  ;;  %8828 = vmatprep.subr.bf16.mxu1 %v12753_v10  ;;  %v12786_v4 = vld [vmem:[#allocation6 + $0xda4] ss:$16 sps:$4 sm:$0xff]  }
 0x1e0   :  { %v12789_v10 = vld [vmem:[#allocation6 + $0xfe4] ss:$16 sps:$4 sm:$0xff]  }
 0x1e2   :  { %8792 = vmatpush1.bf16.msra.mxu0 %v12748_v51  ;;  %8829 = vmatpush1.bf16.msra.mxu1 %v12751_v54  ;;  %v12784_v51 = vld [vmem:[#allocation6 + $0xda0] ss:$16 sps:$4 sm:$0xff]  }
 0x1e3   :  { %8793 = vmatprep.subr.bf16.mxu0 %v12756_v58  ;;  %8830 = vmatprep.subr.bf16.mxu1 %v12759_v48  ;;  %v12787_v54 = vld [vmem:[#allocation6 + $0xfe0] ss:$16 sps:$4 sm:$0xff]   ;;  %v12792_v58 = vld [vmem:[#allocation6 + $0xd84] ss:$16 sps:$4 sm:$0xff]  }
 0x1e4   :  { %v12795_v48 = vld [vmem:[#allocation6 + $0xfc4] ss:$16 sps:$4 sm:$0xff]  }
 0x1e6   :  { %8794 = vmatpush1.bf16.msra.mxu0 %v12754_v37  ;;  %8831 = vmatpush1.bf16.msra.mxu1 %v12757_v3  ;;  %v12790_v37 = vld [vmem:[#allocation6 + $0xd80] ss:$16 sps:$4 sm:$0xff]  }
 0x1e7   :  { %8795 = vmatprep.subr.bf16.mxu0 %v12762_v5  ;;  %8832 = vmatprep.subr.bf16.mxu1 %v12765_v6  ;;  %v12793_v3 = vld [vmem:[#allocation6 + $0xfc0] ss:$16 sps:$4 sm:$0xff]   ;;  %v12798_v5 = vld [vmem:[#allocation6 + $0xd64] ss:$16 sps:$4 sm:$0xff]  }
 0x1e8   :  { %v12801_v6 = vld [vmem:[#allocation6 + $0xfa4] ss:$16 sps:$4 sm:$0xff]  }
 0x1ea   :  { %8796 = vmatpush1.bf16.msra.mxu0 %v12760_v2  ;;  %8833 = vmatpush1.bf16.msra.mxu1 %v12763_v26  ;;  %v12796_v2 = vld [vmem:[#allocation6 + $0xd60] ss:$16 sps:$4 sm:$0xff]  }
 0x1eb   :  { %8797 = vmatprep.subr.bf16.mxu0 %v12768_v8  ;;  %8834 = vmatprep.subr.bf16.mxu1 %v12771_v18  ;;  %v12799_v26 = vld [vmem:[#allocation6 + $0xfa0] ss:$16 sps:$4 sm:$0xff]   ;;  %v12804_v8 = vld [vmem:[#allocation6 + $0xd44] ss:$16 sps:$4 sm:$0xff]  }
 0x1ec   :  { %v12807_v18 = vld [vmem:[#allocation6 + $0xf84] ss:$16 sps:$4 sm:$0xff]  }
 0x1ee   :  { %8798 = vmatpush1.bf16.msra.mxu0 %v12766_v35  ;;  %8835 = vmatpush1.bf16.msra.mxu1 %v12769_v9  ;;  %v12802_v35 = vld [vmem:[#allocation6 + $0xd40] ss:$16 sps:$4 sm:$0xff]  }
 0x1ef   :  { %8799 = vmatprep.subr.bf16.mxu0 %v12774_v28  ;;  %8836 = vmatprep.subr.bf16.mxu1 %v12777_v56  ;;  %v12805_v9 = vld [vmem:[#allocation6 + $0xf80] ss:$16 sps:$4 sm:$0xff]   ;;  %v12810_v28 = vld [vmem:[#allocation6 + $0xd24] ss:$16 sps:$4 sm:$0xff]  }
 0x1f0   :  { %v12813_v56 = vld [vmem:[#allocation6 + $0xf64] ss:$16 sps:$4 sm:$0xff]  }
 0x1f2   :  { %8800 = vmatpush2.bf16.msra.mxu0 %v12772_v30  ;;  %8837 = vmatpush1.bf16.msra.mxu1 %v12775_v33  ;;  %v14919_v30 = vld [vmem:[#allocation4 + $0x10] sm:$0xff] }
 0x1f3   :  { %8801 = vmatprep.subr.bf16.mxu0 %v12780_v36  ;;  %8838 = vmatprep.subr.bf16.mxu1 %v12783_v42  ;;  %v320_v33 = vrot.slane %v14919_v30, %v14734_v24  ;;  %v12808_v36 = vld [vmem:[#allocation6 + $0xd20] ss:$16 sps:$4 sm:$0xff]  }
 0x1f4   :  { %v12811_v42 = vld [vmem:[#allocation6 + $0xf60] ss:$16 sps:$4 sm:$0xff]  }
 0x1f6   :  { %8802 = vmatpush2.bf16.msra.mxu0 %v12778_v60  ;;  %8839 = vmatpush1.bf16.msra.mxu1 %v12781_v45  ;;  %v12816_v60 = vld [vmem:[#allocation6 + $0xd04] ss:$16 sps:$4 sm:$0xff]  }
 0x1f7   :  { %8803 = vmatprep.subr.bf16.mxu0 %v12786_v4  ;;  %8840 = vmatprep.subr.bf16.mxu1 %v12789_v10  ;;  %v12819_v45 = vld [vmem:[#allocation6 + $0xf44] ss:$16 sps:$4 sm:$0xff]   ;;  %v1158_v4 = vadd.f32 %v14800_v52, %v320_v33  ;;  %v12814_v10 = vld [vmem:[#allocation6 + $0xd00] ss:$16 sps:$4 sm:$0xff]  }
 0x1f8   :  { %v12837_v33 = vld [vmem:[#allocation6 + $0x12e4] ss:$16 sps:$4 sm:$0xff]  }
 0x1fa   :  { %8804 = vmatpush2.bf16.msra.mxu0 %v12784_v51  ;;  %8841 = vmatpush2.bf16.msra.mxu1 %v12787_v54  ;;  %v12817_v51 = vld [vmem:[#allocation6 + $0xf40] ss:$16 sps:$4 sm:$0xff]   ;;  %v1543_v54 = vmax.f32 %v14785_v15, 0.0 }
 0x1fb   :  { %8805 = vmatprep.subr.bf16.mxu0 %v12792_v58  ;;  %8842 = vmatprep.subr.bf16.mxu1 %v12795_v48  ;;  %v12822_v58 = vld [vmem:[#allocation6 + $0xf24] ss:$16 sps:$4 sm:$0xff]   ;;  %v12829_v15 = vld [vmem:[#allocation6 + $0x10c0] ss:$16 sps:$4 sm:$0xff]  }
 0x1fc   :  { %v12825_v48 = vld [vmem:[#allocation6 + $0x10e4] ss:$16 sps:$4 sm:$0xff]   ;;  %v14927_v52 = vpack.c.bf16 %v1543_v54, %v1543_v54 }
 0x1fe   :  { %8806 = vmatpush2.bf16.msra.mxu0 %v12790_v37  ;;  %8843 = vmatpush2.bf16.msra.mxu1 %v12793_v3  ;;  %v12820_v37 = vld [vmem:[#allocation6 + $0xf20] ss:$16 sps:$4 sm:$0xff]  }
 0x1ff   :  { %8807 = vmatprep.subr.bf16.mxu0 %v12798_v5  ;;  %8844 = vmatprep.subr.bf16.mxu1 %v12801_v6  ;;  %v12823_v3 = vld [vmem:[#allocation6 + $0x10e0] ss:$16 sps:$4 sm:$0xff]   ;;  %v1548_v5 = vmax.f32 %v1158_v4, 0.0  ;;  %v328_v6 = vrot.slane %v14919_v30, %v14744_v31 }
 0x202   :  { %8808 = vmatpush2.bf16.msra.mxu0 %v12796_v2  ;;  %8845 = vmatpush2.bf16.msra.mxu1 %v12799_v26  ;;  %v12828_v2 = vld [vmem:[#allocation6 + $0xf04] ss:$16 sps:$4 sm:$0xff]   ;;  %v2755_v26 = vld [vmem:[#allocation7] sm:$0xf] }
 0x203   :  { %8809 = vmatprep.subr.bf16.mxu0 %v12804_v8  ;;  %8846 = vmatprep.subr.bf16.mxu1 %v12807_v18  ;;  %v12826_v8 = vld [vmem:[#allocation6 + $0xf00] ss:$16 sps:$4 sm:$0xff]   ;;  %v12831_v18 = vld [vmem:[#allocation6 + $0x10c4] ss:$16 sps:$4 sm:$0xff]   ;;  %v2764_v54 = vrot.slane %v2755_v26, %v14734_v24 }
 0x206   :  { %8810 = vmatpush2.bf16.msra.mxu0 %v12802_v35  ;;  %8847 = vmatpush2.bf16.msra.mxu1 %v12805_v9  ;;  %v14929_v35 = vpack.c.bf16 %v1548_v5, %v1548_v5  ;;  %v1199_v9 = vadd.f32 %v14836_v25, %v328_v6  ;;  %v12835_v25 = vld [vmem:[#allocation6 + $0x12e0] ss:$16 sps:$4 sm:$0xff]   ;;  %v12843_v5 = vld [vmem:[#allocation6 + $0x12c4] ss:$16 sps:$4 sm:$0xff]  }
 0x207   :  { %8811 = vmatprep.subr.bf16.mxu0 %v12810_v28  ;;  %8848 = vmatprep.subr.bf16.mxu1 %v12813_v56  ;;  %v12834_v56 = vld [vmem:[#allocation6 + $0x10a4] ss:$16 sps:$4 sm:$0xff]  }
 0x208   :  { %v1550_v4 = vmax.f32 %v1199_v9, 0.0  ;;  %v12849_v9 = vld [vmem:[#allocation6 + $0x12a4] ss:$16 sps:$4 sm:$0xff]  }
 0x20a   :  { %8812 = vmatpush2.bf16.msra.mxu0 %v12808_v36  ;;  %8849 = vmatpush2.bf16.msra.mxu1 %v12811_v42  ;;  %v1545_v36 = vmax.f32 %v14822_v43, 0.0  ;;  %v14939_v6 = vpack.c.bf16 %v1550_v4, %v1550_v4  ;;  %v12853_v4 = vld [vmem:[#allocation6 + $0x1280] ss:$16 sps:$4 sm:$0xff]  }
 0x20b   :  { %8813 = vmatprep.subr.bf16.mxu0 %v12816_v60  ;;  %8850 = vmatprep.subr.bf16.mxu1 %v12819_v45  ;;  %v2760_v60 = vrot.slane %v2755_v26, %v14731_v23  ;;  %v12832_v45 = vld [vmem:[#allocation6 + $0x10a0] ss:$16 sps:$4 sm:$0xff]  }
 0x20e   :  { %8814 = vmatpush2.bf16.msra.mxu0 %v12814_v10  ;;  %8851 = vmatpush2.bf16.msra.mxu1 %v12817_v51  ;;  %v12840_v51 = vld [vmem:[#allocation6 + $0x1084] ss:$16 sps:$4 sm:$0xff]  }
 0x20f   :  { %8852 = vmatprep.subr.bf16.mxu1 %v12822_v58  ;;  %8865 = vmatprep.subr.bf16.mxu0 %v12825_v48  ;;  %v14937_v58 = vpack.c.bf16 %v1545_v36, %v1545_v36 }
 0x211   :  { %8816 = vmatmul.mubr.bf16.vlgmr.msra.gmra.mxu0 %v14927_v52  ;;  %v8571_v28 = vpop.f32.mrf.mxu0 }
 0x212   :  { %8853 = vmatpush2.bf16.msra.mxu1 %v12820_v37  ;;  %8866 = vmatpush1.bf16.msra.mxu0 %v12823_v3  ;;  %v8572_v43 = vadd.f32 %v8571_v28, %v2760_v60  ;;  %v12838_v37 = vld [vmem:[#allocation6 + $0x1080] ss:$16 sps:$4 sm:$0xff]   ;;  %v12855_v60 = vld [vmem:[#allocation6 + $0x1284] ss:$16 sps:$4 sm:$0xff]  }
 0x213   :  { %8897 = vmatprep.mubr.bf16.mxu0 %v14929_v35  ;;  %v8573_v42 = vpop.f32.mrf.mxu0  ;;  %8854 = vmatprep.subr.bf16.mxu1 %v12828_v2  ;;  %v12841_v3 = vld [vmem:[#allocation6 + $0x12c0] ss:$16 sps:$4 sm:$0xff]  }
 0x214   :  { %8867 = vmatprep.subr.bf16.mxu0 %v12831_v18  ;;  %v12846_v18 = vld [vmem:[#allocation6 + $0x1064] ss:$16 sps:$4 sm:$0xff]  }
 0x215   :  { %v8575_v10 = vpop.f32.mrf.mxu0 }
 0x216   :  { %8855 = vmatpush2.bf16.msra.mxu1 %v12826_v8  ;;  %8868 = vmatpush1.bf16.msra.mxu0 %v12829_v15  ;;  %v8574_v10 = vadd.f32 %v8573_v42, %v2764_v54  ;;  %v12852_v42 = vld [vmem:[#allocation6 + $0x1044] ss:$16 sps:$4 sm:$0xff]   ;;  %v12856_v54 = vld [vmem:[#allocation6 + $0x1020] ss:$16 sps:$4 sm:$0xff]  }
 0x217   :  { %v8576_v48 = vpop.f32.mrf.mxu0  ;;  %8869 = vmatprep.subr.bf16.mxu0 %v12834_v56  ;;  %8906 = vmatprep.subr.bf16.mxu1 %v12837_v33  ;;  %v12844_v56 = vld [vmem:[#allocation6 + $0x1060] ss:$16 sps:$4 sm:$0xff]  }
 0x218   :  { %v12847_v33 = vld [vmem:[#allocation6 + $0x12a0] ss:$16 sps:$4 sm:$0xff]  }
 0x219   :  { %8857 = vmatmul.mubr.bf16.vlgmr.msra.gmra.mxu1 %v14937_v58  ;;  %v8612_v2 = vpop.f32.mrf.mxu1  ;;  %v12859_v48 = vld [vmem:[#allocation6 + $0x1260] ss:$16 sps:$4 sm:$0xff]  }
 0x21a   :  { %v14942_v26 = vadd.f32 %v8612_v2, %v8572_v43  ;;  %8870 = vmatpush1.bf16.msra.mxu0 %v12832_v45  ;;  %8907 = vmatpush1.bf16.msra.mxu1 %v12835_v25  ;;  %v12850_v45 = vld [vmem:[#allocation6 + $0x1040] ss:$16 sps:$4 sm:$0xff]   ;;  %v12858_v25 = vld [vmem:[#allocation6 + $0x1024] ss:$16 sps:$4 sm:$0xff]  }
 0x21b   :  { %8938 = vmatprep.mubr.bf16.mxu1 %v14939_v6  ;;  %v8614_v8 = vpop.f32.mrf.mxu1  ;;  %8871 = vmatprep.subr.bf16.mxu0 %v12840_v51  ;;  %v12861_v51 = vld [vmem:[#allocation6 + $0x1264] ss:$16 sps:$4 sm:$0xff]  }
 0x21c   :  { %v14945_v15 = vadd.f32 %v8614_v8, %v8574_v10  ;;  %8908 = vmatprep.subr.bf16.mxu1 %v12843_v5  ;;  %v12864_v43 = vld [vmem:[#allocation6 + $0x1004] ss:$16 sps:$4 sm:$0xff]   ;;  %v12865_v5 = vld [vmem:[#allocation6 + $0x1240] ss:$16 sps:$4 sm:$0xff]  }
 0x21d   :  { %v8616_v28 = vpop.f32.mrf.mxu1  ;;  %v12870_v2 = vld [vmem:[#allocation6 + $0x11e4] ss:$16 sps:$4 sm:$0xff]   ;;  %v12871_v10 = vld [vmem:[#allocation6 + $0x1220] ss:$16 sps:$4 sm:$0xff]  }
 0x21e   :  { %8872 = vmatpush1.bf16.msra.mxu0 %v12838_v37  ;;  %8909 = vmatpush1.bf16.msra.mxu1 %v12841_v3  ;;  %v12867_v37 = vld [vmem:[#allocation6 + $0x1244] ss:$16 sps:$4 sm:$0xff]   ;;  %v12862_v3 = vld [vmem:[#allocation6 + $0x1000] ss:$16 sps:$4 sm:$0xff]  }
 0x21f   :  { %v8617_v36 = vpop.f32.mrf.mxu1  ;;  %8873 = vmatprep.subr.bf16.mxu0 %v12846_v18  ;;  %8910 = vmatprep.subr.bf16.mxu1 %v12849_v9  ;;  %v12873_v18 = vld [vmem:[#allocation6 + $0x1224] ss:$16 sps:$4 sm:$0xff]   ;;  %v12868_v9 = vld [vmem:[#allocation6 + $0x11e0] ss:$16 sps:$4 sm:$0xff]  }
 0x220   :  { %v12876_v8 = vld [vmem:[#allocation6 + $0x11c4] ss:$16 sps:$4 sm:$0xff]  }
 0x221   :  { %v12879_v28 = vld [vmem:[#allocation6 + $0x1204] ss:$16 sps:$4 sm:$0xff]  }
 0x222   :  { %8874 = vmatpush1.bf16.msra.mxu0 %v12844_v56  ;;  %8911 = vmatpush1.bf16.msra.mxu1 %v12847_v33  ;;  %v12874_v56 = vld [vmem:[#allocation6 + $0x11c0] ss:$16 sps:$4 sm:$0xff]   ;;  %v12882_v36 = vld [vmem:[#allocation6 + $0x11a4] ss:$16 sps:$4 sm:$0xff]  }
 0x223   :  { %8875 = vmatprep.subr.bf16.mxu0 %v12852_v42  ;;  %8912 = vmatprep.subr.bf16.mxu1 %v12855_v60  ;;  %v12877_v33 = vld [vmem:[#allocation6 + $0x1200] ss:$16 sps:$4 sm:$0xff]   ;;  %v12885_v42 = vld [vmem:[#allocation6 + $0x13e4] ss:$16 sps:$4 sm:$0xff]  }
 0x224   :  { %v12880_v60 = vld [vmem:[#allocation6 + $0x11a0] ss:$16 sps:$4 sm:$0xff]  }
 0x226   :  { %8876 = vmatpush1.bf16.msra.mxu0 %v12850_v45  ;;  %8913 = vmatpush1.bf16.msra.mxu1 %v12853_v4  ;;  %v12883_v45 = vld [vmem:[#allocation6 + $0x13e0] ss:$16 sps:$4 sm:$0xff]   ;;  %v12888_v4 = vld [vmem:[#allocation6 + $0x1184] ss:$16 sps:$4 sm:$0xff]  }
 0x227   :  { %8877 = vmatprep.subr.bf16.mxu0 %v12858_v25  ;;  %8914 = vmatprep.subr.bf16.mxu1 %v12861_v51  ;;  %v12891_v25 = vld [vmem:[#allocation6 + $0x13c4] ss:$16 sps:$4 sm:$0xff]   ;;  %v12886_v51 = vld [vmem:[#allocation6 + $0x1180] ss:$16 sps:$4 sm:$0xff]  }
 0x22a   :  { %8878 = vmatpush1.bf16.msra.mxu0 %v12856_v54  ;;  %8915 = vmatpush1.bf16.msra.mxu1 %v12859_v48  ;;  %v12889_v54 = vld [vmem:[#allocation6 + $0x13c0] ss:$16 sps:$4 sm:$0xff]   ;;  %v12894_v48 = vld [vmem:[#allocation6 + $0x1164] ss:$16 sps:$4 sm:$0xff]  }
 0x22b   :  { %8879 = vmatprep.subr.bf16.mxu0 %v12864_v43  ;;  %8916 = vmatprep.subr.bf16.mxu1 %v12867_v37  ;;  %v12897_v43 = vld [vmem:[#allocation6 + $0x13a4] ss:$16 sps:$4 sm:$0xff]   ;;  %v12892_v37 = vld [vmem:[#allocation6 + $0x1160] ss:$16 sps:$4 sm:$0xff]  }
 0x22e   :  { %8880 = vmatpush1.bf16.msra.mxu0 %v12862_v3  ;;  %8917 = vmatpush1.bf16.msra.mxu1 %v12865_v5  ;;  %v12895_v3 = vld [vmem:[#allocation6 + $0x13a0] ss:$16 sps:$4 sm:$0xff]   ;;  %v12900_v5 = vld [vmem:[#allocation6 + $0x1144] ss:$16 sps:$4 sm:$0xff]  }
 0x22f   :  { %8881 = vmatprep.subr.bf16.mxu0 %v12870_v2  ;;  %8918 = vmatprep.subr.bf16.mxu1 %v12873_v18  ;;  %v12903_v2 = vld [vmem:[#allocation6 + $0x1384] ss:$16 sps:$4 sm:$0xff]   ;;  %v12898_v18 = vld [vmem:[#allocation6 + $0x1140] ss:$16 sps:$4 sm:$0xff]  }
 0x232   :  { %8882 = vmatpush2.bf16.msra.mxu0 %v12868_v9  ;;  %8919 = vmatpush1.bf16.msra.mxu1 %v12871_v10  ;;  %v12901_v9 = vld [vmem:[#allocation6 + $0x1380] ss:$16 sps:$4 sm:$0xff]   ;;  %v316_v10 = vrot.slane %v14919_v30, %v14731_v23  ;;  %v12918_v30 = vld [vmem:[#allocation6 + $0x1324] ss:$16 sps:$4 sm:$0xff]  }
 0x233   :  { %8883 = vmatprep.subr.bf16.mxu0 %v12876_v8  ;;  %8920 = vmatprep.subr.bf16.mxu1 %v12879_v28  ;;  %v12906_v8 = vld [vmem:[#allocation6 + $0x1124] ss:$16 sps:$4 sm:$0xff]  }
 0x234   :  { %v12909_v28 = vld [vmem:[#allocation6 + $0x1364] ss:$16 sps:$4 sm:$0xff]  }
 0x236   :  { %8884 = vmatpush2.bf16.msra.mxu0 %v12874_v56  ;;  %8921 = vmatpush1.bf16.msra.mxu1 %v12877_v33  ;;  %v12904_v56 = vld [vmem:[#allocation6 + $0x1120] ss:$16 sps:$4 sm:$0xff]  }
 0x237   :  { %8885 = vmatprep.subr.bf16.mxu0 %v12882_v36  ;;  %8922 = vmatprep.subr.bf16.mxu1 %v12885_v42  ;;  %v12907_v33 = vld [vmem:[#allocation6 + $0x1360] ss:$16 sps:$4 sm:$0xff]   ;;  %v1156_v36 = vadd.f32 %v14796_v44, %v316_v10  ;;  %v12912_v42 = vld [vmem:[#allocation6 + $0x1104] ss:$16 sps:$4 sm:$0xff]  }
 0x238   :  { %v12927_v44 = vld [vmem:[#allocation6 + $0x14c4] ss:$16 sps:$4 sm:$0xff]  }
 0x239   :  { %v12930_v10 = vld [vmem:[#allocation6 + $0x14a4] ss:$16 sps:$4 sm:$0xff]  }
 0x23a   :  { %8886 = vmatpush2.bf16.msra.mxu0 %v12880_v60  ;;  %8923 = vmatpush2.bf16.msra.mxu1 %v12883_v45  ;;  %v12915_v60 = vld [vmem:[#allocation6 + $0x1344] ss:$16 sps:$4 sm:$0xff]   ;;  %v12910_v45 = vld [vmem:[#allocation6 + $0x1100] ss:$16 sps:$4 sm:$0xff]  }
 0x23b   :  { %8887 = vmatprep.subr.bf16.mxu0 %v12888_v4  ;;  %8924 = vmatprep.subr.bf16.mxu1 %v12891_v25  ;;  %v12913_v4 = vld [vmem:[#allocation6 + $0x1340] ss:$16 sps:$4 sm:$0xff]   ;;  %v1547_v25 = vmax.f32 %v1156_v36, 0.0 }
 0x23c   :  { %v12928_v36 = vld [vmem:[#allocation6 + $0x14a0] ss:$16 sps:$4 sm:$0xff]  }
 0x23e   :  { %8888 = vmatpush2.bf16.msra.mxu0 %v12886_v51  ;;  %8925 = vmatpush2.bf16.msra.mxu1 %v12889_v54  ;;  %v12921_v51 = vld [vmem:[#allocation6 + $0x14e4] ss:$16 sps:$4 sm:$0xff]   ;;  %v12916_v54 = vld [vmem:[#allocation6 + $0x1320] ss:$16 sps:$4 sm:$0xff]  }
 0x23f   :  { %8889 = vmatprep.subr.bf16.mxu0 %v12894_v48  ;;  %8926 = vmatprep.subr.bf16.mxu1 %v12897_v43  ;;  %v12919_v48 = vld [vmem:[#allocation6 + $0x14e0] ss:$16 sps:$4 sm:$0xff]   ;;  %v1552_v43 = vmax.f32 %v14815_v16, 0.0  ;;  %v1549_v16 = vmax.f32 %v14834_v13, 0.0 }
 0x240   :  { %v12934_v13 = vld [vmem:[#allocation6 + $0x1480] ss:$16 sps:$4 sm:$0xff]  }
 0x242   :  { %8890 = vmatpush2.bf16.msra.mxu0 %v12892_v37  ;;  %8927 = vmatpush2.bf16.msra.mxu1 %v12895_v3  ;;  %v12924_v37 = vld [vmem:[#allocation6 + $0x1304] ss:$16 sps:$4 sm:$0xff]   ;;  %v14951_v3 = vpack.c.bf16 %v1547_v25, %v1547_v25  ;;  %v14961_v25 = vpack.c.bf16 %v1549_v16, %v1549_v16  ;;  %v12946_v16 = vld [vmem:[#allocation6 + $0x1440] ss:$16 sps:$4 sm:$0xff]  }
 0x243   :  { %8891 = vmatprep.subr.bf16.mxu0 %v12900_v5  ;;  %8928 = vmatprep.subr.bf16.mxu1 %v12903_v2  ;;  %v12922_v5 = vld [vmem:[#allocation6 + $0x1300] ss:$16 sps:$4 sm:$0xff]  }
 0x244   :  { %v12925_v2 = vld [vmem:[#allocation6 + $0x14c0] ss:$16 sps:$4 sm:$0xff]  }
 0x246   :  { %8892 = vmatpush2.bf16.msra.mxu0 %v12898_v18  ;;  %8929 = vmatpush2.bf16.msra.mxu1 %v12901_v9  ;;  %v14953_v18 = vpack.c.bf16 %v1552_v43, %v1552_v43 }
 0x247   :  { %8893 = vmatprep.subr.bf16.mxu0 %v12906_v8  ;;  %8930 = vmatprep.subr.bf16.mxu1 %v12909_v28  ;;  %v12933_v8 = vld [vmem:[#allocation6 + $0x16e4] ss:$16 sps:$4 sm:$0xff]  }
 0x24a   :  { %8894 = vmatpush2.bf16.msra.mxu0 %v12904_v56  ;;  %8931 = vmatpush2.bf16.msra.mxu1 %v12907_v33 }
 0x24b   :  { %8895 = vmatprep.subr.bf16.mxu0 %v12912_v42  ;;  %8932 = vmatprep.subr.bf16.mxu1 %v12915_v60  ;;  %v1554_v42 = vmax.f32 %v14851_v11, 0.0  ;;  %v12945_v11 = vld [vmem:[#allocation6 + $0x16a4] ss:$16 sps:$4 sm:$0xff]  }
 0x24e   :  { %8896 = vmatpush2.bf16.msra.mxu0 %v12910_v45  ;;  %8933 = vmatpush2.bf16.msra.mxu1 %v12913_v4  ;;  %v12931_v45 = vld [vmem:[#allocation6 + $0x16e0] ss:$16 sps:$4 sm:$0xff]   ;;  %v12936_v4 = vld [vmem:[#allocation6 + $0x1484] ss:$16 sps:$4 sm:$0xff]  }
 0x24f   :  { %8934 = vmatprep.subr.bf16.mxu1 %v12918_v30  ;;  %8947 = vmatprep.subr.bf16.mxu0 %v12921_v51  ;;  %v12937_v51 = vld [vmem:[#allocation6 + $0x16c0] ss:$16 sps:$4 sm:$0xff]  }
 0x251   :  { %v8653_v9 = vpop.f32.mrf.mxu0  ;;  %8898 = vmatmul.mubr.bf16.vlgmr.msra.gmra.mxu0 %v14951_v3 }
 0x252   :  { %v8654_v28 = vadd.f32 %v8653_v9, %v14942_v26  ;;  %8935 = vmatpush2.bf16.msra.mxu1 %v12916_v54  ;;  %8948 = vmatpush1.bf16.msra.mxu0 %v12919_v48  ;;  %v12939_v26 = vld [vmem:[#allocation6 + $0x16c4] ss:$16 sps:$4 sm:$0xff]   ;;  %v14963_v54 = vpack.c.bf16 %v1554_v42, %v1554_v42  ;;  %v12943_v9 = vld [vmem:[#allocation6 + $0x16a0] ss:$16 sps:$4 sm:$0xff]  }
 0x253   :  { %8979 = vmatprep.mubr.bf16.mxu0 %v14953_v18  ;;  %v8655_v56 = vpop.f32.mrf.mxu0  ;;  %8936 = vmatprep.subr.bf16.mxu1 %v12924_v37  ;;  %v12942_v48 = vld [vmem:[#allocation6 + $0x1464] ss:$16 sps:$4 sm:$0xff]   ;;  %v12952_v42 = vld [vmem:[#allocation6 + $0x1420] ss:$16 sps:$4 sm:$0xff]  }
 0x254   :  { %v8656_v33 = vadd.f32 %v8655_v56, %v14945_v15  ;;  %8949 = vmatprep.subr.bf16.mxu0 %v12927_v44  ;;  %v12949_v56 = vld [vmem:[#allocation6 + $0x1680] ss:$16 sps:$4 sm:$0xff]  }
 0x255   :  { %v8657_v60 = vpop.f32.mrf.mxu0 }
 0x256   :  { %8937 = vmatpush2.bf16.msra.mxu1 %v12922_v5  ;;  %8950 = vmatpush1.bf16.msra.mxu0 %v12925_v2  ;;  %v12940_v2 = vld [vmem:[#allocation6 + $0x1460] ss:$16 sps:$4 sm:$0xff]  }
 0x257   :  { %v8658_v30 = vpop.f32.mrf.mxu0  ;;  %8951 = vmatprep.subr.bf16.mxu0 %v12930_v10  ;;  %8988 = vmatprep.subr.bf16.mxu1 %v12933_v8  ;;  %v12948_v8 = vld [vmem:[#allocation6 + $0x1444] ss:$16 sps:$4 sm:$0xff]   ;;  %v12955_v60 = vld [vmem:[#allocation6 + $0x1660] ss:$16 sps:$4 sm:$0xff]  }
 0x258   :  { %v12961_v30 = vld [vmem:[#allocation6 + $0x1640] ss:$16 sps:$4 sm:$0xff]  }
 0x259   :  { %v8694_v15 = vpop.f32.mrf.mxu1  ;;  %8939 = vmatmul.mubr.bf16.vlgmr.msra.gmra.mxu1 %v14961_v25 }
 0x25a   :  { %v14966_v43 = vadd.f32 %v8694_v15, %v8654_v28  ;;  %8952 = vmatpush1.bf16.msra.mxu0 %v12928_v36  ;;  %8989 = vmatpush1.bf16.msra.mxu1 %v12931_v45  ;;  %v12951_v28 = vld [vmem:[#allocation6 + $0x1684] ss:$16 sps:$4 sm:$0xff]   ;;  %v12964_v15 = vld [vmem:[#allocation6 + $0x15e0] ss:$16 sps:$4 sm:$0xff]  }
 0x25b   :  { %9020 = vmatprep.mubr.bf16.mxu1 %v14963_v54  ;;  %v8696_v37 = vpop.f32.mrf.mxu1  ;;  %8953 = vmatprep.subr.bf16.mxu0 %v12936_v4  ;;  %v12954_v36 = vld [vmem:[#allocation6 + $0x1424] ss:$16 sps:$4 sm:$0xff]  }
 0x25c   :  { %v14969_v44 = vadd.f32 %v8696_v37, %v8656_v33  ;;  %8990 = vmatprep.subr.bf16.mxu1 %v12939_v26  ;;  %v12957_v33 = vld [vmem:[#allocation6 + $0x1664] ss:$16 sps:$4 sm:$0xff]   ;;  %v12958_v26 = vld [vmem:[#allocation6 + $0x1400] ss:$16 sps:$4 sm:$0xff]  }
 0x25d   :  { %v8698_v5 = vpop.f32.mrf.mxu1  ;;  %v12960_v45 = vld [vmem:[#allocation6 + $0x1404] ss:$16 sps:$4 sm:$0xff]  }
 0x25e   :  { %8954 = vmatpush1.bf16.msra.mxu0 %v12934_v13  ;;  %8991 = vmatpush1.bf16.msra.mxu1 %v12937_v51  ;;  %v12963_v4 = vld [vmem:[#allocation6 + $0x1644] ss:$16 sps:$4 sm:$0xff]   ;;  %v12970_v5 = vld [vmem:[#allocation6 + $0x15c0] ss:$16 sps:$4 sm:$0xff]  }
 0x25f   :  { %v8699_v10 = vpop.f32.mrf.mxu1  ;;  %8955 = vmatprep.subr.bf16.mxu0 %v12942_v48  ;;  %8992 = vmatprep.subr.bf16.mxu1 %v12945_v11  ;;  %v12966_v13 = vld [vmem:[#allocation6 + $0x15e4] ss:$16 sps:$4 sm:$0xff]   ;;  %v12967_v48 = vld [vmem:[#allocation6 + $0x1620] ss:$16 sps:$4 sm:$0xff]  }
 0x260   :  { %v12969_v51 = vld [vmem:[#allocation6 + $0x1624] ss:$16 sps:$4 sm:$0xff]  }
 0x261   :  { %v12972_v11 = vld [vmem:[#allocation6 + $0x15c4] ss:$16 sps:$4 sm:$0xff]  }
 0x262   :  { %8956 = vmatpush1.bf16.msra.mxu0 %v12940_v2  ;;  %8993 = vmatpush1.bf16.msra.mxu1 %v12943_v9  ;;  %v12975_v37 = vld [vmem:[#allocation6 + $0x1604] ss:$16 sps:$4 sm:$0xff]   ;;  %v12973_v2 = vld [vmem:[#allocation6 + $0x1600] ss:$16 sps:$4 sm:$0xff]  }
 0x263   :  { %8957 = vmatprep.subr.bf16.mxu0 %v12948_v8  ;;  %8994 = vmatprep.subr.bf16.mxu1 %v12951_v28  ;;  %v12978_v9 = vld [vmem:[#allocation6 + $0x15a4] ss:$16 sps:$4 sm:$0xff]   ;;  %v12976_v8 = vld [vmem:[#allocation6 + $0x15a0] ss:$16 sps:$4 sm:$0xff]  }
 0x264   :  { %v12981_v10 = vld [vmem:[#allocation6 + $0x17e4] ss:$16 sps:$4 sm:$0xff]   ;;  %v12979_v28 = vld [vmem:[#allocation6 + $0x17e0] ss:$16 sps:$4 sm:$0xff]  }
 0x266   :  { %8958 = vmatpush1.bf16.msra.mxu0 %v12946_v16  ;;  %8995 = vmatpush1.bf16.msra.mxu1 %v12949_v56  ;;  %v12984_v16 = vld [vmem:[#allocation6 + $0x1584] ss:$16 sps:$4 sm:$0xff]  }
 0x267   :  { %8959 = vmatprep.subr.bf16.mxu0 %v12954_v36  ;;  %8996 = vmatprep.subr.bf16.mxu1 %v12957_v33  ;;  %v12987_v56 = vld [vmem:[#allocation6 + $0x17c4] ss:$16 sps:$4 sm:$0xff]   ;;  %v12982_v36 = vld [vmem:[#allocation6 + $0x1580] ss:$16 sps:$4 sm:$0xff]  }
 0x268   :  { %v12985_v33 = vld [vmem:[#allocation6 + $0x17c0] ss:$16 sps:$4 sm:$0xff]  }
 0x26a   :  { %8960 = vmatpush1.bf16.msra.mxu0 %v12952_v42  ;;  %8997 = vmatpush1.bf16.msra.mxu1 %v12955_v60  ;;  %v12990_v42 = vld [vmem:[#allocation6 + $0x1564] ss:$16 sps:$4 sm:$0xff]  }
 0x26b   :  { %8961 = vmatprep.subr.bf16.mxu0 %v12960_v45  ;;  %8998 = vmatprep.subr.bf16.mxu1 %v12963_v4  ;;  %v12993_v60 = vld [vmem:[#allocation6 + $0x17a4] ss:$16 sps:$4 sm:$0xff]   ;;  %v12988_v45 = vld [vmem:[#allocation6 + $0x1560] ss:$16 sps:$4 sm:$0xff]  }
 0x26c   :  { %v12991_v4 = vld [vmem:[#allocation6 + $0x17a0] ss:$16 sps:$4 sm:$0xff]  }
 0x26e   :  { %8962 = vmatpush1.bf16.msra.mxu0 %v12958_v26  ;;  %8999 = vmatpush1.bf16.msra.mxu1 %v12961_v30  ;;  %v12996_v26 = vld [vmem:[#allocation6 + $0x1544] ss:$16 sps:$4 sm:$0xff]  }
 0x26f   :  { %8963 = vmatprep.subr.bf16.mxu0 %v12966_v13  ;;  %9000 = vmatprep.subr.bf16.mxu1 %v12969_v51  ;;  %v12999_v30 = vld [vmem:[#allocation6 + $0x1784] ss:$16 sps:$4 sm:$0xff]   ;;  %v12994_v13 = vld [vmem:[#allocation6 + $0x1540] ss:$16 sps:$4 sm:$0xff]  }
 0x270   :  { %v12997_v51 = vld [vmem:[#allocation6 + $0x1780] ss:$16 sps:$4 sm:$0xff]  }
 0x272   :  { %8964 = vmatpush2.bf16.msra.mxu0 %v12964_v15  ;;  %9001 = vmatpush1.bf16.msra.mxu1 %v12967_v48  ;;  %v13002_v15 = vld [vmem:[#allocation6 + $0x1524] ss:$16 sps:$4 sm:$0xff]  }
 0x273   :  { %8965 = vmatprep.subr.bf16.mxu0 %v12972_v11  ;;  %9002 = vmatprep.subr.bf16.mxu1 %v12975_v37  ;;  %v13005_v48 = vld [vmem:[#allocation6 + $0x1764] ss:$16 sps:$4 sm:$0xff]  }
 0x274   :  { %v14971_v11 = vld [vmem:[#allocation4 + $0x18] sm:$0xff] }
 0x275   :  { %v352_v37 = vrot.slane %v14971_v11, %v14734_v24 }
 0x276   :  { %8966 = vmatpush2.bf16.msra.mxu0 %v12970_v5  ;;  %9003 = vmatpush1.bf16.msra.mxu1 %v12973_v2  ;;  %v13000_v5 = vld [vmem:[#allocation6 + $0x1520] ss:$16 sps:$4 sm:$0xff]  }
 0x277   :  { %8967 = vmatprep.subr.bf16.mxu0 %v12978_v9  ;;  %9004 = vmatprep.subr.bf16.mxu1 %v12981_v10  ;;  %v13003_v2 = vld [vmem:[#allocation6 + $0x1760] ss:$16 sps:$4 sm:$0xff]   ;;  %v13008_v9 = vld [vmem:[#allocation6 + $0x1504] ss:$16 sps:$4 sm:$0xff]  }
 0x278   :  { %v13011_v10 = vld [vmem:[#allocation6 + $0x1744] ss:$16 sps:$4 sm:$0xff]  }
 0x27a   :  { %8968 = vmatpush2.bf16.msra.mxu0 %v12976_v8  ;;  %9005 = vmatpush2.bf16.msra.mxu1 %v12979_v28  ;;  %v1322_v8 = vadd.f32 %v14830_v19, %v352_v37  ;;  %v13006_v28 = vld [vmem:[#allocation6 + $0x1500] ss:$16 sps:$4 sm:$0xff]   ;;  %v13023_v19 = vld [vmem:[#allocation6 + $0x18c4] ss:$16 sps:$4 sm:$0xff]  }
 0x27b   :  { %8969 = vmatprep.subr.bf16.mxu0 %v12984_v16  ;;  %9006 = vmatprep.subr.bf16.mxu1 %v12987_v56  ;;  %v13009_v16 = vld [vmem:[#allocation6 + $0x1740] ss:$16 sps:$4 sm:$0xff]   ;;  %v1551_v56 = vmax.f32 %v14813_v27, 0.0  ;;  %v13026_v37 = vld [vmem:[#allocation6 + $0x18a4] ss:$16 sps:$4 sm:$0xff]  }
 0x27c   :  { %v13021_v27 = vld [vmem:[#allocation6 + $0x18c0] ss:$16 sps:$4 sm:$0xff]  }
 0x27e   :  { %8970 = vmatpush2.bf16.msra.mxu0 %v12982_v36  ;;  %9007 = vmatpush2.bf16.msra.mxu1 %v12985_v33  ;;  %v13014_v36 = vld [vmem:[#allocation6 + $0x1724] ss:$16 sps:$4 sm:$0xff]  }
 0x27f   :  { %8971 = vmatprep.subr.bf16.mxu0 %v12990_v42  ;;  %9008 = vmatprep.subr.bf16.mxu1 %v12993_v60  ;;  %v13017_v33 = vld [vmem:[#allocation6 + $0x18e4] ss:$16 sps:$4 sm:$0xff]   ;;  %v13012_v42 = vld [vmem:[#allocation6 + $0x1720] ss:$16 sps:$4 sm:$0xff]  }
 0x280   :  { %v13015_v60 = vld [vmem:[#allocation6 + $0x18e0] ss:$16 sps:$4 sm:$0xff]  }
 0x282   :  { %8972 = vmatpush2.bf16.msra.mxu0 %v12988_v45  ;;  %9009 = vmatpush2.bf16.msra.mxu1 %v12991_v4  ;;  %v1556_v45 = vmax.f32 %v1322_v8, 0.0  ;;  %v360_v4 = vrot.slane %v14971_v11, %v14744_v31 }
 0x283   :  { %8973 = vmatprep.subr.bf16.mxu0 %v12996_v26  ;;  %9010 = vmatprep.subr.bf16.mxu1 %v12999_v30  ;;  %v13020_v26 = vld [vmem:[#allocation6 + $0x1704] ss:$16 sps:$4 sm:$0xff]   ;;  %v14979_v30 = vpack.c.bf16 %v1551_v56, %v1551_v56  ;;  %v13027_v56 = vld [vmem:[#allocation6 + $0x1ae0] ss:$16 sps:$4 sm:$0xff]  }
 0x286   :  { %8974 = vmatpush2.bf16.msra.mxu0 %v12994_v13  ;;  %9011 = vmatpush2.bf16.msra.mxu1 %v12997_v51  ;;  %v13018_v13 = vld [vmem:[#allocation6 + $0x1700] ss:$16 sps:$4 sm:$0xff]   ;;  %v14981_v51 = vpack.c.bf16 %v1556_v45, %v1556_v45 }
 0x287   :  { %8975 = vmatprep.subr.bf16.mxu0 %v13002_v15  ;;  %9012 = vmatprep.subr.bf16.mxu1 %v13005_v48  ;;  %v1363_v15 = vadd.f32 %v14867_v59, %v360_v4 }
 0x289   :  { %v1558_v59 = vmax.f32 %v1363_v15, 0.0 }
 0x28a   :  { %8976 = vmatpush2.bf16.msra.mxu0 %v13000_v5  ;;  %9013 = vmatpush2.bf16.msra.mxu1 %v13003_v2  ;;  %v13029_v5 = vld [vmem:[#allocation6 + $0x1ae4] ss:$16 sps:$4 sm:$0xff]  }
 0x28b   :  { %8977 = vmatprep.subr.bf16.mxu0 %v13008_v9  ;;  %9014 = vmatprep.subr.bf16.mxu1 %v13011_v10  ;;  %v1553_v9 = vmax.f32 %v14849_v63, 0.0  ;;  %v13030_v63 = vld [vmem:[#allocation6 + $0x1880] ss:$16 sps:$4 sm:$0xff]   ;;  %v14991_v45 = vpack.c.bf16 %v1558_v59, %v1558_v59  ;;  %v13050_v59 = vld [vmem:[#allocation6 + $0x1824] ss:$16 sps:$4 sm:$0xff]  }
 0x28e   :  { %8978 = vmatpush2.bf16.msra.mxu0 %v13006_v28  ;;  %9015 = vmatpush2.bf16.msra.mxu1 %v13009_v16  ;;  %v13024_v28 = vld [vmem:[#allocation6 + $0x18a0] ss:$16 sps:$4 sm:$0xff]  }
 0x28f   :  { %9016 = vmatprep.subr.bf16.mxu1 %v13014_v36  ;;  %9029 = vmatprep.subr.bf16.mxu0 %v13017_v33  ;;  %v13032_v36 = vld [vmem:[#allocation6 + $0x1884] ss:$16 sps:$4 sm:$0xff]  }
 0x290   :  { %v13035_v33 = vld [vmem:[#allocation6 + $0x1ac4] ss:$16 sps:$4 sm:$0xff]  }
 0x291   :  { %v8735_v48 = vpop.f32.mrf.mxu0  ;;  %8980 = vmatmul.mubr.bf16.vlgmr.msra.gmra.mxu0 %v14979_v30 }
 0x292   :  { %v8736_v2 = vadd.f32 %v8735_v48, %v14966_v43  ;;  %9017 = vmatpush2.bf16.msra.mxu1 %v13012_v42  ;;  %9030 = vmatpush1.bf16.msra.mxu0 %v13015_v60  ;;  %v14989_v43 = vpack.c.bf16 %v1553_v9, %v1553_v9  ;;  %v13033_v60 = vld [vmem:[#allocation6 + $0x1ac0] ss:$16 sps:$4 sm:$0xff]   ;;  %v13044_v9 = vld [vmem:[#allocation6 + $0x1844] ss:$16 sps:$4 sm:$0xff]  }
 0x293   :  { %9061 = vmatprep.mubr.bf16.mxu0 %v14981_v51  ;;  %v8737_v10 = vpop.f32.mrf.mxu0  ;;  %9018 = vmatprep.subr.bf16.mxu1 %v13020_v26  ;;  %v13041_v26 = vld [vmem:[#allocation6 + $0x1aa4] ss:$16 sps:$4 sm:$0xff]   ;;  %v13036_v48 = vld [vmem:[#allocation6 + $0x1860] ss:$16 sps:$4 sm:$0xff]  }
 0x294   :  { %v8738_v8 = vadd.f32 %v8737_v10, %v14969_v44  ;;  %9031 = vmatprep.subr.bf16.mxu0 %v13023_v19  ;;  %v13038_v44 = vld [vmem:[#allocation6 + $0x1864] ss:$16 sps:$4 sm:$0xff]   ;;  %v13042_v10 = vld [vmem:[#allocation6 + $0x1840] ss:$16 sps:$4 sm:$0xff]  }
 0x295   :  { %v8739_v16 = vpop.f32.mrf.mxu0 }
 0x296   :  { %9019 = vmatpush2.bf16.msra.mxu1 %v13018_v13  ;;  %9032 = vmatpush1.bf16.msra.mxu0 %v13021_v27  ;;  %v13048_v16 = vld [vmem:[#allocation6 + $0x1820] ss:$16 sps:$4 sm:$0xff]  }
 0x297   :  { %v8740_v42 = vpop.f32.mrf.mxu0  ;;  %9033 = vmatprep.subr.bf16.mxu0 %v13026_v37  ;;  %9070 = vmatprep.subr.bf16.mxu1 %v13029_v5  ;;  %v13039_v37 = vld [vmem:[#allocation6 + $0x1aa0] ss:$16 sps:$4 sm:$0xff]  }
 0x298   :  { %v13054_v42 = vld [vmem:[#allocation6 + $0x1800] ss:$16 sps:$4 sm:$0xff]  }
 0x299   :  { %v8776_v4 = vpop.f32.mrf.mxu1  ;;  %9021 = vmatmul.mubr.bf16.vlgmr.msra.gmra.mxu1 %v14989_v43 }
 0x29a   :  { %v14994_v19 = vadd.f32 %v8776_v4, %v8736_v2  ;;  %9034 = vmatpush1.bf16.msra.mxu0 %v13024_v28  ;;  %9071 = vmatpush1.bf16.msra.mxu1 %v13027_v56  ;;  %v13047_v2 = vld [vmem:[#allocation6 + $0x1a84] ss:$16 sps:$4 sm:$0xff]   ;;  %v13045_v28 = vld [vmem:[#allocation6 + $0x1a80] ss:$16 sps:$4 sm:$0xff]  }
 0x29b   :  { %9102 = vmatprep.mubr.bf16.mxu1 %v14991_v45  ;;  %v8778_v13 = vpop.f32.mrf.mxu1  ;;  %9035 = vmatprep.subr.bf16.mxu0 %v13032_v36  ;;  %v13051_v56 = vld [vmem:[#allocation6 + $0x1a60] ss:$16 sps:$4 sm:$0xff]   ;;  %v13056_v36 = vld [vmem:[#allocation6 + $0x1804] ss:$16 sps:$4 sm:$0xff]  }
 0x29c   :  { %v14997_v27 = vadd.f32 %v8778_v13, %v8738_v8  ;;  %9072 = vmatprep.subr.bf16.mxu1 %v13035_v33  ;;  %v13053_v8 = vld [vmem:[#allocation6 + $0x1a64] ss:$16 sps:$4 sm:$0xff]  }
 0x29d   :  { %v8780_v15 = vpop.f32.mrf.mxu1  ;;  %v13059_v33 = vld [vmem:[#allocation6 + $0x1a44] ss:$16 sps:$4 sm:$0xff]  }
 0x29e   :  { %9036 = vmatpush1.bf16.msra.mxu0 %v13030_v63  ;;  %9073 = vmatpush1.bf16.msra.mxu1 %v13033_v60  ;;  %v13057_v63 = vld [vmem:[#allocation6 + $0x1a40] ss:$16 sps:$4 sm:$0xff]   ;;  %v13062_v60 = vld [vmem:[#allocation6 + $0x19e4] ss:$16 sps:$4 sm:$0xff]  }
 0x29f   :  { %v8781_v5 = vpop.f32.mrf.mxu1  ;;  %9037 = vmatprep.subr.bf16.mxu0 %v13038_v44  ;;  %9074 = vmatprep.subr.bf16.mxu1 %v13041_v26  ;;  %v13065_v4 = vld [vmem:[#allocation6 + $0x1a24] ss:$16 sps:$4 sm:$0xff]   ;;  %v13060_v44 = vld [vmem:[#allocation6 + $0x19e0] ss:$16 sps:$4 sm:$0xff]  }
 0x2a0   :  { %v13063_v26 = vld [vmem:[#allocation6 + $0x1a20] ss:$16 sps:$4 sm:$0xff]   ;;  %v13068_v13 = vld [vmem:[#allocation6 + $0x19c4] ss:$16 sps:$4 sm:$0xff]  }
 0x2a1   :  { %v13071_v15 = vld [vmem:[#allocation6 + $0x1a04] ss:$16 sps:$4 sm:$0xff]  }
 0x2a2   :  { %9038 = vmatpush1.bf16.msra.mxu0 %v13036_v48  ;;  %9075 = vmatpush1.bf16.msra.mxu1 %v13039_v37  ;;  %v13066_v48 = vld [vmem:[#allocation6 + $0x19c0] ss:$16 sps:$4 sm:$0xff]   ;;  %v13074_v5 = vld [vmem:[#allocation6 + $0x19a4] ss:$16 sps:$4 sm:$0xff]  }
 0x2a3   :  { %9039 = vmatprep.subr.bf16.mxu0 %v13044_v9  ;;  %9076 = vmatprep.subr.bf16.mxu1 %v13047_v2  ;;  %v13069_v37 = vld [vmem:[#allocation6 + $0x1a00] ss:$16 sps:$4 sm:$0xff]   ;;  %v13077_v9 = vld [vmem:[#allocation6 + $0x1be4] ss:$16 sps:$4 sm:$0xff]  }
 0x2a4   :  { %v13072_v2 = vld [vmem:[#allocation6 + $0x19a0] ss:$16 sps:$4 sm:$0xff]  }
 0x2a6   :  { %9040 = vmatpush1.bf16.msra.mxu0 %v13042_v10  ;;  %9077 = vmatpush1.bf16.msra.mxu1 %v13045_v28  ;;  %v13075_v10 = vld [vmem:[#allocation6 + $0x1be0] ss:$16 sps:$4 sm:$0xff]   ;;  %v13080_v28 = vld [vmem:[#allocation6 + $0x1984] ss:$16 sps:$4 sm:$0xff]  }
 0x2a7   :  { %9041 = vmatprep.subr.bf16.mxu0 %v13050_v59  ;;  %9078 = vmatprep.subr.bf16.mxu1 %v13053_v8  ;;  %v13083_v59 = vld [vmem:[#allocation6 + $0x1bc4] ss:$16 sps:$4 sm:$0xff]   ;;  %v13078_v8 = vld [vmem:[#allocation6 + $0x1980] ss:$16 sps:$4 sm:$0xff]  }
 0x2aa   :  { %9042 = vmatpush1.bf16.msra.mxu0 %v13048_v16  ;;  %9079 = vmatpush1.bf16.msra.mxu1 %v13051_v56  ;;  %v13081_v16 = vld [vmem:[#allocation6 + $0x1bc0] ss:$16 sps:$4 sm:$0xff]   ;;  %v13086_v56 = vld [vmem:[#allocation6 + $0x1964] ss:$16 sps:$4 sm:$0xff]  }
 0x2ab   :  { %9043 = vmatprep.subr.bf16.mxu0 %v13056_v36  ;;  %9080 = vmatprep.subr.bf16.mxu1 %v13059_v33  ;;  %v13089_v36 = vld [vmem:[#allocation6 + $0x1ba4] ss:$16 sps:$4 sm:$0xff]   ;;  %v13084_v33 = vld [vmem:[#allocation6 + $0x1960] ss:$16 sps:$4 sm:$0xff]  }
 0x2ae   :  { %9044 = vmatpush1.bf16.msra.mxu0 %v13054_v42  ;;  %9081 = vmatpush1.bf16.msra.mxu1 %v13057_v63  ;;  %v13087_v42 = vld [vmem:[#allocation6 + $0x1ba0] ss:$16 sps:$4 sm:$0xff]   ;;  %v13092_v63 = vld [vmem:[#allocation6 + $0x1944] ss:$16 sps:$4 sm:$0xff]  }
 0x2af   :  { %9045 = vmatprep.subr.bf16.mxu0 %v13062_v60  ;;  %9082 = vmatprep.subr.bf16.mxu1 %v13065_v4  ;;  %v13095_v60 = vld [vmem:[#allocation6 + $0x1b84] ss:$16 sps:$4 sm:$0xff]   ;;  %v13090_v4 = vld [vmem:[#allocation6 + $0x1940] ss:$16 sps:$4 sm:$0xff]  }
 0x2b2   :  { %9046 = vmatpush2.bf16.msra.mxu0 %v13060_v44  ;;  %9083 = vmatpush1.bf16.msra.mxu1 %v13063_v26  ;;  %v13093_v44 = vld [vmem:[#allocation6 + $0x1b80] ss:$16 sps:$4 sm:$0xff]   ;;  %v348_v26 = vrot.slane %v14971_v11, %v14731_v23  ;;  %v13110_v11 = vld [vmem:[#allocation6 + $0x1b24] ss:$16 sps:$4 sm:$0xff]  }
 0x2b3   :  { %9047 = vmatprep.subr.bf16.mxu0 %v13068_v13  ;;  %9084 = vmatprep.subr.bf16.mxu1 %v13071_v15  ;;  %v13098_v13 = vld [vmem:[#allocation6 + $0x1924] ss:$16 sps:$4 sm:$0xff]  }
 0x2b4   :  { %v13101_v15 = vld [vmem:[#allocation6 + $0x1b64] ss:$16 sps:$4 sm:$0xff]  }
 0x2b6   :  { %9048 = vmatpush2.bf16.msra.mxu0 %v13066_v48  ;;  %9085 = vmatpush1.bf16.msra.mxu1 %v13069_v37  ;;  %v13096_v48 = vld [vmem:[#allocation6 + $0x1920] ss:$16 sps:$4 sm:$0xff]  }
 0x2b7   :  { %9049 = vmatprep.subr.bf16.mxu0 %v13074_v5  ;;  %9086 = vmatprep.subr.bf16.mxu1 %v13077_v9  ;;  %v13099_v37 = vld [vmem:[#allocation6 + $0x1b60] ss:$16 sps:$4 sm:$0xff]   ;;  %v1320_v5 = vadd.f32 %v14826_v53, %v348_v26  ;;  %v13104_v9 = vld [vmem:[#allocation6 + $0x1904] ss:$16 sps:$4 sm:$0xff]  }
 0x2b8   :  { %v13119_v53 = vld [vmem:[#allocation6 + $0x1cc4] ss:$16 sps:$4 sm:$0xff]  }
 0x2b9   :  { %v13122_v26 = vld [vmem:[#allocation6 + $0x1ca4] ss:$16 sps:$4 sm:$0xff]  }
 0x2ba   :  { %9050 = vmatpush2.bf16.msra.mxu0 %v13072_v2  ;;  %9087 = vmatpush2.bf16.msra.mxu1 %v13075_v10  ;;  %v13107_v2 = vld [vmem:[#allocation6 + $0x1b44] ss:$16 sps:$4 sm:$0xff]   ;;  %v13102_v10 = vld [vmem:[#allocation6 + $0x1900] ss:$16 sps:$4 sm:$0xff]  }
 0x2bb   :  { %9051 = vmatprep.subr.bf16.mxu0 %v13080_v28  ;;  %9088 = vmatprep.subr.bf16.mxu1 %v13083_v59  ;;  %v13105_v28 = vld [vmem:[#allocation6 + $0x1b40] ss:$16 sps:$4 sm:$0xff]   ;;  %v1555_v59 = vmax.f32 %v1320_v5, 0.0 }
 0x2bc   :  { %v13120_v5 = vld [vmem:[#allocation6 + $0x1ca0] ss:$16 sps:$4 sm:$0xff]  }
 0x2be   :  { %9052 = vmatpush2.bf16.msra.mxu0 %v13078_v8  ;;  %9089 = vmatpush2.bf16.msra.mxu1 %v13081_v16  ;;  %v13113_v8 = vld [vmem:[#allocation6 + $0x1ce4] ss:$16 sps:$4 sm:$0xff]   ;;  %v13108_v16 = vld [vmem:[#allocation6 + $0x1b20] ss:$16 sps:$4 sm:$0xff]  }
 0x2bf   :  { %9053 = vmatprep.subr.bf16.mxu0 %v13086_v56  ;;  %9090 = vmatprep.subr.bf16.mxu1 %v13089_v36  ;;  %v13111_v56 = vld [vmem:[#allocation6 + $0x1ce0] ss:$16 sps:$4 sm:$0xff]   ;;  %v1560_v36 = vmax.f32 %v14842_v46, 0.0  ;;  %v1557_v46 = vmax.f32 %v14865_v55, 0.0 }
 0x2c0   :  { %v13126_v55 = vld [vmem:[#allocation6 + $0x1c80] ss:$16 sps:$4 sm:$0xff]  }
 0x2c2   :  { %9054 = vmatpush2.bf16.msra.mxu0 %v13084_v33  ;;  %9091 = vmatpush2.bf16.msra.mxu1 %v13087_v42  ;;  %v13116_v33 = vld [vmem:[#allocation6 + $0x1b04] ss:$16 sps:$4 sm:$0xff]   ;;  %v15003_v42 = vpack.c.bf16 %v1555_v59, %v1555_v59  ;;  %v15013_v59 = vpack.c.bf16 %v1557_v46, %v1557_v46  ;;  %v13138_v46 = vld [vmem:[#allocation6 + $0x1c40] ss:$16 sps:$4 sm:$0xff]  }
 0x2c3   :  { %9055 = vmatprep.subr.bf16.mxu0 %v13092_v63  ;;  %9092 = vmatprep.subr.bf16.mxu1 %v13095_v60  ;;  %v13114_v63 = vld [vmem:[#allocation6 + $0x1b00] ss:$16 sps:$4 sm:$0xff]  }
 0x2c4   :  { %v13117_v60 = vld [vmem:[#allocation6 + $0x1cc0] ss:$16 sps:$4 sm:$0xff]  }
 0x2c6   :  { %9056 = vmatpush2.bf16.msra.mxu0 %v13090_v4  ;;  %9093 = vmatpush2.bf16.msra.mxu1 %v13093_v44  ;;  %v15005_v4 = vpack.c.bf16 %v1560_v36, %v1560_v36 }
 0x2c7   :  { %9057 = vmatprep.subr.bf16.mxu0 %v13098_v13  ;;  %9094 = vmatprep.subr.bf16.mxu1 %v13101_v15  ;;  %v13125_v13 = vld [vmem:[#allocation6 + $0x1ee4] ss:$16 sps:$4 sm:$0xff]  }
 0x2ca   :  { %9058 = vmatpush2.bf16.msra.mxu0 %v13096_v48  ;;  %9095 = vmatpush2.bf16.msra.mxu1 %v13099_v37 }
 0x2cb   :  { %9059 = vmatprep.subr.bf16.mxu0 %v13104_v9  ;;  %9096 = vmatprep.subr.bf16.mxu1 %v13107_v2  ;;  %v1562_v9 = vmax.f32 %v14887_v62, 0.0  ;;  %v13137_v62 = vld [vmem:[#allocation6 + $0x1ea4] ss:$16 sps:$4 sm:$0xff]  }
 0x2ce   :  { %9060 = vmatpush2.bf16.msra.mxu0 %v13102_v10  ;;  %9097 = vmatpush2.bf16.msra.mxu1 %v13105_v28  ;;  %v13123_v10 = vld [vmem:[#allocation6 + $0x1ee0] ss:$16 sps:$4 sm:$0xff]   ;;  %v13128_v28 = vld [vmem:[#allocation6 + $0x1c84] ss:$16 sps:$4 sm:$0xff]  }
 0x2cf   :  { %9098 = vmatprep.subr.bf16.mxu1 %v13110_v11  ;;  %9111 = vmatprep.subr.bf16.mxu0 %v13113_v8  ;;  %v13129_v8 = vld [vmem:[#allocation6 + $0x1ec0] ss:$16 sps:$4 sm:$0xff]  }
 0x2d1   :  { %v8817_v44 = vpop.f32.mrf.mxu0  ;;  %9062 = vmatmul.mubr.bf16.vlgmr.msra.gmra.mxu0 %v15003_v42 }
 0x2d2   :  { %v8818_v15 = vadd.f32 %v8817_v44, %v14994_v19  ;;  %9099 = vmatpush2.bf16.msra.mxu1 %v13108_v16  ;;  %9112 = vmatpush1.bf16.msra.mxu0 %v13111_v56  ;;  %v13131_v19 = vld [vmem:[#allocation6 + $0x1ec4] ss:$16 sps:$4 sm:$0xff]   ;;  %v15015_v16 = vpack.c.bf16 %v1562_v9, %v1562_v9  ;;  %v13135_v44 = vld [vmem:[#allocation6 + $0x1ea0] ss:$16 sps:$4 sm:$0xff]  }
 0x2d3   :  { %9143 = vmatprep.mubr.bf16.mxu0 %v15005_v4  ;;  %v8819_v48 = vpop.f32.mrf.mxu0  ;;  %9100 = vmatprep.subr.bf16.mxu1 %v13116_v33  ;;  %v13134_v56 = vld [vmem:[#allocation6 + $0x1c64] ss:$16 sps:$4 sm:$0xff]   ;;  %v13144_v9 = vld [vmem:[#allocation6 + $0x1c20] ss:$16 sps:$4 sm:$0xff]  }
 0x2d4   :  { %v8820_v37 = vadd.f32 %v8819_v48, %v14997_v27  ;;  %9113 = vmatprep.subr.bf16.mxu0 %v13119_v53  ;;  %v13141_v48 = vld [vmem:[#allocation6 + $0x1e80] ss:$16 sps:$4 sm:$0xff]  }
 0x2d5   :  { %v8821_v2 = vpop.f32.mrf.mxu0 }
 0x2d6   :  { %9101 = vmatpush2.bf16.msra.mxu1 %v13114_v63  ;;  %9114 = vmatpush1.bf16.msra.mxu0 %v13117_v60  ;;  %v13132_v60 = vld [vmem:[#allocation6 + $0x1c60] ss:$16 sps:$4 sm:$0xff]  }
 0x2d7   :  { %v8822_v11 = vpop.f32.mrf.mxu0  ;;  %9115 = vmatprep.subr.bf16.mxu0 %v13122_v26  ;;  %9152 = vmatprep.subr.bf16.mxu1 %v13125_v13  ;;  %v13140_v13 = vld [vmem:[#allocation6 + $0x1c44] ss:$16 sps:$4 sm:$0xff]   ;;  %v13147_v2 = vld [vmem:[#allocation6 + $0x1e60] ss:$16 sps:$4 sm:$0xff]  }
 0x2d8   :  { %v13153_v11 = vld [vmem:[#allocation6 + $0x1e40] ss:$16 sps:$4 sm:$0xff]  }
 0x2d9   :  { %v8858_v27 = vpop.f32.mrf.mxu1  ;;  %9103 = vmatmul.mubr.bf16.vlgmr.msra.gmra.mxu1 %v15013_v59 }
 0x2da   :  { %v15018_v36 = vadd.f32 %v8858_v27, %v8818_v15  ;;  %9116 = vmatpush1.bf16.msra.mxu0 %v13120_v5  ;;  %9153 = vmatpush1.bf16.msra.mxu1 %v13123_v10  ;;  %v13143_v15 = vld [vmem:[#allocation6 + $0x1e84] ss:$16 sps:$4 sm:$0xff]   ;;  %v13156_v27 = vld [vmem:[#allocation6 + $0x1de0] ss:$16 sps:$4 sm:$0xff]  }
 0x2db   :  { %9184 = vmatprep.mubr.bf16.mxu1 %v15015_v16  ;;  %v8860_v33 = vpop.f32.mrf.mxu1  ;;  %9117 = vmatprep.subr.bf16.mxu0 %v13128_v28  ;;  %v13146_v5 = vld [vmem:[#allocation6 + $0x1c24] ss:$16 sps:$4 sm:$0xff]  }
 0x2dc   :  { %v15021_v53 = vadd.f32 %v8860_v33, %v8820_v37  ;;  %9154 = vmatprep.subr.bf16.mxu1 %v13131_v19  ;;  %v13149_v37 = vld [vmem:[#allocation6 + $0x1e64] ss:$16 sps:$4 sm:$0xff]   ;;  %v13150_v19 = vld [vmem:[#allocation6 + $0x1c00] ss:$16 sps:$4 sm:$0xff]  }
 0x2dd   :  { %v8862_v63 = vpop.f32.mrf.mxu1  ;;  %v13152_v10 = vld [vmem:[#allocation6 + $0x1c04] ss:$16 sps:$4 sm:$0xff]  }
 0x2de   :  { %9118 = vmatpush1.bf16.msra.mxu0 %v13126_v55  ;;  %9155 = vmatpush1.bf16.msra.mxu1 %v13129_v8  ;;  %v13155_v28 = vld [vmem:[#allocation6 + $0x1e44] ss:$16 sps:$4 sm:$0xff]   ;;  %v13162_v63 = vld [vmem:[#allocation6 + $0x1dc0] ss:$16 sps:$4 sm:$0xff]  }
 0x2df   :  { %v8863_v26 = vpop.f32.mrf.mxu1  ;;  %9119 = vmatprep.subr.bf16.mxu0 %v13134_v56  ;;  %9156 = vmatprep.subr.bf16.mxu1 %v13137_v62  ;;  %v13158_v55 = vld [vmem:[#allocation6 + $0x1de4] ss:$16 sps:$4 sm:$0xff]   ;;  %v13159_v56 = vld [vmem:[#allocation6 + $0x1e20] ss:$16 sps:$4 sm:$0xff]  }
 0x2e0   :  { %v13161_v8 = vld [vmem:[#allocation6 + $0x1e24] ss:$16 sps:$4 sm:$0xff]  }
 0x2e1   :  { %v13164_v62 = vld [vmem:[#allocation6 + $0x1dc4] ss:$16 sps:$4 sm:$0xff]  }
 0x2e2   :  { %9120 = vmatpush1.bf16.msra.mxu0 %v13132_v60  ;;  %9157 = vmatpush1.bf16.msra.mxu1 %v13135_v44  ;;  %v13167_v33 = vld [vmem:[#allocation6 + $0x1e04] ss:$16 sps:$4 sm:$0xff]   ;;  %v13165_v60 = vld [vmem:[#allocation6 + $0x1e00] ss:$16 sps:$4 sm:$0xff]  }
 0x2e3   :  { %9121 = vmatprep.subr.bf16.mxu0 %v13140_v13  ;;  %9158 = vmatprep.subr.bf16.mxu1 %v13143_v15  ;;  %v13170_v44 = vld [vmem:[#allocation6 + $0x1da4] ss:$16 sps:$4 sm:$0xff]   ;;  %v13168_v13 = vld [vmem:[#allocation6 + $0x1da0] ss:$16 sps:$4 sm:$0xff]  }
 0x2e4   :  { %v13173_v26 = vld [vmem:[#allocation6 + $0x1fe4] ss:$16 sps:$4 sm:$0xff]   ;;  %v13171_v15 = vld [vmem:[#allocation6 + $0x1fe0] ss:$16 sps:$4 sm:$0xff]  }
 0x2e6   :  { %9122 = vmatpush1.bf16.msra.mxu0 %v13138_v46  ;;  %9159 = vmatpush1.bf16.msra.mxu1 %v13141_v48  ;;  %v13176_v46 = vld [vmem:[#allocation6 + $0x1d84] ss:$16 sps:$4 sm:$0xff]  }
 0x2e7   :  { %9123 = vmatprep.subr.bf16.mxu0 %v13146_v5  ;;  %9160 = vmatprep.subr.bf16.mxu1 %v13149_v37  ;;  %v13179_v48 = vld [vmem:[#allocation6 + $0x1fc4] ss:$16 sps:$4 sm:$0xff]   ;;  %v13174_v5 = vld [vmem:[#allocation6 + $0x1d80] ss:$16 sps:$4 sm:$0xff]  }
 0x2e8   :  { %v13177_v37 = vld [vmem:[#allocation6 + $0x1fc0] ss:$16 sps:$4 sm:$0xff]  }
 0x2ea   :  { %9124 = vmatpush1.bf16.msra.mxu0 %v13144_v9  ;;  %9161 = vmatpush1.bf16.msra.mxu1 %v13147_v2  ;;  %v13182_v9 = vld [vmem:[#allocation6 + $0x1d64] ss:$16 sps:$4 sm:$0xff]  }
 0x2eb   :  { %9125 = vmatprep.subr.bf16.mxu0 %v13152_v10  ;;  %9162 = vmatprep.subr.bf16.mxu1 %v13155_v28  ;;  %v13185_v2 = vld [vmem:[#allocation6 + $0x1fa4] ss:$16 sps:$4 sm:$0xff]   ;;  %v13180_v10 = vld [vmem:[#allocation6 + $0x1d60] ss:$16 sps:$4 sm:$0xff]  }
 0x2ec   :  { %v13183_v28 = vld [vmem:[#allocation6 + $0x1fa0] ss:$16 sps:$4 sm:$0xff]  }
 0x2ee   :  { %9126 = vmatpush1.bf16.msra.mxu0 %v13150_v19  ;;  %9163 = vmatpush1.bf16.msra.mxu1 %v13153_v11  ;;  %v13188_v19 = vld [vmem:[#allocation6 + $0x1d44] ss:$16 sps:$4 sm:$0xff]  }
 0x2ef   :  { %9127 = vmatprep.subr.bf16.mxu0 %v13158_v55  ;;  %9164 = vmatprep.subr.bf16.mxu1 %v13161_v8  ;;  %v13191_v11 = vld [vmem:[#allocation6 + $0x1f84] ss:$16 sps:$4 sm:$0xff]   ;;  %v13186_v55 = vld [vmem:[#allocation6 + $0x1d40] ss:$16 sps:$4 sm:$0xff]  }
 0x2f0   :  { %v13189_v8 = vld [vmem:[#allocation6 + $0x1f80] ss:$16 sps:$4 sm:$0xff]  }
 0x2f2   :  { %9128 = vmatpush2.bf16.msra.mxu0 %v13156_v27  ;;  %9165 = vmatpush1.bf16.msra.mxu1 %v13159_v56  ;;  %v13194_v27 = vld [vmem:[#allocation6 + $0x1d24] ss:$16 sps:$4 sm:$0xff]  }
 0x2f3   :  { %9129 = vmatprep.subr.bf16.mxu0 %v13164_v62  ;;  %9166 = vmatprep.subr.bf16.mxu1 %v13167_v33  ;;  %v13197_v56 = vld [vmem:[#allocation6 + $0x1f64] ss:$16 sps:$4 sm:$0xff]   ;;  %v15023_v62 = vld [vmem:[#allocation4 + $0x20] sm:$0xf] }
 0x2f4   :  { %v384_v33 = vrot.slane %v15023_v62, %v14734_v24 }
 0x2f6   :  { %9130 = vmatpush2.bf16.msra.mxu0 %v13162_v63  ;;  %9167 = vmatpush1.bf16.msra.mxu1 %v13165_v60  ;;  %v13192_v63 = vld [vmem:[#allocation6 + $0x1d20] ss:$16 sps:$4 sm:$0xff]  }
 0x2f7   :  { %9131 = vmatprep.subr.bf16.mxu0 %v13170_v44  ;;  %9168 = vmatprep.subr.bf16.mxu1 %v13173_v26  ;;  %v13195_v60 = vld [vmem:[#allocation6 + $0x1f60] ss:$16 sps:$4 sm:$0xff]   ;;  %v13200_v44 = vld [vmem:[#allocation6 + $0x1d04] ss:$16 sps:$4 sm:$0xff]  }
 0x2f8   :  { %v13203_v26 = vld [vmem:[#allocation6 + $0x1f44] ss:$16 sps:$4 sm:$0xff]  }
 0x2fa   :  { %9132 = vmatpush2.bf16.msra.mxu0 %v13168_v13  ;;  %9169 = vmatpush2.bf16.msra.mxu1 %v13171_v15  ;;  %v1486_v13 = vadd.f32 %v14861_v34, %v384_v33  ;;  %v13198_v15 = vld [vmem:[#allocation6 + $0x1d00] ss:$16 sps:$4 sm:$0xff]   ;;  %v13215_v34 = vld [vmem:[#allocation6 + $0x20c4] ss:$16 sps:$4 sm:$0xff]  }
 0x2fb   :  { %9133 = vmatprep.subr.bf16.mxu0 %v13176_v46  ;;  %9170 = vmatprep.subr.bf16.mxu1 %v13179_v48  ;;  %v13201_v46 = vld [vmem:[#allocation6 + $0x1f40] ss:$16 sps:$4 sm:$0xff]   ;;  %v1559_v48 = vmax.f32 %v14840_v40, 0.0  ;;  %v13218_v33 = vld [vmem:[#allocation6 + $0x20a4] ss:$16 sps:$4 sm:$0xff]  }
 0x2fc   :  { %v13213_v40 = vld [vmem:[#allocation6 + $0x20c0] ss:$16 sps:$4 sm:$0xff]  }
 0x2fe   :  { %9134 = vmatpush2.bf16.msra.mxu0 %v13174_v5  ;;  %9171 = vmatpush2.bf16.msra.mxu1 %v13177_v37  ;;  %v13206_v5 = vld [vmem:[#allocation6 + $0x1f24] ss:$16 sps:$4 sm:$0xff]  }
 0x2ff   :  { %9135 = vmatprep.subr.bf16.mxu0 %v13182_v9  ;;  %9172 = vmatprep.subr.bf16.mxu1 %v13185_v2  ;;  %v13209_v37 = vld [vmem:[#allocation6 + $0x20e4] ss:$16 sps:$4 sm:$0xff]   ;;  %v13204_v9 = vld [vmem:[#allocation6 + $0x1f20] ss:$16 sps:$4 sm:$0xff]  }
 0x300   :  { %v13207_v2 = vld [vmem:[#allocation6 + $0x20e0] ss:$16 sps:$4 sm:$0xff]  }
 0x302   :  { %9136 = vmatpush2.bf16.msra.mxu0 %v13180_v10  ;;  %9173 = vmatpush2.bf16.msra.mxu1 %v13183_v28  ;;  %v1564_v10 = vmax.f32 %v1486_v13, 0.0  ;;  %v392_v28 = vrot.slane %v15023_v62, %v14744_v31 }
 0x303   :  { %9137 = vmatprep.subr.bf16.mxu0 %v13188_v19  ;;  %9174 = vmatprep.subr.bf16.mxu1 %v13191_v11  ;;  %v13212_v19 = vld [vmem:[#allocation6 + $0x1f04] ss:$16 sps:$4 sm:$0xff]   ;;  %v15031_v11 = vpack.c.bf16 %v1559_v48, %v1559_v48  ;;  %v13219_v48 = vld [vmem:[#allocation6 + $0x22e0] ss:$16 sps:$4 sm:$0xff]  }
 0x306   :  { %9138 = vmatpush2.bf16.msra.mxu0 %v13186_v55  ;;  %9175 = vmatpush2.bf16.msra.mxu1 %v13189_v8  ;;  %v13210_v55 = vld [vmem:[#allocation6 + $0x1f00] ss:$16 sps:$4 sm:$0xff]   ;;  %v15033_v8 = vpack.c.bf16 %v1564_v10, %v1564_v10 }
 0x307   :  { %9139 = vmatprep.subr.bf16.mxu0 %v13194_v27  ;;  %9176 = vmatprep.subr.bf16.mxu1 %v13197_v56  ;;  %v1527_v27 = vadd.f32 %v14898_v7, %v392_v28 }
 0x309   :  { %v1566_v7 = vmax.f32 %v1527_v27, 0.0 }
 0x30a   :  { %9140 = vmatpush2.bf16.msra.mxu0 %v13192_v63  ;;  %9177 = vmatpush2.bf16.msra.mxu1 %v13195_v60  ;;  %v13221_v63 = vld [vmem:[#allocation6 + $0x22e4] ss:$16 sps:$4 sm:$0xff]  }
 0x30b   :  { %9141 = vmatprep.subr.bf16.mxu0 %v13200_v44  ;;  %9178 = vmatprep.subr.bf16.mxu1 %v13203_v26  ;;  %v1561_v44 = vmax.f32 %v14884_v50, 0.0  ;;  %v13222_v50 = vld [vmem:[#allocation6 + $0x2080] ss:$16 sps:$4 sm:$0xff]   ;;  %v15043_v10 = vpack.c.bf16 %v1566_v7, %v1566_v7  ;;  %v13242_v7 = vld [vmem:[#allocation6 + $0x2024] ss:$16 sps:$4 sm:$0xff]  }
 0x30e   :  { %9142 = vmatpush2.bf16.msra.mxu0 %v13198_v15  ;;  %9179 = vmatpush2.bf16.msra.mxu1 %v13201_v46  ;;  %v13216_v15 = vld [vmem:[#allocation6 + $0x20a0] ss:$16 sps:$4 sm:$0xff]  }
 0x30f   :  { %9180 = vmatprep.subr.bf16.mxu1 %v13206_v5  ;;  %9193 = vmatprep.subr.bf16.mxu0 %v13209_v37  ;;  %v13224_v5 = vld [vmem:[#allocation6 + $0x2084] ss:$16 sps:$4 sm:$0xff]  }
 0x310   :  { %v13227_v37 = vld [vmem:[#allocation6 + $0x22c4] ss:$16 sps:$4 sm:$0xff]  }
 0x311   :  { %v8899_v56 = vpop.f32.mrf.mxu0  ;;  %9144 = vmatmul.mubr.bf16.vlgmr.msra.gmra.mxu0 %v15031_v11 }
 0x312   :  { %v8900_v60 = vadd.f32 %v8899_v56, %v15018_v36  ;;  %9181 = vmatpush2.bf16.msra.mxu1 %v13204_v9  ;;  %9194 = vmatpush1.bf16.msra.mxu0 %v13207_v2  ;;  %v15041_v36 = vpack.c.bf16 %v1561_v44, %v1561_v44  ;;  %v13225_v2 = vld [vmem:[#allocation6 + $0x22c0] ss:$16 sps:$4 sm:$0xff]   ;;  %v13236_v44 = vld [vmem:[#allocation6 + $0x2044] ss:$16 sps:$4 sm:$0xff]  }
 0x313   :  { %9225 = vmatprep.mubr.bf16.mxu0 %v15033_v8  ;;  %v8901_v26 = vpop.f32.mrf.mxu0  ;;  %9182 = vmatprep.subr.bf16.mxu1 %v13212_v19  ;;  %v13233_v19 = vld [vmem:[#allocation6 + $0x22a4] ss:$16 sps:$4 sm:$0xff]   ;;  %v13228_v56 = vld [vmem:[#allocation6 + $0x2060] ss:$16 sps:$4 sm:$0xff]  }
 0x314   :  { %v8902_v13 = vadd.f32 %v8901_v26, %v15021_v53  ;;  %9195 = vmatprep.subr.bf16.mxu0 %v13215_v34  ;;  %v13230_v53 = vld [vmem:[#allocation6 + $0x2064] ss:$16 sps:$4 sm:$0xff]   ;;  %v13234_v26 = vld [vmem:[#allocation6 + $0x2040] ss:$16 sps:$4 sm:$0xff]  }
 0x315   :  { %v8903_v46 = vpop.f32.mrf.mxu0 }
 0x316   :  { %9183 = vmatpush2.bf16.msra.mxu1 %v13210_v55  ;;  %9196 = vmatpush1.bf16.msra.mxu0 %v13213_v40  ;;  %v13240_v46 = vld [vmem:[#allocation6 + $0x2020] ss:$16 sps:$4 sm:$0xff]  }
 0x317   :  { %v8904_v9 = vpop.f32.mrf.mxu0  ;;  %9197 = vmatprep.subr.bf16.mxu0 %v13218_v33  ;;  %9234 = vmatprep.subr.bf16.mxu1 %v13221_v63  ;;  %v13231_v33 = vld [vmem:[#allocation6 + $0x22a0] ss:$16 sps:$4 sm:$0xff]  }
 0x318   :  { %v13246_v9 = vld [vmem:[#allocation6 + $0x2000] ss:$16 sps:$4 sm:$0xff]  }
 0x319   :  { %v8940_v28 = vpop.f32.mrf.mxu1  ;;  %9185 = vmatmul.mubr.bf16.vlgmr.msra.gmra.mxu1 %v15041_v36 }
 0x31a   :  { %v15046_v34 = vadd.f32 %v8940_v28, %v8900_v60  ;;  %9198 = vmatpush1.bf16.msra.mxu0 %v13216_v15  ;;  %9235 = vmatpush1.bf16.msra.mxu1 %v13219_v48  ;;  %v13239_v60 = vld [vmem:[#allocation6 + $0x2284] ss:$16 sps:$4 sm:$0xff]   ;;  %v13237_v15 = vld [vmem:[#allocation6 + $0x2280] ss:$16 sps:$4 sm:$0xff]  }
 0x31b   :  { %9266 = vmatprep.mubr.bf16.mxu1 %v15043_v10  ;;  %v8942_v55 = vpop.f32.mrf.mxu1  ;;  %9199 = vmatprep.subr.bf16.mxu0 %v13224_v5  ;;  %v13243_v48 = vld [vmem:[#allocation6 + $0x2260] ss:$16 sps:$4 sm:$0xff]   ;;  %v13248_v5 = vld [vmem:[#allocation6 + $0x2004] ss:$16 sps:$4 sm:$0xff]  }
 0x31c   :  { %v15049_v40 = vadd.f32 %v8942_v55, %v8902_v13  ;;  %9236 = vmatprep.subr.bf16.mxu1 %v13227_v37  ;;  %v13245_v13 = vld [vmem:[#allocation6 + $0x2264] ss:$16 sps:$4 sm:$0xff]  }
 0x31d   :  { %v8944_v27 = vpop.f32.mrf.mxu1  ;;  %v13251_v37 = vld [vmem:[#allocation6 + $0x2244] ss:$16 sps:$4 sm:$0xff]  }
 0x31e   :  { %9200 = vmatpush1.bf16.msra.mxu0 %v13222_v50  ;;  %9237 = vmatpush1.bf16.msra.mxu1 %v13225_v2  ;;  %v13249_v50 = vld [vmem:[#allocation6 + $0x2240] ss:$16 sps:$4 sm:$0xff]   ;;  %v13254_v2 = vld [vmem:[#allocation6 + $0x21e4] ss:$16 sps:$4 sm:$0xff]  }
 0x31f   :  { %v8945_v63 = vpop.f32.mrf.mxu1  ;;  %9201 = vmatprep.subr.bf16.mxu0 %v13230_v53  ;;  %9238 = vmatprep.subr.bf16.mxu1 %v13233_v19  ;;  %v13257_v28 = vld [vmem:[#allocation6 + $0x2224] ss:$16 sps:$4 sm:$0xff]   ;;  %v13252_v53 = vld [vmem:[#allocation6 + $0x21e0] ss:$16 sps:$4 sm:$0xff]  }
 0x320   :  { %v13255_v19 = vld [vmem:[#allocation6 + $0x2220] ss:$16 sps:$4 sm:$0xff]   ;;  %v13260_v55 = vld [vmem:[#allocation6 + $0x21c4] ss:$16 sps:$4 sm:$0xff]  }
 0x321   :  { %v13263_v27 = vld [vmem:[#allocation6 + $0x2204] ss:$16 sps:$4 sm:$0xff]  }
 0x322   :  { %9202 = vmatpush1.bf16.msra.mxu0 %v13228_v56  ;;  %9239 = vmatpush1.bf16.msra.mxu1 %v13231_v33  ;;  %v13258_v56 = vld [vmem:[#allocation6 + $0x21c0] ss:$16 sps:$4 sm:$0xff]   ;;  %v13266_v63 = vld [vmem:[#allocation6 + $0x21a4] ss:$16 sps:$4 sm:$0xff]  }
 0x323   :  { %9203 = vmatprep.subr.bf16.mxu0 %v13236_v44  ;;  %9240 = vmatprep.subr.bf16.mxu1 %v13239_v60  ;;  %v13261_v33 = vld [vmem:[#allocation6 + $0x2200] ss:$16 sps:$4 sm:$0xff]   ;;  %v13269_v44 = vld [vmem:[#allocation6 + $0x23e4] ss:$16 sps:$4 sm:$0xff]  }
 0x324   :  { %v13264_v60 = vld [vmem:[#allocation6 + $0x21a0] ss:$16 sps:$4 sm:$0xff]  }
 0x326   :  { %9204 = vmatpush1.bf16.msra.mxu0 %v13234_v26  ;;  %9241 = vmatpush1.bf16.msra.mxu1 %v13237_v15  ;;  %v13267_v26 = vld [vmem:[#allocation6 + $0x23e0] ss:$16 sps:$4 sm:$0xff]   ;;  %v13272_v15 = vld [vmem:[#allocation6 + $0x2184] ss:$16 sps:$4 sm:$0xff]  }
 0x327   :  { %9205 = vmatprep.subr.bf16.mxu0 %v13242_v7  ;;  %9242 = vmatprep.subr.bf16.mxu1 %v13245_v13  ;;  %v13275_v7 = vld [vmem:[#allocation6 + $0x23c4] ss:$16 sps:$4 sm:$0xff]   ;;  %v13270_v13 = vld [vmem:[#allocation6 + $0x2180] ss:$16 sps:$4 sm:$0xff]  }
 0x32a   :  { %9206 = vmatpush1.bf16.msra.mxu0 %v13240_v46  ;;  %9243 = vmatpush1.bf16.msra.mxu1 %v13243_v48  ;;  %v13273_v46 = vld [vmem:[#allocation6 + $0x23c0] ss:$16 sps:$4 sm:$0xff]   ;;  %v13278_v48 = vld [vmem:[#allocation6 + $0x2164] ss:$16 sps:$4 sm:$0xff]  }
 0x32b   :  { %9207 = vmatprep.subr.bf16.mxu0 %v13248_v5  ;;  %9244 = vmatprep.subr.bf16.mxu1 %v13251_v37  ;;  %v13281_v5 = vld [vmem:[#allocation6 + $0x23a4] ss:$16 sps:$4 sm:$0xff]   ;;  %v13276_v37 = vld [vmem:[#allocation6 + $0x2160] ss:$16 sps:$4 sm:$0xff]  }
 0x32e   :  { %9208 = vmatpush1.bf16.msra.mxu0 %v13246_v9  ;;  %9245 = vmatpush1.bf16.msra.mxu1 %v13249_v50  ;;  %v13279_v9 = vld [vmem:[#allocation6 + $0x23a0] ss:$16 sps:$4 sm:$0xff]   ;;  %v13284_v50 = vld [vmem:[#allocation6 + $0x2144] ss:$16 sps:$4 sm:$0xff]  }
 0x32f   :  { %9209 = vmatprep.subr.bf16.mxu0 %v13254_v2  ;;  %9246 = vmatprep.subr.bf16.mxu1 %v13257_v28  ;;  %v13287_v2 = vld [vmem:[#allocation6 + $0x2384] ss:$16 sps:$4 sm:$0xff]   ;;  %v13282_v28 = vld [vmem:[#allocation6 + $0x2140] ss:$16 sps:$4 sm:$0xff]  }
 0x332   :  { %9210 = vmatpush2.bf16.msra.mxu0 %v13252_v53  ;;  %9247 = vmatpush1.bf16.msra.mxu1 %v13255_v19  ;;  %v13285_v53 = vld [vmem:[#allocation6 + $0x2380] ss:$16 sps:$4 sm:$0xff]   ;;  %v380_v19 = vrot.slane %v15023_v62, %v14731_v23  ;;  %v13302_v62 = vld [vmem:[#allocation6 + $0x2324] ss:$16 sps:$4 sm:$0xff]  }
 0x333   :  { %9211 = vmatprep.subr.bf16.mxu0 %v13260_v55  ;;  %9248 = vmatprep.subr.bf16.mxu1 %v13263_v27  ;;  %v13290_v55 = vld [vmem:[#allocation6 + $0x2124] ss:$16 sps:$4 sm:$0xff]  }
 0x334   :  { %v13293_v27 = vld [vmem:[#allocation6 + $0x2364] ss:$16 sps:$4 sm:$0xff]  }
 0x336   :  { %9212 = vmatpush2.bf16.msra.mxu0 %v13258_v56  ;;  %9249 = vmatpush1.bf16.msra.mxu1 %v13261_v33  ;;  %v13288_v56 = vld [vmem:[#allocation6 + $0x2120] ss:$16 sps:$4 sm:$0xff]  }
 0x337   :  { %9213 = vmatprep.subr.bf16.mxu0 %v13266_v63  ;;  %9250 = vmatprep.subr.bf16.mxu1 %v13269_v44  ;;  %v13291_v33 = vld [vmem:[#allocation6 + $0x2360] ss:$16 sps:$4 sm:$0xff]   ;;  %v1484_v63 = vadd.f32 %v14853_v12, %v380_v19  ;;  %v13296_v44 = vld [vmem:[#allocation6 + $0x2104] ss:$16 sps:$4 sm:$0xff]  }
 0x338   :  { %v13308_v12 = vld [vmem:[#allocation6 + $0x2304] ss:$16 sps:$4 sm:$0xff]  }
 0x33a   :  { %9214 = vmatpush2.bf16.msra.mxu0 %v13264_v60  ;;  %9251 = vmatpush2.bf16.msra.mxu1 %v13267_v26  ;;  %v13299_v60 = vld [vmem:[#allocation6 + $0x2344] ss:$16 sps:$4 sm:$0xff]   ;;  %v13294_v26 = vld [vmem:[#allocation6 + $0x2100] ss:$16 sps:$4 sm:$0xff]  }
 0x33b   :  { %9215 = vmatprep.subr.bf16.mxu0 %v13272_v15  ;;  %9252 = vmatprep.subr.bf16.mxu1 %v13275_v7  ;;  %v13297_v15 = vld [vmem:[#allocation6 + $0x2340] ss:$16 sps:$4 sm:$0xff]   ;;  %v1563_v7 = vmax.f32 %v1484_v63, 0.0  ;;  %v13312_v63 = vld [vmem:[#allocation6 + $0xa8] ss:$16 sps:$4 sm:$0xff]  }
 0x33e   :  { %9216 = vmatpush2.bf16.msra.mxu0 %v13270_v13  ;;  %9253 = vmatpush2.bf16.msra.mxu1 %v13273_v46  ;;  %v13305_v13 = vld [vmem:[#allocation6 + $0xec] ss:$16 sps:$4 sm:$0xff]   ;;  %v13300_v46 = vld [vmem:[#allocation6 + $0x2320] ss:$16 sps:$4 sm:$0xff]  }
 0x33f   :  { %9217 = vmatprep.subr.bf16.mxu0 %v13278_v48  ;;  %9254 = vmatprep.subr.bf16.mxu1 %v13281_v5  ;;  %v13303_v48 = vld [vmem:[#allocation6 + $0xe8] ss:$16 sps:$4 sm:$0xff]   ;;  %v15054_v5 = vpack.c.bf16 %v1563_v7, %v1563_v7 }
 0x340   :  { %v13321_v7 = vld [vmem:[#allocation6 + $0x2c8] ss:$16 sps:$4 sm:$0xff]  }
 0x342   :  { %9218 = vmatpush2.bf16.msra.mxu0 %v13276_v37  ;;  %9255 = vmatpush2.bf16.msra.mxu1 %v13279_v9  ;;  %v13311_v37 = vld [vmem:[#allocation6 + $0xcc] ss:$16 sps:$4 sm:$0xff]  }
 0x343   :  { %9219 = vmatprep.subr.bf16.mxu0 %v13284_v50  ;;  %9256 = vmatprep.subr.bf16.mxu1 %v13287_v2  ;;  %v13306_v2 = vld [vmem:[#allocation6 + $0x2300] ss:$16 sps:$4 sm:$0xff]  }
 0x346   :  { %9220 = vmatpush2.bf16.msra.mxu0 %v13282_v28  ;;  %9257 = vmatpush2.bf16.msra.mxu1 %v13285_v53  ;;  %v13309_v28 = vld [vmem:[#allocation6 + $0xc8] ss:$16 sps:$4 sm:$0xff]   ;;  %v1565_v53 = vmax.f32 %v14895_v21, 0.0  ;;  %v13320_v21 = vld [vmem:[#allocation6 + $0x8c] ss:$16 sps:$4 sm:$0xff]  }
 0x347   :  { %9221 = vmatprep.subr.bf16.mxu0 %v13290_v55  ;;  %9258 = vmatprep.subr.bf16.mxu1 %v13293_v27  ;;  %v13314_v55 = vld [vmem:[#allocation6 + $0xac] ss:$16 sps:$4 sm:$0xff]  }
 0x348   :  { %v13317_v27 = vld [vmem:[#allocation6 + $0x2ec] ss:$16 sps:$4 sm:$0xff]  }
 0x34a   :  { %9222 = vmatpush2.bf16.msra.mxu0 %v13288_v56  ;;  %9259 = vmatpush2.bf16.msra.mxu1 %v13291_v33 }
 0x34b   :  { %9223 = vmatprep.subr.bf16.mxu0 %v13296_v44  ;;  %9260 = vmatprep.subr.bf16.mxu1 %v13299_v60  ;;  %v15061_v44 = vpack.c.bf16 %v1565_v53, %v1565_v53  ;;  %v13333_v53 = vld [vmem:[#allocation6 + $0x288] ss:$16 sps:$4 sm:$0xff]  }
 0x34e   :  { %9224 = vmatpush2.bf16.msra.mxu0 %v13294_v26  ;;  %9261 = vmatpush2.bf16.msra.mxu1 %v13297_v15  ;;  %v13323_v26 = vld [vmem:[#allocation6 + $0x2cc] ss:$16 sps:$4 sm:$0xff]  }
 0x34f   :  { %9262 = vmatprep.subr.bf16.mxu1 %v13302_v62  ;;  %9275 = vmatprep.subr.bf16.mxu0 %v13305_v13  ;;  %v13326_v13 = vld [vmem:[#allocation6 + $0x6c] ss:$16 sps:$4 sm:$0xff]  }
 0x351   :  { %v8981_v9 = vpop.f32.mrf.mxu0  ;;  %9226 = vmatmul.mubr.bf16.vlgmr.msra.gmra.mxu0 %v15054_v5 }
 0x352   :  { %v8982_v50 = vadd.f32 %v8981_v9, %v15046_v34  ;;  %9263 = vmatpush2.bf16.msra.mxu1 %v13300_v46  ;;  %9276 = vmatpush1.bf16.msra.mxu0 %v13303_v48  ;;  %v13315_v34 = vld [vmem:[#allocation6 + $0x2e8] ss:$16 sps:$4 sm:$0xff]   ;;  %v13329_v46 = vld [vmem:[#allocation6 + $0x2ac] ss:$16 sps:$4 sm:$0xff]  }
 0x353   :  { %9307 = vmatprep.mubr.bf16.mxu0 %v14752_v39  ;;  %v8983_v19 = vpop.f32.mrf.mxu0  ;;  %9264 = vmatprep.subr.bf16.mxu1 %v13308_v12  ;;  %v13327_v9 = vld [vmem:[#allocation6 + $0x2a8] ss:$16 sps:$4 sm:$0xff]  }
 0x354   :  { %v8984_v56 = vadd.f32 %v8983_v19, %v15049_v40  ;;  %9277 = vmatprep.subr.bf16.mxu0 %v13311_v37  ;;  %v13318_v40 = vld [vmem:[#allocation6 + $0x88] ss:$16 sps:$4 sm:$0xff]   ;;  %v13338_v19 = vld [vmem:[#allocation6 + $0x2c] ss:$16 sps:$4 sm:$0xff]  }
 0x355   :  { %v8985_v33 = vpop.f32.mrf.mxu0  ;;  %v13324_v37 = vld [vmem:[#allocation6 + $0x68] ss:$16 sps:$4 sm:$0xff]  }
 0x356   :  { %9265 = vmatpush2.bf16.msra.mxu1 %v13306_v2  ;;  %9278 = vmatpush1.bf16.msra.mxu0 %v13309_v28  ;;  %v13332_v2 = vld [vmem:[#allocation6 + $0x4c] ss:$16 sps:$4 sm:$0xff]  }
 0x357   :  { %v8986_v60 = vpop.f32.mrf.mxu0  ;;  %9279 = vmatprep.subr.bf16.mxu0 %v13314_v55  ;;  %9316 = vmatprep.subr.bf16.mxu1 %v13317_v27  ;;  %v13335_v28 = vld [vmem:[#allocation6 + $0x28c] ss:$16 sps:$4 sm:$0xff]   ;;  %v13336_v27 = vld [vmem:[#allocation6 + $0x28] ss:$16 sps:$4 sm:$0xff]  }
 0x358   :  { %v13341_v55 = vld [vmem:[#allocation6 + $0x26c] ss:$16 sps:$4 sm:$0xff]   ;;  %v13345_v60 = vld [vmem:[#allocation6 + $0x248] ss:$16 sps:$4 sm:$0xff]  }
 0x359   :  { %v9022_v39 = vpop.f32.mrf.mxu1  ;;  %9267 = vmatmul.mubr.bf16.vlgmr.msra.gmra.mxu1 %v15061_v44  ;;  %v13344_v33 = vld [vmem:[#allocation6 + $0xc] ss:$16 sps:$4 sm:$0xff]  }
 0x35a   :  { %v15064_v15 = vadd.f32 %v9022_v39, %v8982_v50  ;;  %9280 = vmatpush1.bf16.msra.mxu0 %v13312_v63  ;;  %9317 = vmatpush1.bf16.msra.mxu1 %v13315_v34  ;;  %v13347_v63 = vld [vmem:[#allocation6 + $0x24c] ss:$16 sps:$4 sm:$0xff]   ;;  %v13342_v34 = vld [vmem:[#allocation6 + $0x8] ss:$16 sps:$4 sm:$0xff]  }
 0x35b   :  { %9348 = vmatprep.mubr.bf16.mxu1 %v14770_v61  ;;  %v9024_v62 = vpop.f32.mrf.mxu1  ;;  %9281 = vmatprep.subr.bf16.mxu0 %v13320_v21  ;;  %v13330_v61 = vld [vmem:[#allocation6 + $0x48] ss:$16 sps:$4 sm:$0xff]   ;;  %v13350_v21 = vld [vmem:[#allocation6 + $0x1ec] ss:$16 sps:$4 sm:$0xff]  }
 0x35c   :  { %v15067_v48 = vadd.f32 %v9024_v62, %v8984_v56  ;;  %9318 = vmatprep.subr.bf16.mxu1 %v13323_v26  ;;  %v13339_v56 = vld [vmem:[#allocation6 + $0x268] ss:$16 sps:$4 sm:$0xff]   ;;  %v13353_v26 = vld [vmem:[#allocation6 + $0x22c] ss:$16 sps:$4 sm:$0xff]  }
 0x35d   :  { %v9026_v12 = vpop.f32.mrf.mxu1  ;;  %v13348_v39 = vld [vmem:[#allocation6 + $0x1e8] ss:$16 sps:$4 sm:$0xff]   ;;  %v13359_v62 = vld [vmem:[#allocation6 + $0x20c] ss:$16 sps:$4 sm:$0xff]  }
 0x35e   :  { %9282 = vmatpush1.bf16.msra.mxu0 %v13318_v40  ;;  %9319 = vmatpush1.bf16.msra.mxu1 %v13321_v7  ;;  %v13351_v40 = vld [vmem:[#allocation6 + $0x228] ss:$16 sps:$4 sm:$0xff]   ;;  %v13356_v7 = vld [vmem:[#allocation6 + $0x1cc] ss:$16 sps:$4 sm:$0xff]  }
 0x35f   :  { %v9027_v50 = vpop.f32.mrf.mxu1  ;;  %9283 = vmatprep.subr.bf16.mxu0 %v13326_v13  ;;  %9320 = vmatprep.subr.bf16.mxu1 %v13329_v46  ;;  %v13354_v13 = vld [vmem:[#allocation6 + $0x1c8] ss:$16 sps:$4 sm:$0xff]   ;;  %v13362_v12 = vld [vmem:[#allocation6 + $0x1ac] ss:$16 sps:$4 sm:$0xff]  }
 0x360   :  { %v13357_v46 = vld [vmem:[#allocation6 + $0x208] ss:$16 sps:$4 sm:$0xff]  }
 0x361   :  { %v13363_v50 = vld [vmem:[#allocation6 + $0x3e8] ss:$16 sps:$4 sm:$0xff]  }
 0x362   :  { %9284 = vmatpush1.bf16.msra.mxu0 %v13324_v37  ;;  %9321 = vmatpush1.bf16.msra.mxu1 %v13327_v9  ;;  %v13365_v37 = vld [vmem:[#allocation6 + $0x3ec] ss:$16 sps:$4 sm:$0xff]   ;;  %v13360_v9 = vld [vmem:[#allocation6 + $0x1a8] ss:$16 sps:$4 sm:$0xff]  }
 0x363   :  { %9285 = vmatprep.subr.bf16.mxu0 %v13332_v2  ;;  %9322 = vmatprep.subr.bf16.mxu1 %v13335_v28  ;;  %v13368_v2 = vld [vmem:[#allocation6 + $0x18c] ss:$16 sps:$4 sm:$0xff]  }
 0x364   :  { %v13371_v28 = vld [vmem:[#allocation6 + $0x3cc] ss:$16 sps:$4 sm:$0xff]  }
 0x366   :  { %9286 = vmatpush1.bf16.msra.mxu0 %v13330_v61  ;;  %9323 = vmatpush1.bf16.msra.mxu1 %v13333_v53  ;;  %v13366_v61 = vld [vmem:[#allocation6 + $0x188] ss:$16 sps:$4 sm:$0xff]  }
 0x367   :  { %9287 = vmatprep.subr.bf16.mxu0 %v13338_v19  ;;  %9324 = vmatprep.subr.bf16.mxu1 %v13341_v55  ;;  %v13369_v53 = vld [vmem:[#allocation6 + $0x3c8] ss:$16 sps:$4 sm:$0xff]   ;;  %v13374_v19 = vld [vmem:[#allocation6 + $0x16c] ss:$16 sps:$4 sm:$0xff]  }
 0x368   :  { %v13377_v55 = vld [vmem:[#allocation6 + $0x3ac] ss:$16 sps:$4 sm:$0xff]  }
 0x36a   :  { %9288 = vmatpush1.bf16.msra.mxu0 %v13336_v27  ;;  %9325 = vmatpush1.bf16.msra.mxu1 %v13339_v56  ;;  %v13372_v27 = vld [vmem:[#allocation6 + $0x168] ss:$16 sps:$4 sm:$0xff]  }
 0x36b   :  { %9289 = vmatprep.subr.bf16.mxu0 %v13344_v33  ;;  %9326 = vmatprep.subr.bf16.mxu1 %v13347_v63  ;;  %v13375_v56 = vld [vmem:[#allocation6 + $0x3a8] ss:$16 sps:$4 sm:$0xff]   ;;  %v13380_v33 = vld [vmem:[#allocation6 + $0x14c] ss:$16 sps:$4 sm:$0xff]  }
 0x36c   :  { %v13383_v63 = vld [vmem:[#allocation6 + $0x38c] ss:$16 sps:$4 sm:$0xff]  }
 0x36e   :  { %9290 = vmatpush1.bf16.msra.mxu0 %v13342_v34  ;;  %9327 = vmatpush1.bf16.msra.mxu1 %v13345_v60  ;;  %v13378_v34 = vld [vmem:[#allocation6 + $0x148] ss:$16 sps:$4 sm:$0xff]  }
 0x36f   :  { %9291 = vmatprep.subr.bf16.mxu0 %v13350_v21  ;;  %9328 = vmatprep.subr.bf16.mxu1 %v13353_v26  ;;  %v13381_v60 = vld [vmem:[#allocation6 + $0x388] ss:$16 sps:$4 sm:$0xff]   ;;  %v13386_v21 = vld [vmem:[#allocation6 + $0x12c] ss:$16 sps:$4 sm:$0xff]  }
 0x370   :  { %v13389_v26 = vld [vmem:[#allocation6 + $0x36c] ss:$16 sps:$4 sm:$0xff]  }
 0x372   :  { %9292 = vmatpush2.bf16.msra.mxu0 %v13348_v39  ;;  %9329 = vmatpush1.bf16.msra.mxu1 %v13351_v40  ;;  %v13384_v39 = vld [vmem:[#allocation6 + $0x128] ss:$16 sps:$4 sm:$0xff]  }
 0x373   :  { %9293 = vmatprep.subr.bf16.mxu0 %v13356_v7  ;;  %9330 = vmatprep.subr.bf16.mxu1 %v13359_v62  ;;  %v13387_v40 = vld [vmem:[#allocation6 + $0x368] ss:$16 sps:$4 sm:$0xff]   ;;  %v13392_v7 = vld [vmem:[#allocation6 + $0x10c] ss:$16 sps:$4 sm:$0xff]  }
 0x374   :  { %v13395_v62 = vld [vmem:[#allocation6 + $0x34c] ss:$16 sps:$4 sm:$0xff]  }
 0x376   :  { %9294 = vmatpush2.bf16.msra.mxu0 %v13354_v13  ;;  %9331 = vmatpush1.bf16.msra.mxu1 %v13357_v46  ;;  %v13390_v13 = vld [vmem:[#allocation6 + $0x108] ss:$16 sps:$4 sm:$0xff]  }
 0x377   :  { %9295 = vmatprep.subr.bf16.mxu0 %v13362_v12  ;;  %9332 = vmatprep.subr.bf16.mxu1 %v13365_v37  ;;  %v13393_v46 = vld [vmem:[#allocation6 + $0x348] ss:$16 sps:$4 sm:$0xff]   ;;  %v13398_v12 = vld [vmem:[#allocation6 + $0x32c] ss:$16 sps:$4 sm:$0xff]  }
 0x378   :  { %v13401_v37 = vld [vmem:[#allocation6 + $0x4ec] ss:$16 sps:$4 sm:$0xff]  }
 0x37a   :  { %9296 = vmatpush2.bf16.msra.mxu0 %v13360_v9  ;;  %9333 = vmatpush2.bf16.msra.mxu1 %v13363_v50  ;;  %v13396_v9 = vld [vmem:[#allocation6 + $0x328] ss:$16 sps:$4 sm:$0xff]  }
 0x37b   :  { %9297 = vmatprep.subr.bf16.mxu0 %v13368_v2  ;;  %9334 = vmatprep.subr.bf16.mxu1 %v13371_v28  ;;  %v13399_v50 = vld [vmem:[#allocation6 + $0x4e8] ss:$16 sps:$4 sm:$0xff]   ;;  %v13404_v2 = vld [vmem:[#allocation6 + $0x30c] ss:$16 sps:$4 sm:$0xff]  }
 0x37c   :  { %v13407_v28 = vld [vmem:[#allocation6 + $0x4cc] ss:$16 sps:$4 sm:$0xff]  }
 0x37e   :  { %9298 = vmatpush2.bf16.msra.mxu0 %v13366_v61  ;;  %9335 = vmatpush2.bf16.msra.mxu1 %v13369_v53 }
 0x37f   :  { %9299 = vmatprep.subr.bf16.mxu0 %v13374_v19  ;;  %9336 = vmatprep.subr.bf16.mxu1 %v13377_v55  ;;  %v13402_v19 = vld [vmem:[#allocation6 + $0x308] ss:$16 sps:$4 sm:$0xff]  }
 0x380   :  { %v13405_v55 = vld [vmem:[#allocation6 + $0x4c8] ss:$16 sps:$4 sm:$0xff]  }
 0x382   :  { %9300 = vmatpush2.bf16.msra.mxu0 %v13372_v27  ;;  %9337 = vmatpush2.bf16.msra.mxu1 %v13375_v56  ;;  %v13410_v56 = vld [vmem:[#allocation6 + $0x4ac] ss:$16 sps:$4 sm:$0xff]  }
 0x383   :  { %9301 = vmatprep.subr.bf16.mxu0 %v13380_v33  ;;  %9338 = vmatprep.subr.bf16.mxu1 %v13383_v63  ;;  %v13413_v33 = vld [vmem:[#allocation6 + $0x6ec] ss:$16 sps:$4 sm:$0xff]  }
 0x386   :  { %9302 = vmatpush2.bf16.msra.mxu0 %v13378_v34  ;;  %9339 = vmatpush2.bf16.msra.mxu1 %v13381_v60  ;;  %v13408_v60 = vld [vmem:[#allocation6 + $0x4a8] ss:$16 sps:$4 sm:$0xff]  }
 0x387   :  { %9303 = vmatprep.subr.bf16.mxu0 %v13386_v21  ;;  %9340 = vmatprep.subr.bf16.mxu1 %v13389_v26  ;;  %v13419_v26 = vld [vmem:[#allocation6 + $0x6cc] ss:$16 sps:$4 sm:$0xff]  }
 0x38a   :  { %9304 = vmatpush2.bf16.msra.mxu0 %v13384_v39  ;;  %9341 = vmatpush2.bf16.msra.mxu1 %v13387_v40  ;;  %v13414_v40 = vld [vmem:[#allocation6 + $0x488] ss:$16 sps:$4 sm:$0xff]  }
 0x38b   :  { %9305 = vmatprep.subr.bf16.mxu0 %v13392_v7  ;;  %9342 = vmatprep.subr.bf16.mxu1 %v13395_v62  ;;  %v13422_v62 = vld [vmem:[#allocation6 + $0x46c] ss:$16 sps:$4 sm:$0xff]  }
 0x38e   :  { %9306 = vmatpush2.bf16.msra.mxu0 %v13390_v13  ;;  %9343 = vmatpush2.bf16.msra.mxu1 %v13393_v46  ;;  %v13425_v13 = vld [vmem:[#allocation6 + $0x6ac] ss:$16 sps:$4 sm:$0xff]  }
 0x38f   :  { %9344 = vmatprep.subr.bf16.mxu1 %v13398_v12  ;;  %9357 = vmatprep.subr.bf16.mxu0 %v13401_v37  ;;  %v13420_v37 = vld [vmem:[#allocation6 + $0x468] ss:$16 sps:$4 sm:$0xff]  }
 0x391   :  { %v9063_v61 = vpop.f32.mrf.mxu0  ;;  %9308 = vmatmul.mubr.bf16.vlgmr.msra.gmra.mxu0 %v14756_v41  ;;  %v13411_v41 = vld [vmem:[#allocation6 + $0x6e8] ss:$16 sps:$4 sm:$0xff]  }
 0x392   :  { %v9064_v53 = vadd.f32 %v9063_v61, %v15064_v15  ;;  %9345 = vmatpush2.bf16.msra.mxu1 %v13396_v9  ;;  %9358 = vmatpush1.bf16.msra.mxu0 %v13399_v50  ;;  %v13416_v15 = vld [vmem:[#allocation6 + $0x48c] ss:$16 sps:$4 sm:$0xff]  }
 0x393   :  { %9389 = vmatprep.mubr.bf16.mxu0 %v14789_v0  ;;  %v9065_v27 = vpop.f32.mrf.mxu0  ;;  %9346 = vmatprep.subr.bf16.mxu1 %v13404_v2  ;;  %v13428_v50 = vld [vmem:[#allocation6 + $0x44c] ss:$16 sps:$4 sm:$0xff]  }
 0x394   :  { %v9066_v63 = vadd.f32 %v9065_v27, %v15067_v48  ;;  %9359 = vmatprep.subr.bf16.mxu0 %v13407_v28  ;;  %v13417_v48 = vld [vmem:[#allocation6 + $0x6c8] ss:$16 sps:$4 sm:$0xff]   ;;  %v13431_v2 = vld [vmem:[#allocation6 + $0x68c] ss:$16 sps:$4 sm:$0xff]  }
 0x395   :  { %v9067_v34 = vpop.f32.mrf.mxu0  ;;  %v13429_v28 = vld [vmem:[#allocation6 + $0x688] ss:$16 sps:$4 sm:$0xff]   ;;  %v13434_v61 = vld [vmem:[#allocation6 + $0x42c] ss:$16 sps:$4 sm:$0xff]  }
 0x396   :  { %9347 = vmatpush2.bf16.msra.mxu1 %v13402_v19  ;;  %9360 = vmatpush1.bf16.msra.mxu0 %v13405_v55  ;;  %v13432_v19 = vld [vmem:[#allocation6 + $0x428] ss:$16 sps:$4 sm:$0xff]   ;;  %v13440_v27 = vld [vmem:[#allocation6 + $0x40c] ss:$16 sps:$4 sm:$0xff]  }
 0x397   :  { %v9068_v21 = vpop.f32.mrf.mxu0  ;;  %9361 = vmatprep.subr.bf16.mxu0 %v13410_v56  ;;  %9398 = vmatprep.subr.bf16.mxu1 %v13413_v33  ;;  %v13435_v55 = vld [vmem:[#allocation6 + $0x668] ss:$16 sps:$4 sm:$0xff]   ;;  %v13443_v56 = vld [vmem:[#allocation6 + $0x64c] ss:$16 sps:$4 sm:$0xff]  }
 0x398   :  { %v13438_v33 = vld [vmem:[#allocation6 + $0x408] ss:$16 sps:$4 sm:$0xff]   ;;  %v13446_v34 = vld [vmem:[#allocation6 + $0x5ec] ss:$16 sps:$4 sm:$0xff]  }
 0x399   :  { %v9104_v39 = vpop.f32.mrf.mxu1  ;;  %9349 = vmatmul.mubr.bf16.vlgmr.msra.gmra.mxu1 %v14774_v1  ;;  %v13423_v1 = vld [vmem:[#allocation6 + $0x6a8] ss:$16 sps:$4 sm:$0xff]  }
 0x39a   :  { %v15074_v0 = vadd.f32 %v9104_v39, %v9064_v53  ;;  %9362 = vmatpush1.bf16.msra.mxu0 %v13408_v60  ;;  %9399 = vmatpush1.bf16.msra.mxu1 %v13411_v41  ;;  %v13437_v53 = vld [vmem:[#allocation6 + $0x66c] ss:$16 sps:$4 sm:$0xff]   ;;  %v13444_v41 = vld [vmem:[#allocation6 + $0x5e8] ss:$16 sps:$4 sm:$0xff]  }
 0x39b   :  { %9430 = vmatprep.mubr.bf16.mxu1 %v14802_v57  ;;  %v9106_v7 = vpop.f32.mrf.mxu1  ;;  %9363 = vmatprep.subr.bf16.mxu0 %v13416_v15  ;;  %v13426_v57 = vld [vmem:[#allocation6 + $0x448] ss:$16 sps:$4 sm:$0xff]   ;;  %v13449_v60 = vld [vmem:[#allocation6 + $0x62c] ss:$16 sps:$4 sm:$0xff]  }
 0x39c   :  { %v15077_v46 = vadd.f32 %v9106_v7, %v9066_v63  ;;  %9400 = vmatprep.subr.bf16.mxu1 %v13419_v26  ;;  %v13441_v63 = vld [vmem:[#allocation6 + $0x648] ss:$16 sps:$4 sm:$0xff]   ;;  %v13452_v15 = vld [vmem:[#allocation6 + $0x5cc] ss:$16 sps:$4 sm:$0xff]  }
 0x39d   :  { %v9108_v12 = vpop.f32.mrf.mxu1  ;;  %v13447_v21 = vld [vmem:[#allocation6 + $0x628] ss:$16 sps:$4 sm:$0xff]   ;;  %v13455_v26 = vld [vmem:[#allocation6 + $0x60c] ss:$16 sps:$4 sm:$0xff]  }
 0x39e   :  { %9364 = vmatpush1.bf16.msra.mxu0 %v13414_v40  ;;  %9401 = vmatpush1.bf16.msra.mxu1 %v13417_v48  ;;  %v13450_v39 = vld [vmem:[#allocation6 + $0x5c8] ss:$16 sps:$4 sm:$0xff]   ;;  %v13458_v48 = vld [vmem:[#allocation6 + $0x5ac] ss:$16 sps:$4 sm:$0xff]  }
 0x39f   :  { %v9109_v9 = vpop.f32.mrf.mxu1  ;;  %9365 = vmatprep.subr.bf16.mxu0 %v13422_v62  ;;  %9402 = vmatprep.subr.bf16.mxu1 %v13425_v13  ;;  %v13453_v40 = vld [vmem:[#allocation6 + $0x608] ss:$16 sps:$4 sm:$0xff]   ;;  %v13461_v7 = vld [vmem:[#allocation6 + $0x7ec] ss:$16 sps:$4 sm:$0xff]  }
 0x3a0   :  { %v13456_v62 = vld [vmem:[#allocation6 + $0x5a8] ss:$16 sps:$4 sm:$0xff]   ;;  %v13464_v12 = vld [vmem:[#allocation6 + $0x58c] ss:$16 sps:$4 sm:$0xff]  }
 0x3a1   :  { %v13459_v13 = vld [vmem:[#allocation6 + $0x7e8] ss:$16 sps:$4 sm:$0xff]  }
 0x3a2   :  { %9366 = vmatpush1.bf16.msra.mxu0 %v13420_v37  ;;  %9403 = vmatpush1.bf16.msra.mxu1 %v13423_v1  ;;  %v13467_v37 = vld [vmem:[#allocation6 + $0x7cc] ss:$16 sps:$4 sm:$0xff]   ;;  %v13462_v1 = vld [vmem:[#allocation6 + $0x588] ss:$16 sps:$4 sm:$0xff]  }
 0x3a3   :  { %9367 = vmatprep.subr.bf16.mxu0 %v13428_v50  ;;  %9404 = vmatprep.subr.bf16.mxu1 %v13431_v2  ;;  %v13465_v9 = vld [vmem:[#allocation6 + $0x7c8] ss:$16 sps:$4 sm:$0xff]   ;;  %v13470_v50 = vld [vmem:[#allocation6 + $0x56c] ss:$16 sps:$4 sm:$0xff]  }
 0x3a4   :  { %v13473_v2 = vld [vmem:[#allocation6 + $0x7ac] ss:$16 sps:$4 sm:$0xff]  }
 0x3a6   :  { %9368 = vmatpush1.bf16.msra.mxu0 %v13426_v57  ;;  %9405 = vmatpush1.bf16.msra.mxu1 %v13429_v28  ;;  %v13468_v57 = vld [vmem:[#allocation6 + $0x568] ss:$16 sps:$4 sm:$0xff]  }
 0x3a7   :  { %9369 = vmatprep.subr.bf16.mxu0 %v13434_v61  ;;  %9406 = vmatprep.subr.bf16.mxu1 %v13437_v53  ;;  %v13471_v28 = vld [vmem:[#allocation6 + $0x7a8] ss:$16 sps:$4 sm:$0xff]   ;;  %v13476_v61 = vld [vmem:[#allocation6 + $0x54c] ss:$16 sps:$4 sm:$0xff]  }
 0x3a8   :  { %v13479_v53 = vld [vmem:[#allocation6 + $0x78c] ss:$16 sps:$4 sm:$0xff]  }
 0x3aa   :  { %9370 = vmatpush1.bf16.msra.mxu0 %v13432_v19  ;;  %9407 = vmatpush1.bf16.msra.mxu1 %v13435_v55  ;;  %v13474_v19 = vld [vmem:[#allocation6 + $0x548] ss:$16 sps:$4 sm:$0xff]  }
 0x3ab   :  { %9371 = vmatprep.subr.bf16.mxu0 %v13440_v27  ;;  %9408 = vmatprep.subr.bf16.mxu1 %v13443_v56  ;;  %v13477_v55 = vld [vmem:[#allocation6 + $0x788] ss:$16 sps:$4 sm:$0xff]   ;;  %v13482_v27 = vld [vmem:[#allocation6 + $0x52c] ss:$16 sps:$4 sm:$0xff]  }
 0x3ac   :  { %v13485_v56 = vld [vmem:[#allocation6 + $0x76c] ss:$16 sps:$4 sm:$0xff]  }
 0x3ae   :  { %9372 = vmatpush1.bf16.msra.mxu0 %v13438_v33  ;;  %9409 = vmatpush1.bf16.msra.mxu1 %v13441_v63  ;;  %v13480_v33 = vld [vmem:[#allocation6 + $0x528] ss:$16 sps:$4 sm:$0xff]  }
 0x3af   :  { %9373 = vmatprep.subr.bf16.mxu0 %v13446_v34  ;;  %9410 = vmatprep.subr.bf16.mxu1 %v13449_v60  ;;  %v13483_v63 = vld [vmem:[#allocation6 + $0x768] ss:$16 sps:$4 sm:$0xff]   ;;  %v13488_v34 = vld [vmem:[#allocation6 + $0x50c] ss:$16 sps:$4 sm:$0xff]  }
 0x3b0   :  { %v13491_v60 = vld [vmem:[#allocation6 + $0x74c] ss:$16 sps:$4 sm:$0xff]  }
 0x3b2   :  { %9374 = vmatpush2.bf16.msra.mxu0 %v13444_v41  ;;  %9411 = vmatpush1.bf16.msra.mxu1 %v13447_v21  ;;  %v13486_v41 = vld [vmem:[#allocation6 + $0x508] ss:$16 sps:$4 sm:$0xff]  }
 0x3b3   :  { %9375 = vmatprep.subr.bf16.mxu0 %v13452_v15  ;;  %9412 = vmatprep.subr.bf16.mxu1 %v13455_v26  ;;  %v13489_v21 = vld [vmem:[#allocation6 + $0x748] ss:$16 sps:$4 sm:$0xff]   ;;  %v13494_v15 = vld [vmem:[#allocation6 + $0x72c] ss:$16 sps:$4 sm:$0xff]  }
 0x3b4   :  { %v13497_v26 = vld [vmem:[#allocation6 + $0x8ec] ss:$16 sps:$4 sm:$0xff]  }
 0x3b6   :  { %9376 = vmatpush2.bf16.msra.mxu0 %v13450_v39  ;;  %9413 = vmatpush1.bf16.msra.mxu1 %v13453_v40  ;;  %v13492_v39 = vld [vmem:[#allocation6 + $0x728] ss:$16 sps:$4 sm:$0xff]  }
 0x3b7   :  { %9377 = vmatprep.subr.bf16.mxu0 %v13458_v48  ;;  %9414 = vmatprep.subr.bf16.mxu1 %v13461_v7  ;;  %v13495_v40 = vld [vmem:[#allocation6 + $0x8e8] ss:$16 sps:$4 sm:$0xff]   ;;  %v13500_v48 = vld [vmem:[#allocation6 + $0x70c] ss:$16 sps:$4 sm:$0xff]  }
 0x3b8   :  { %v13503_v7 = vld [vmem:[#allocation6 + $0x8cc] ss:$16 sps:$4 sm:$0xff]  }
 0x3ba   :  { %9378 = vmatpush2.bf16.msra.mxu0 %v13456_v62  ;;  %9415 = vmatpush2.bf16.msra.mxu1 %v13459_v13 }
 0x3bb   :  { %9379 = vmatprep.subr.bf16.mxu0 %v13464_v12  ;;  %9416 = vmatprep.subr.bf16.mxu1 %v13467_v37  ;;  %v13498_v12 = vld [vmem:[#allocation6 + $0x708] ss:$16 sps:$4 sm:$0xff]  }
 0x3bc   :  { %v13501_v37 = vld [vmem:[#allocation6 + $0x8c8] ss:$16 sps:$4 sm:$0xff]  }
 0x3be   :  { %9380 = vmatpush2.bf16.msra.mxu0 %v13462_v1  ;;  %9417 = vmatpush2.bf16.msra.mxu1 %v13465_v9  ;;  %v13506_v9 = vld [vmem:[#allocation6 + $0x8ac] ss:$16 sps:$4 sm:$0xff]  }
 0x3bf   :  { %9381 = vmatprep.subr.bf16.mxu0 %v13470_v50  ;;  %9418 = vmatprep.subr.bf16.mxu1 %v13473_v2  ;;  %v13509_v50 = vld [vmem:[#allocation6 + $0xaec] ss:$16 sps:$4 sm:$0xff]  }
 0x3c2   :  { %9382 = vmatpush2.bf16.msra.mxu0 %v13468_v57  ;;  %9419 = vmatpush2.bf16.msra.mxu1 %v13471_v28  ;;  %v13504_v28 = vld [vmem:[#allocation6 + $0x8a8] ss:$16 sps:$4 sm:$0xff]  }
 0x3c3   :  { %9383 = vmatprep.subr.bf16.mxu0 %v13476_v61  ;;  %9420 = vmatprep.subr.bf16.mxu1 %v13479_v53  ;;  %v13515_v53 = vld [vmem:[#allocation6 + $0xacc] ss:$16 sps:$4 sm:$0xff]  }
 0x3c6   :  { %9384 = vmatpush2.bf16.msra.mxu0 %v13474_v19  ;;  %9421 = vmatpush2.bf16.msra.mxu1 %v13477_v55  ;;  %v13510_v55 = vld [vmem:[#allocation6 + $0x888] ss:$16 sps:$4 sm:$0xff]  }
 0x3c7   :  { %9385 = vmatprep.subr.bf16.mxu0 %v13482_v27  ;;  %9422 = vmatprep.subr.bf16.mxu1 %v13485_v56  ;;  %v13518_v56 = vld [vmem:[#allocation6 + $0x86c] ss:$16 sps:$4 sm:$0xff]  }
 0x3ca   :  { %9386 = vmatpush2.bf16.msra.mxu0 %v13480_v33  ;;  %9423 = vmatpush2.bf16.msra.mxu1 %v13483_v63  ;;  %v13521_v33 = vld [vmem:[#allocation6 + $0xaac] ss:$16 sps:$4 sm:$0xff]  }
 0x3cb   :  { %9387 = vmatprep.subr.bf16.mxu0 %v13488_v34  ;;  %9424 = vmatprep.subr.bf16.mxu1 %v13491_v60  ;;  %v13516_v60 = vld [vmem:[#allocation6 + $0x868] ss:$16 sps:$4 sm:$0xff]  }
 0x3ce   :  { %9388 = vmatpush2.bf16.msra.mxu0 %v13486_v41  ;;  %9425 = vmatpush2.bf16.msra.mxu1 %v13489_v21  ;;  %v13524_v21 = vld [vmem:[#allocation6 + $0x84c] ss:$16 sps:$4 sm:$0xff]  }
 0x3cf   :  { %9426 = vmatprep.subr.bf16.mxu1 %v13494_v15  ;;  %9439 = vmatprep.subr.bf16.mxu0 %v13497_v26  ;;  %v13527_v15 = vld [vmem:[#allocation6 + $0xa8c] ss:$16 sps:$4 sm:$0xff]   ;;  %v13525_v26 = vld [vmem:[#allocation6 + $0xa88] ss:$16 sps:$4 sm:$0xff]  }
 0x3d1   :  { %v9145_v62 = vpop.f32.mrf.mxu0  ;;  %9390 = vmatmul.mubr.bf16.vlgmr.msra.gmra.mxu0 %v14875_v22  ;;  %v13507_v22 = vld [vmem:[#allocation6 + $0xae8] ss:$16 sps:$4 sm:$0xff]  }
 0x3d2   :  { %v9146_v13 = vadd.f32 %v9145_v62, %v15074_v0  ;;  %9427 = vmatpush2.bf16.msra.mxu1 %v13492_v39  ;;  %9440 = vmatpush1.bf16.msra.mxu0 %v13495_v40  ;;  %v13512_v0 = vld [vmem:[#allocation6 + $0x88c] ss:$16 sps:$4 sm:$0xff]  }
 0x3d3   :  { %9471 = vmatprep.mubr.bf16.mxu0 %v14878_v47  ;;  %v9147_v1 = vpop.f32.mrf.mxu0  ;;  %9428 = vmatprep.subr.bf16.mxu1 %v13500_v48  ;;  %v13530_v39 = vld [vmem:[#allocation6 + $0x82c] ss:$16 sps:$4 sm:$0xff]   ;;  %v13528_v48 = vld [vmem:[#allocation6 + $0x828] ss:$16 sps:$4 sm:$0xff]  }
 0x3d4   :  { %v9148_v2 = vadd.f32 %v9147_v1, %v15077_v46  ;;  %9441 = vmatprep.subr.bf16.mxu0 %v13503_v7  ;;  %v13513_v46 = vld [vmem:[#allocation6 + $0xac8] ss:$16 sps:$4 sm:$0xff]   ;;  %v13533_v40 = vld [vmem:[#allocation6 + $0xa6c] ss:$16 sps:$4 sm:$0xff]  }
 0x3d5   :  { %v9149_v57 = vpop.f32.mrf.mxu0  ;;  %v13531_v7 = vld [vmem:[#allocation6 + $0xa68] ss:$16 sps:$4 sm:$0xff]   ;;  %v13536_v62 = vld [vmem:[#allocation6 + $0x80c] ss:$16 sps:$4 sm:$0xff]  }
 0x3d6   :  { %9429 = vmatpush2.bf16.msra.mxu1 %v13498_v12  ;;  %9442 = vmatpush1.bf16.msra.mxu0 %v13501_v37  ;;  %v13534_v12 = vld [vmem:[#allocation6 + $0x808] ss:$16 sps:$4 sm:$0xff]   ;;  %v13542_v1 = vld [vmem:[#allocation6 + $0x9ec] ss:$16 sps:$4 sm:$0xff]  }
 0x3d7   :  { %v9150_v61 = vpop.f32.mrf.mxu0  ;;  %9443 = vmatprep.subr.bf16.mxu0 %v13506_v9  ;;  %9480 = vmatprep.subr.bf16.mxu1 %v13509_v50  ;;  %v13537_v37 = vld [vmem:[#allocation6 + $0xa48] ss:$16 sps:$4 sm:$0xff]   ;;  %v13545_v9 = vld [vmem:[#allocation6 + $0xa2c] ss:$16 sps:$4 sm:$0xff]  }
 0x3d8   :  { %v13540_v50 = vld [vmem:[#allocation6 + $0x9e8] ss:$16 sps:$4 sm:$0xff]   ;;  %v13548_v57 = vld [vmem:[#allocation6 + $0x9cc] ss:$16 sps:$4 sm:$0xff]  }
 0x3d9   :  { %v9186_v19 = vpop.f32.mrf.mxu1  ;;  %9431 = vmatmul.mubr.bf16.vlgmr.msra.gmra.mxu1 %v14891_v14  ;;  %v13519_v14 = vld [vmem:[#allocation6 + $0xaa8] ss:$16 sps:$4 sm:$0xff]  }
 0x3da   :  { %v15084_v47 = vadd.f32 %v9186_v19, %v9146_v13  ;;  %9444 = vmatpush1.bf16.msra.mxu0 %v13504_v28  ;;  %9481 = vmatpush1.bf16.msra.mxu1 %v13507_v22  ;;  %v13539_v13 = vld [vmem:[#allocation6 + $0xa4c] ss:$16 sps:$4 sm:$0xff]   ;;  %v13546_v22 = vld [vmem:[#allocation6 + $0x9c8] ss:$16 sps:$4 sm:$0xff]  }
 0x3db   :  { %9512 = vmatprep.mubr.bf16.mxu1 %v14893_v20  ;;  %v9188_v27 = vpop.f32.mrf.mxu1  ;;  %9445 = vmatprep.subr.bf16.mxu0 %v13512_v0  ;;  %v13522_v20 = vld [vmem:[#allocation6 + $0x848] ss:$16 sps:$4 sm:$0xff]   ;;  %v13551_v28 = vld [vmem:[#allocation6 + $0xa0c] ss:$16 sps:$4 sm:$0xff]  }
 0x3dc   :  { %v15087_v63 = vadd.f32 %v9188_v27, %v9148_v2  ;;  %9482 = vmatprep.subr.bf16.mxu1 %v13515_v53  ;;  %v13543_v2 = vld [vmem:[#allocation6 + $0xa28] ss:$16 sps:$4 sm:$0xff]   ;;  %v13554_v0 = vld [vmem:[#allocation6 + $0x9ac] ss:$16 sps:$4 sm:$0xff]  }
 0x3dd   :  { %v9190_v34 = vpop.f32.mrf.mxu1  ;;  %v13549_v61 = vld [vmem:[#allocation6 + $0xa08] ss:$16 sps:$4 sm:$0xff]   ;;  %v13557_v53 = vld [vmem:[#allocation6 + $0xbec] ss:$16 sps:$4 sm:$0xff]  }
 0x3de   :  { %9446 = vmatpush1.bf16.msra.mxu0 %v13510_v55  ;;  %9483 = vmatpush1.bf16.msra.mxu1 %v13513_v46  ;;  %v13552_v19 = vld [vmem:[#allocation6 + $0x9a8] ss:$16 sps:$4 sm:$0xff]   ;;  %v13560_v46 = vld [vmem:[#allocation6 + $0x98c] ss:$16 sps:$4 sm:$0xff]  }
 0x3df   :  { %v9191_v41 = vpop.f32.mrf.mxu1  ;;  %9447 = vmatprep.subr.bf16.mxu0 %v13518_v56  ;;  %9484 = vmatprep.subr.bf16.mxu1 %v13521_v33  ;;  %v13555_v55 = vld [vmem:[#allocation6 + $0xbe8] ss:$16 sps:$4 sm:$0xff]   ;;  %v13563_v27 = vld [vmem:[#allocation6 + $0xbcc] ss:$16 sps:$4 sm:$0xff]  }
 0x3e0   :  { %v13558_v56 = vld [vmem:[#allocation6 + $0x988] ss:$16 sps:$4 sm:$0xff]   ;;  %v13566_v34 = vld [vmem:[#allocation6 + $0x96c] ss:$16 sps:$4 sm:$0xff]  }
 0x3e1   :  { %v13561_v33 = vld [vmem:[#allocation6 + $0xbc8] ss:$16 sps:$4 sm:$0xff]  }
 0x3e2   :  { %9448 = vmatpush1.bf16.msra.mxu0 %v13516_v60  ;;  %9485 = vmatpush1.bf16.msra.mxu1 %v13519_v14  ;;  %v13569_v60 = vld [vmem:[#allocation6 + $0xbac] ss:$16 sps:$4 sm:$0xff]   ;;  %v13564_v14 = vld [vmem:[#allocation6 + $0x968] ss:$16 sps:$4 sm:$0xff]  }
 0x3e3   :  { %9449 = vmatprep.subr.bf16.mxu0 %v13524_v21  ;;  %9486 = vmatprep.subr.bf16.mxu1 %v13527_v15  ;;  %v13567_v41 = vld [vmem:[#allocation6 + $0xba8] ss:$16 sps:$4 sm:$0xff]   ;;  %v13572_v21 = vld [vmem:[#allocation6 + $0x94c] ss:$16 sps:$4 sm:$0xff]  }
 0x3e4   :  { %v13575_v15 = vld [vmem:[#allocation6 + $0xb8c] ss:$16 sps:$4 sm:$0xff]  }
 0x3e6   :  { %9450 = vmatpush1.bf16.msra.mxu0 %v13522_v20  ;;  %9487 = vmatpush1.bf16.msra.mxu1 %v13525_v26  ;;  %v13570_v20 = vld [vmem:[#allocation6 + $0x948] ss:$16 sps:$4 sm:$0xff]  }
 0x3e7   :  { %9451 = vmatprep.subr.bf16.mxu0 %v13530_v39  ;;  %9488 = vmatprep.subr.bf16.mxu1 %v13533_v40  ;;  %v13573_v26 = vld [vmem:[#allocation6 + $0xb88] ss:$16 sps:$4 sm:$0xff]   ;;  %v13578_v39 = vld [vmem:[#allocation6 + $0x92c] ss:$16 sps:$4 sm:$0xff]  }
 0x3e8   :  { %v13581_v40 = vld [vmem:[#allocation6 + $0xb6c] ss:$16 sps:$4 sm:$0xff]  }
 0x3ea   :  { %9452 = vmatpush1.bf16.msra.mxu0 %v13528_v48  ;;  %9489 = vmatpush1.bf16.msra.mxu1 %v13531_v7  ;;  %v13576_v48 = vld [vmem:[#allocation6 + $0x928] ss:$16 sps:$4 sm:$0xff]  }
 0x3eb   :  { %9453 = vmatprep.subr.bf16.mxu0 %v13536_v62  ;;  %9490 = vmatprep.subr.bf16.mxu1 %v13539_v13  ;;  %v13579_v7 = vld [vmem:[#allocation6 + $0xb68] ss:$16 sps:$4 sm:$0xff]   ;;  %v13584_v62 = vld [vmem:[#allocation6 + $0x90c] ss:$16 sps:$4 sm:$0xff]  }
 0x3ec   :  { %v13587_v13 = vld [vmem:[#allocation6 + $0xb4c] ss:$16 sps:$4 sm:$0xff]  }
 0x3ee   :  { %9454 = vmatpush1.bf16.msra.mxu0 %v13534_v12  ;;  %9491 = vmatpush1.bf16.msra.mxu1 %v13537_v37  ;;  %v13582_v12 = vld [vmem:[#allocation6 + $0x908] ss:$16 sps:$4 sm:$0xff]  }
 0x3ef   :  { %9455 = vmatprep.subr.bf16.mxu0 %v13542_v1  ;;  %9492 = vmatprep.subr.bf16.mxu1 %v13545_v9  ;;  %v13585_v37 = vld [vmem:[#allocation6 + $0xb48] ss:$16 sps:$4 sm:$0xff]   ;;  %v13590_v1 = vld [vmem:[#allocation6 + $0xb2c] ss:$16 sps:$4 sm:$0xff]  }
 0x3f0   :  { %v13593_v9 = vld [vmem:[#allocation6 + $0xcec] ss:$16 sps:$4 sm:$0xff]  }
 0x3f2   :  { %9456 = vmatpush2.bf16.msra.mxu0 %v13540_v50  ;;  %9493 = vmatpush1.bf16.msra.mxu1 %v13543_v2  ;;  %v13588_v50 = vld [vmem:[#allocation6 + $0xb28] ss:$16 sps:$4 sm:$0xff]  }
 0x3f3   :  { %9457 = vmatprep.subr.bf16.mxu0 %v13548_v57  ;;  %9494 = vmatprep.subr.bf16.mxu1 %v13551_v28  ;;  %v13591_v2 = vld [vmem:[#allocation6 + $0xce8] ss:$16 sps:$4 sm:$0xff]   ;;  %v13596_v57 = vld [vmem:[#allocation6 + $0xb0c] ss:$16 sps:$4 sm:$0xff]  }
 0x3f4   :  { %v13599_v28 = vld [vmem:[#allocation6 + $0xccc] ss:$16 sps:$4 sm:$0xff]  }
 0x3f6   :  { %9458 = vmatpush2.bf16.msra.mxu0 %v13546_v22  ;;  %9495 = vmatpush1.bf16.msra.mxu1 %v13549_v61 }
 0x3f7   :  { %9459 = vmatprep.subr.bf16.mxu0 %v13554_v0  ;;  %9496 = vmatprep.subr.bf16.mxu1 %v13557_v53  ;;  %v13594_v0 = vld [vmem:[#allocation6 + $0xb08] ss:$16 sps:$4 sm:$0xff]  }
 0x3f8   :  { %v13597_v53 = vld [vmem:[#allocation6 + $0xcc8] ss:$16 sps:$4 sm:$0xff]  }
 0x3fa   :  { %9460 = vmatpush2.bf16.msra.mxu0 %v13552_v19  ;;  %9497 = vmatpush2.bf16.msra.mxu1 %v13555_v55  ;;  %v13602_v55 = vld [vmem:[#allocation6 + $0xcac] ss:$16 sps:$4 sm:$0xff]  }
 0x3fb   :  { %9461 = vmatprep.subr.bf16.mxu0 %v13560_v46  ;;  %9498 = vmatprep.subr.bf16.mxu1 %v13563_v27  ;;  %v13605_v46 = vld [vmem:[#allocation6 + $0xeec] ss:$16 sps:$4 sm:$0xff]  }
 0x3fe   :  { %9462 = vmatpush2.bf16.msra.mxu0 %v13558_v56  ;;  %9499 = vmatpush2.bf16.msra.mxu1 %v13561_v33  ;;  %v13600_v33 = vld [vmem:[#allocation6 + $0xca8] ss:$16 sps:$4 sm:$0xff]  }
 0x3ff   :  { %9463 = vmatprep.subr.bf16.mxu0 %v13566_v34  ;;  %9500 = vmatprep.subr.bf16.mxu1 %v13569_v60  ;;  %v13611_v60 = vld [vmem:[#allocation6 + $0xecc] ss:$16 sps:$4 sm:$0xff]  }
 0x402   :  { %9464 = vmatpush2.bf16.msra.mxu0 %v13564_v14  ;;  %9501 = vmatpush2.bf16.msra.mxu1 %v13567_v41  ;;  %v13606_v41 = vld [vmem:[#allocation6 + $0xc88] ss:$16 sps:$4 sm:$0xff]  }
 0x403   :  { %9465 = vmatprep.subr.bf16.mxu0 %v13572_v21  ;;  %9502 = vmatprep.subr.bf16.mxu1 %v13575_v15  ;;  %v13614_v15 = vld [vmem:[#allocation6 + $0xc6c] ss:$16 sps:$4 sm:$0xff]  }
 0x406   :  { %9466 = vmatpush2.bf16.msra.mxu0 %v13570_v20  ;;  %9503 = vmatpush2.bf16.msra.mxu1 %v13573_v26  ;;  %v13617_v20 = vld [vmem:[#allocation6 + $0xeac] ss:$16 sps:$4 sm:$0xff]  }
 0x407   :  { %9467 = vmatprep.subr.bf16.mxu0 %v13578_v39  ;;  %9504 = vmatprep.subr.bf16.mxu1 %v13581_v40  ;;  %v13612_v40 = vld [vmem:[#allocation6 + $0xc68] ss:$16 sps:$4 sm:$0xff]  }
 0x40a   :  { %9468 = vmatpush2.bf16.msra.mxu0 %v13576_v48  ;;  %9505 = vmatpush2.bf16.msra.mxu1 %v13579_v7  ;;  %v13620_v7 = vld [vmem:[#allocation6 + $0xc4c] ss:$16 sps:$4 sm:$0xff]  }
 0x40b   :  { %9469 = vmatprep.subr.bf16.mxu0 %v13584_v62  ;;  %9506 = vmatprep.subr.bf16.mxu1 %v13587_v13  ;;  %v13623_v62 = vld [vmem:[#allocation6 + $0xe8c] ss:$16 sps:$4 sm:$0xff]   ;;  %v13621_v13 = vld [vmem:[#allocation6 + $0xe88] ss:$16 sps:$4 sm:$0xff]  }
 0x40e   :  { %9470 = vmatpush2.bf16.msra.mxu0 %v13582_v12  ;;  %9507 = vmatpush2.bf16.msra.mxu1 %v13585_v37  ;;  %v13626_v12 = vld [vmem:[#allocation6 + $0xc2c] ss:$16 sps:$4 sm:$0xff]  }
 0x40f   :  { %9508 = vmatprep.subr.bf16.mxu1 %v13590_v1  ;;  %9521 = vmatprep.subr.bf16.mxu0 %v13593_v9  ;;  %v13629_v37 = vld [vmem:[#allocation6 + $0xe6c] ss:$16 sps:$4 sm:$0xff]   ;;  %v13624_v1 = vld [vmem:[#allocation6 + $0xc28] ss:$16 sps:$4 sm:$0xff]  }
 0x410   :  { %v13627_v9 = vld [vmem:[#allocation6 + $0xe68] ss:$16 sps:$4 sm:$0xff]  }
 0x411   :  { %v9227_v22 = vpop.f32.mrf.mxu0  ;;  %9472 = vmatmul.mubr.bf16.vlgmr.msra.gmra.mxu0 %v14905_v49  ;;  %v13603_v49 = vld [vmem:[#allocation6 + $0xee8] ss:$16 sps:$4 sm:$0xff]  }
 0x412   :  { %v9228_v61 = vadd.f32 %v9227_v22, %v15084_v47  ;;  %9509 = vmatpush2.bf16.msra.mxu1 %v13588_v50  ;;  %9522 = vmatpush1.bf16.msra.mxu0 %v13591_v2  ;;  %v13608_v47 = vld [vmem:[#allocation6 + $0xc8c] ss:$16 sps:$4 sm:$0xff]  }
 0x413   :  { %9553 = vmatprep.mubr.bf16.mxu0 %v14907_v32  ;;  %v9229_v19 = vpop.f32.mrf.mxu0  ;;  %9510 = vmatprep.subr.bf16.mxu1 %v13596_v57  ;;  %v13632_v50 = vld [vmem:[#allocation6 + $0xc0c] ss:$16 sps:$4 sm:$0xff]   ;;  %v13630_v57 = vld [vmem:[#allocation6 + $0xc08] ss:$16 sps:$4 sm:$0xff]  }
 0x414   :  { %v9230_v27 = vadd.f32 %v9229_v19, %v15087_v63  ;;  %9523 = vmatprep.subr.bf16.mxu0 %v13599_v28  ;;  %v13609_v63 = vld [vmem:[#allocation6 + $0xec8] ss:$16 sps:$4 sm:$0xff]   ;;  %v13635_v2 = vld [vmem:[#allocation6 + $0xe4c] ss:$16 sps:$4 sm:$0xff]  }
 0x415   :  { %v9231_v56 = vpop.f32.mrf.mxu0  ;;  %v13633_v28 = vld [vmem:[#allocation6 + $0xe48] ss:$16 sps:$4 sm:$0xff]   ;;  %v13638_v22 = vld [vmem:[#allocation6 + $0xdec] ss:$16 sps:$4 sm:$0xff]  }
 0x416   :  { %9511 = vmatpush2.bf16.msra.mxu1 %v13594_v0  ;;  %9524 = vmatpush1.bf16.msra.mxu0 %v13597_v53  ;;  %v13636_v0 = vld [vmem:[#allocation6 + $0xde8] ss:$16 sps:$4 sm:$0xff]   ;;  %v13644_v19 = vld [vmem:[#allocation6 + $0xdcc] ss:$16 sps:$4 sm:$0xff]  }
 0x417   :  { %v9232_v34 = vpop.f32.mrf.mxu0  ;;  %9525 = vmatprep.subr.bf16.mxu0 %v13602_v55  ;;  %9562 = vmatprep.subr.bf16.mxu1 %v13605_v46  ;;  %v13639_v53 = vld [vmem:[#allocation6 + $0xe28] ss:$16 sps:$4 sm:$0xff]   ;;  %v13647_v55 = vld [vmem:[#allocation6 + $0xe0c] ss:$16 sps:$4 sm:$0xff]  }
 0x418   :  { %v13642_v46 = vld [vmem:[#allocation6 + $0xdc8] ss:$16 sps:$4 sm:$0xff]   ;;  %v13650_v56 = vld [vmem:[#allocation6 + $0xdac] ss:$16 sps:$4 sm:$0xff]  }
 0x419   :  { %v9268_v14 = vpop.f32.mrf.mxu1  ;;  %9513 = vmatmul.mubr.bf16.vlgmr.msra.gmra.mxu1 %v14913_v38  ;;  %v13615_v38 = vld [vmem:[#allocation6 + $0xea8] ss:$16 sps:$4 sm:$0xff]  }
 0x41a   :  { %v15094_v32 = vadd.f32 %v9268_v14, %v9228_v61  ;;  %9526 = vmatpush1.bf16.msra.mxu0 %v13600_v33  ;;  %9563 = vmatpush1.bf16.msra.mxu1 %v13603_v49  ;;  %v13641_v61 = vld [vmem:[#allocation6 + $0xe2c] ss:$16 sps:$4 sm:$0xff]   ;;  %v13648_v49 = vld [vmem:[#allocation6 + $0xda8] ss:$16 sps:$4 sm:$0xff]  }
 0x41b   :  { %9594 = vmatprep.mubr.bf16.mxu1 %v14915_v17  ;;  %v9270_v21 = vpop.f32.mrf.mxu1  ;;  %9527 = vmatprep.subr.bf16.mxu0 %v13608_v47  ;;  %v13618_v17 = vld [vmem:[#allocation6 + $0xc48] ss:$16 sps:$4 sm:$0xff]   ;;  %v13653_v33 = vld [vmem:[#allocation6 + $0xfec] ss:$16 sps:$4 sm:$0xff]  }
 0x41c   :  { %v15097_v26 = vadd.f32 %v9270_v21, %v9230_v27  ;;  %9564 = vmatprep.subr.bf16.mxu1 %v13611_v60  ;;  %v13645_v27 = vld [vmem:[#allocation6 + $0xe08] ss:$16 sps:$4 sm:$0xff]   ;;  %v13656_v47 = vld [vmem:[#allocation6 + $0xd8c] ss:$16 sps:$4 sm:$0xff]  }
 0x41d   :  { %v9272_v39 = vpop.f32.mrf.mxu1  ;;  %v13651_v34 = vld [vmem:[#allocation6 + $0xfe8] ss:$16 sps:$4 sm:$0xff]   ;;  %v13659_v60 = vld [vmem:[#allocation6 + $0xfcc] ss:$16 sps:$4 sm:$0xff]  }
 0x41e   :  { %9528 = vmatpush1.bf16.msra.mxu0 %v13606_v41  ;;  %9565 = vmatpush1.bf16.msra.mxu1 %v13609_v63  ;;  %v13654_v14 = vld [vmem:[#allocation6 + $0xd88] ss:$16 sps:$4 sm:$0xff]   ;;  %v13662_v63 = vld [vmem:[#allocation6 + $0xd6c] ss:$16 sps:$4 sm:$0xff]  }
 0x41f   :  { %v9273_v48 = vpop.f32.mrf.mxu1  ;;  %9529 = vmatprep.subr.bf16.mxu0 %v13614_v15  ;;  %9566 = vmatprep.subr.bf16.mxu1 %v13617_v20  ;;  %v13657_v41 = vld [vmem:[#allocation6 + $0xfc8] ss:$16 sps:$4 sm:$0xff]   ;;  %v13665_v21 = vld [vmem:[#allocation6 + $0xfac] ss:$16 sps:$4 sm:$0xff]  }
 0x420   :  { %v13660_v15 = vld [vmem:[#allocation6 + $0xd68] ss:$16 sps:$4 sm:$0xff]   ;;  %v13668_v39 = vld [vmem:[#allocation6 + $0xd4c] ss:$16 sps:$4 sm:$0xff]  }
 0x421   :  { %v13663_v20 = vld [vmem:[#allocation6 + $0xfa8] ss:$16 sps:$4 sm:$0xff]  }
 0x422   :  { %9530 = vmatpush1.bf16.msra.mxu0 %v13612_v40  ;;  %9567 = vmatpush1.bf16.msra.mxu1 %v13615_v38  ;;  %v13671_v40 = vld [vmem:[#allocation6 + $0xf8c] ss:$16 sps:$4 sm:$0xff]   ;;  %v13666_v38 = vld [vmem:[#allocation6 + $0xd48] ss:$16 sps:$4 sm:$0xff]  }
 0x423   :  { %9531 = vmatprep.subr.bf16.mxu0 %v13620_v7  ;;  %9568 = vmatprep.subr.bf16.mxu1 %v13623_v62  ;;  %v13669_v48 = vld [vmem:[#allocation6 + $0xf88] ss:$16 sps:$4 sm:$0xff]   ;;  %v13674_v7 = vld [vmem:[#allocation6 + $0xd2c] ss:$16 sps:$4 sm:$0xff]  }
 0x424   :  { %v13677_v62 = vld [vmem:[#allocation6 + $0xf6c] ss:$16 sps:$4 sm:$0xff]  }
 0x426   :  { %9532 = vmatpush1.bf16.msra.mxu0 %v13618_v17  ;;  %9569 = vmatpush1.bf16.msra.mxu1 %v13621_v13  ;;  %v13672_v17 = vld [vmem:[#allocation6 + $0xd28] ss:$16 sps:$4 sm:$0xff]  }
 0x427   :  { %9533 = vmatprep.subr.bf16.mxu0 %v13626_v12  ;;  %9570 = vmatprep.subr.bf16.mxu1 %v13629_v37  ;;  %v13675_v13 = vld [vmem:[#allocation6 + $0xf68] ss:$16 sps:$4 sm:$0xff]   ;;  %v13680_v12 = vld [vmem:[#allocation6 + $0xd0c] ss:$16 sps:$4 sm:$0xff]  }
 0x428   :  { %v13683_v37 = vld [vmem:[#allocation6 + $0xf4c] ss:$16 sps:$4 sm:$0xff]  }
 0x42a   :  { %9534 = vmatpush1.bf16.msra.mxu0 %v13624_v1  ;;  %9571 = vmatpush1.bf16.msra.mxu1 %v13627_v9  ;;  %v13678_v1 = vld [vmem:[#allocation6 + $0xd08] ss:$16 sps:$4 sm:$0xff]  }
 0x42b   :  { %9535 = vmatprep.subr.bf16.mxu0 %v13632_v50  ;;  %9572 = vmatprep.subr.bf16.mxu1 %v13635_v2  ;;  %v13681_v9 = vld [vmem:[#allocation6 + $0xf48] ss:$16 sps:$4 sm:$0xff]   ;;  %v13686_v50 = vld [vmem:[#allocation6 + $0xf2c] ss:$16 sps:$4 sm:$0xff]  }
 0x42c   :  { %v13689_v2 = vld [vmem:[#allocation6 + $0x10ec] ss:$16 sps:$4 sm:$0xff]  }
 0x42e   :  { %9536 = vmatpush1.bf16.msra.mxu0 %v13630_v57  ;;  %9573 = vmatpush1.bf16.msra.mxu1 %v13633_v28  ;;  %v13684_v57 = vld [vmem:[#allocation6 + $0xf28] ss:$16 sps:$4 sm:$0xff]  }
 0x42f   :  { %9537 = vmatprep.subr.bf16.mxu0 %v13638_v22  ;;  %9574 = vmatprep.subr.bf16.mxu1 %v13641_v61  ;;  %v13687_v28 = vld [vmem:[#allocation6 + $0x10e8] ss:$16 sps:$4 sm:$0xff]   ;;  %v13692_v22 = vld [vmem:[#allocation6 + $0xf0c] ss:$16 sps:$4 sm:$0xff]  }
 0x430   :  { %v13695_v61 = vld [vmem:[#allocation6 + $0x10cc] ss:$16 sps:$4 sm:$0xff]  }
 0x432   :  { %9538 = vmatpush2.bf16.msra.mxu0 %v13636_v0  ;;  %9575 = vmatpush1.bf16.msra.mxu1 %v13639_v53  ;;  %v13690_v53 = vld [vmem:[#allocation6 + $0xf08] ss:$16 sps:$4 sm:$0xff]  }
 0x433   :  { %9539 = vmatprep.subr.bf16.mxu0 %v13644_v19  ;;  %9576 = vmatprep.subr.bf16.mxu1 %v13647_v55  ;;  %v13693_v19 = vld [vmem:[#allocation6 + $0x10c8] ss:$16 sps:$4 sm:$0xff]  }
 0x436   :  { %9540 = vmatpush2.bf16.msra.mxu0 %v13642_v46  ;;  %9577 = vmatpush1.bf16.msra.mxu1 %v13645_v27  ;;  %v13698_v46 = vld [vmem:[#allocation6 + $0x10ac] ss:$16 sps:$4 sm:$0xff]  }
 0x437   :  { %9541 = vmatprep.subr.bf16.mxu0 %v13650_v56  ;;  %9578 = vmatprep.subr.bf16.mxu1 %v13653_v33  ;;  %v13701_v27 = vld [vmem:[#allocation6 + $0x12ec] ss:$16 sps:$4 sm:$0xff]   ;;  %v14334_v56 = vld [vmem:[#allocation7] sm:$0xf] }
 0x438   :  { %v2768_v33 = vrot.slane %v14334_v56, %v14741_v29  ;;  %v13702_v29 = vld [vmem:[#allocation6 + $0x1088] ss:$16 sps:$4 sm:$0xff]  }
 0x43a   :  { %9542 = vmatpush2.bf16.msra.mxu0 %v13648_v49  ;;  %9579 = vmatpush2.bf16.msra.mxu1 %v13651_v34  ;;  %v2772_v34 = vrot.slane %v14334_v56, %v14744_v31  ;;  %v13705_v31 = vld [vmem:[#allocation6 + $0x12c8] ss:$16 sps:$4 sm:$0xff]  }
 0x43b   :  { %9543 = vmatprep.subr.bf16.mxu0 %v13656_v47  ;;  %9580 = vmatprep.subr.bf16.mxu1 %v13659_v60  ;;  %v13699_v47 = vld [vmem:[#allocation6 + $0x12e8] ss:$16 sps:$4 sm:$0xff]  }
 0x43c   :  { %v13741_v56 = vld [vmem:[#allocation6 + $0x1208] ss:$16 sps:$4 sm:$0xff]  }
 0x43e   :  { %9544 = vmatpush2.bf16.msra.mxu0 %v13654_v14  ;;  %9581 = vmatpush2.bf16.msra.mxu1 %v13657_v41  ;;  %v13704_v14 = vld [vmem:[#allocation6 + $0x108c] ss:$16 sps:$4 sm:$0xff]  }
 0x43f   :  { %9545 = vmatprep.subr.bf16.mxu0 %v13662_v63  ;;  %9582 = vmatprep.subr.bf16.mxu1 %v13665_v21  ;;  %v13707_v41 = vld [vmem:[#allocation6 + $0x12cc] ss:$16 sps:$4 sm:$0xff]  }
 0x442   :  { %9546 = vmatpush2.bf16.msra.mxu0 %v13660_v15  ;;  %9583 = vmatpush2.bf16.msra.mxu1 %v13663_v20 }
 0x443   :  { %9547 = vmatprep.subr.bf16.mxu0 %v13668_v39  ;;  %9584 = vmatprep.subr.bf16.mxu1 %v13671_v40  ;;  %v13710_v39 = vld [vmem:[#allocation6 + $0x106c] ss:$16 sps:$4 sm:$0xff]  }
 0x444   :  { %v13713_v40 = vld [vmem:[#allocation6 + $0x12ac] ss:$16 sps:$4 sm:$0xff]  }
 0x446   :  { %9548 = vmatpush2.bf16.msra.mxu0 %v13666_v38  ;;  %9585 = vmatpush2.bf16.msra.mxu1 %v13669_v48 }
 0x447   :  { %9549 = vmatprep.subr.bf16.mxu0 %v13674_v7  ;;  %9586 = vmatprep.subr.bf16.mxu1 %v13677_v62  ;;  %v13711_v7 = vld [vmem:[#allocation6 + $0x12a8] ss:$16 sps:$4 sm:$0xff]  }
 0x44a   :  { %9550 = vmatpush2.bf16.msra.mxu0 %v13672_v17  ;;  %9587 = vmatpush2.bf16.msra.mxu1 %v13675_v13  ;;  %v13716_v17 = vld [vmem:[#allocation6 + $0x104c] ss:$16 sps:$4 sm:$0xff]  }
 0x44b   :  { %9551 = vmatprep.subr.bf16.mxu0 %v13680_v12  ;;  %9588 = vmatprep.subr.bf16.mxu1 %v13683_v37  ;;  %v13719_v13 = vld [vmem:[#allocation6 + $0x128c] ss:$16 sps:$4 sm:$0xff]   ;;  %v13717_v12 = vld [vmem:[#allocation6 + $0x1288] ss:$16 sps:$4 sm:$0xff]  }
 0x44c   :  { %v13722_v37 = vld [vmem:[#allocation6 + $0x102c] ss:$16 sps:$4 sm:$0xff]  }
 0x44e   :  { %9552 = vmatpush2.bf16.msra.mxu0 %v13678_v1  ;;  %9589 = vmatpush2.bf16.msra.mxu1 %v13681_v9  ;;  %v13725_v1 = vld [vmem:[#allocation6 + $0x126c] ss:$16 sps:$4 sm:$0xff]   ;;  %v13720_v9 = vld [vmem:[#allocation6 + $0x1028] ss:$16 sps:$4 sm:$0xff]  }
 0x44f   :  { %9590 = vmatprep.subr.bf16.mxu1 %v13686_v50  ;;  %9603 = vmatprep.subr.bf16.mxu0 %v13689_v2  ;;  %v13723_v50 = vld [vmem:[#allocation6 + $0x1268] ss:$16 sps:$4 sm:$0xff]   ;;  %v13728_v2 = vld [vmem:[#allocation6 + $0x100c] ss:$16 sps:$4 sm:$0xff]  }
 0x451   :  { %v9309_v0 = vpop.f32.mrf.mxu0  ;;  %9554 = vmatmul.mubr.bf16.vlgmr.msra.gmra.mxu0 %v14927_v52  ;;  %v13696_v52 = vld [vmem:[#allocation6 + $0x10a8] ss:$16 sps:$4 sm:$0xff]  }
 0x452   :  { %9591 = vmatpush2.bf16.msra.mxu1 %v13684_v57  ;;  %9604 = vmatpush1.bf16.msra.mxu0 %v13687_v28  ;;  %v13731_v57 = vld [vmem:[#allocation6 + $0x124c] ss:$16 sps:$4 sm:$0xff]   ;;  %v13726_v28 = vld [vmem:[#allocation6 + $0x1008] ss:$16 sps:$4 sm:$0xff]  }
 0x453   :  { %9635 = vmatprep.mubr.bf16.mxu0 %v14929_v35  ;;  %v9311_v55 = vpop.f32.mrf.mxu0  ;;  %9592 = vmatprep.subr.bf16.mxu1 %v13692_v22  ;;  %v9310_v35 = vadd.f32 %v9309_v0, %v2768_v33  ;;  %v13729_v22 = vld [vmem:[#allocation6 + $0x1248] ss:$16 sps:$4 sm:$0xff]   ;;  %v13737_v0 = vld [vmem:[#allocation6 + $0x122c] ss:$16 sps:$4 sm:$0xff]  }
 0x454   :  { %9605 = vmatprep.subr.bf16.mxu0 %v13695_v61  ;;  %v9312_v21 = vadd.f32 %v9311_v55, %v2772_v34  ;;  %v13734_v61 = vld [vmem:[#allocation6 + $0x11ec] ss:$16 sps:$4 sm:$0xff]   ;;  %v13744_v34 = vld [vmem:[#allocation6 + $0x11a8] ss:$16 sps:$4 sm:$0xff]  }
 0x455   :  { %v9313_v49 = vpop.f32.mrf.mxu0  ;;  %v13740_v55 = vld [vmem:[#allocation6 + $0x11cc] ss:$16 sps:$4 sm:$0xff]  }
 0x456   :  { %9593 = vmatpush2.bf16.msra.mxu1 %v13690_v53  ;;  %9606 = vmatpush1.bf16.msra.mxu0 %v13693_v19  ;;  %v13732_v53 = vld [vmem:[#allocation6 + $0x11e8] ss:$16 sps:$4 sm:$0xff]   ;;  %v13746_v33 = vld [vmem:[#allocation6 + $0x11ac] ss:$16 sps:$4 sm:$0xff]  }
 0x457   :  { %v9314_v60 = vpop.f32.mrf.mxu0  ;;  %9607 = vmatprep.subr.bf16.mxu0 %v13698_v46  ;;  %9644 = vmatprep.subr.bf16.mxu1 %v13701_v27  ;;  %v13735_v19 = vld [vmem:[#allocation6 + $0x1228] ss:$16 sps:$4 sm:$0xff]   ;;  %v13743_v46 = vld [vmem:[#allocation6 + $0x120c] ss:$16 sps:$4 sm:$0xff]  }
 0x458   :  { %v13738_v27 = vld [vmem:[#allocation6 + $0x11c8] ss:$16 sps:$4 sm:$0xff]   ;;  %v13749_v49 = vld [vmem:[#allocation6 + $0x13ec] ss:$16 sps:$4 sm:$0xff]  }
 0x459   :  { %v9350_v63 = vpop.f32.mrf.mxu1  ;;  %9595 = vmatmul.mubr.bf16.vlgmr.msra.gmra.mxu1 %v14937_v58  ;;  %v13708_v58 = vld [vmem:[#allocation6 + $0x1068] ss:$16 sps:$4 sm:$0xff]   ;;  %v13755_v60 = vld [vmem:[#allocation6 + $0x13cc] ss:$16 sps:$4 sm:$0xff]  }
 0x45a   :  { %v15104_v15 = vadd.f32 %v9350_v63, %v9310_v35  ;;  %9608 = vmatpush1.bf16.msra.mxu0 %v13696_v52  ;;  %9645 = vmatpush1.bf16.msra.mxu1 %v13699_v47  ;;  %v13747_v52 = vld [vmem:[#allocation6 + $0x13e8] ss:$16 sps:$4 sm:$0xff]   ;;  %v13752_v47 = vld [vmem:[#allocation6 + $0x118c] ss:$16 sps:$4 sm:$0xff]  }
 0x45b   :  { %9676 = vmatprep.mubr.bf16.mxu1 %v14939_v6  ;;  %v9352_v20 = vpop.f32.mrf.mxu1  ;;  %9609 = vmatprep.subr.bf16.mxu0 %v13704_v14  ;;  %v13714_v6 = vld [vmem:[#allocation6 + $0x1048] ss:$16 sps:$4 sm:$0xff]   ;;  %v13761_v63 = vld [vmem:[#allocation6 + $0x13ac] ss:$16 sps:$4 sm:$0xff]  }
 0x45c   :  { %v15107_v38 = vadd.f32 %v9352_v20, %v9312_v21  ;;  %9646 = vmatprep.subr.bf16.mxu1 %v13707_v41  ;;  %v13750_v14 = vld [vmem:[#allocation6 + $0x1188] ss:$16 sps:$4 sm:$0xff]   ;;  %v13758_v41 = vld [vmem:[#allocation6 + $0x116c] ss:$16 sps:$4 sm:$0xff]  }
 0x45d   :  { %v9354_v48 = vpop.f32.mrf.mxu1  ;;  %v13753_v35 = vld [vmem:[#allocation6 + $0x13c8] ss:$16 sps:$4 sm:$0xff]   ;;  %v13767_v20 = vld [vmem:[#allocation6 + $0x138c] ss:$16 sps:$4 sm:$0xff]  }
 0x45e   :  { %9610 = vmatpush1.bf16.msra.mxu0 %v13702_v29  ;;  %9647 = vmatpush1.bf16.msra.mxu1 %v13705_v31  ;;  %v13756_v21 = vld [vmem:[#allocation6 + $0x1168] ss:$16 sps:$4 sm:$0xff]   ;;  %v13764_v31 = vld [vmem:[#allocation6 + $0x114c] ss:$16 sps:$4 sm:$0xff]  }
 0x45f   :  { %v9355_v62 = vpop.f32.mrf.mxu1  ;;  %9611 = vmatprep.subr.bf16.mxu0 %v13710_v39  ;;  %9648 = vmatprep.subr.bf16.mxu1 %v13713_v40  ;;  %v13759_v29 = vld [vmem:[#allocation6 + $0x13a8] ss:$16 sps:$4 sm:$0xff]   ;;  %v13770_v48 = vld [vmem:[#allocation6 + $0x112c] ss:$16 sps:$4 sm:$0xff]  }
 0x460   :  { %v13762_v39 = vld [vmem:[#allocation6 + $0x1148] ss:$16 sps:$4 sm:$0xff]  }
 0x461   :  { %v13765_v40 = vld [vmem:[#allocation6 + $0x1388] ss:$16 sps:$4 sm:$0xff]  }
 0x462   :  { %9612 = vmatpush1.bf16.msra.mxu0 %v13708_v58  ;;  %9649 = vmatpush1.bf16.msra.mxu1 %v13711_v7  ;;  %v13773_v58 = vld [vmem:[#allocation6 + $0x136c] ss:$16 sps:$4 sm:$0xff]   ;;  %v13768_v7 = vld [vmem:[#allocation6 + $0x1128] ss:$16 sps:$4 sm:$0xff]  }
 0x463   :  { %9613 = vmatprep.subr.bf16.mxu0 %v13716_v17  ;;  %9650 = vmatprep.subr.bf16.mxu1 %v13719_v13  ;;  %v13771_v62 = vld [vmem:[#allocation6 + $0x1368] ss:$16 sps:$4 sm:$0xff]   ;;  %v13776_v17 = vld [vmem:[#allocation6 + $0x110c] ss:$16 sps:$4 sm:$0xff]  }
 0x464   :  { %v13779_v13 = vld [vmem:[#allocation6 + $0x134c] ss:$16 sps:$4 sm:$0xff]  }
 0x466   :  { %9614 = vmatpush1.bf16.msra.mxu0 %v13714_v6  ;;  %9651 = vmatpush1.bf16.msra.mxu1 %v13717_v12  ;;  %v13774_v6 = vld [vmem:[#allocation6 + $0x1108] ss:$16 sps:$4 sm:$0xff]  }
 0x467   :  { %9615 = vmatprep.subr.bf16.mxu0 %v13722_v37  ;;  %9652 = vmatprep.subr.bf16.mxu1 %v13725_v1  ;;  %v13777_v12 = vld [vmem:[#allocation6 + $0x1348] ss:$16 sps:$4 sm:$0xff]   ;;  %v13782_v37 = vld [vmem:[#allocation6 + $0x132c] ss:$16 sps:$4 sm:$0xff]  }
 0x468   :  { %v13785_v1 = vld [vmem:[#allocation6 + $0x14ec] ss:$16 sps:$4 sm:$0xff]  }
 0x46a   :  { %9616 = vmatpush1.bf16.msra.mxu0 %v13720_v9  ;;  %9653 = vmatpush1.bf16.msra.mxu1 %v13723_v50  ;;  %v13780_v9 = vld [vmem:[#allocation6 + $0x1328] ss:$16 sps:$4 sm:$0xff]  }
 0x46b   :  { %9617 = vmatprep.subr.bf16.mxu0 %v13728_v2  ;;  %9654 = vmatprep.subr.bf16.mxu1 %v13731_v57  ;;  %v13783_v50 = vld [vmem:[#allocation6 + $0x14e8] ss:$16 sps:$4 sm:$0xff]   ;;  %v13788_v2 = vld [vmem:[#allocation6 + $0x130c] ss:$16 sps:$4 sm:$0xff]  }
 0x46c   :  { %v13791_v57 = vld [vmem:[#allocation6 + $0x14cc] ss:$16 sps:$4 sm:$0xff]  }
 0x46e   :  { %9618 = vmatpush1.bf16.msra.mxu0 %v13726_v28  ;;  %9655 = vmatpush1.bf16.msra.mxu1 %v13729_v22 }
 0x46f   :  { %9619 = vmatprep.subr.bf16.mxu0 %v13734_v61  ;;  %9656 = vmatprep.subr.bf16.mxu1 %v13737_v0  ;;  %v13786_v61 = vld [vmem:[#allocation6 + $0x1308] ss:$16 sps:$4 sm:$0xff]  }
 0x470   :  { %v13789_v0 = vld [vmem:[#allocation6 + $0x14c8] ss:$16 sps:$4 sm:$0xff]  }
 0x472   :  { %9620 = vmatpush2.bf16.msra.mxu0 %v13732_v53  ;;  %9657 = vmatpush1.bf16.msra.mxu1 %v13735_v19  ;;  %v13794_v19 = vld [vmem:[#allocation6 + $0x14ac] ss:$16 sps:$4 sm:$0xff]  }
 0x473   :  { %9621 = vmatprep.subr.bf16.mxu0 %v13740_v55  ;;  %9658 = vmatprep.subr.bf16.mxu1 %v13743_v46  ;;  %v13797_v55 = vld [vmem:[#allocation6 + $0x16ec] ss:$16 sps:$4 sm:$0xff]  }
 0x476   :  { %9622 = vmatpush2.bf16.msra.mxu0 %v13738_v27  ;;  %9659 = vmatpush1.bf16.msra.mxu1 %v13741_v56  ;;  %v13792_v56 = vld [vmem:[#allocation6 + $0x14a8] ss:$16 sps:$4 sm:$0xff]  }
 0x477   :  { %9623 = vmatprep.subr.bf16.mxu0 %v13746_v33  ;;  %9660 = vmatprep.subr.bf16.mxu1 %v13749_v49  ;;  %v13803_v49 = vld [vmem:[#allocation6 + $0x16cc] ss:$16 sps:$4 sm:$0xff]  }
 0x47a   :  { %9624 = vmatpush2.bf16.msra.mxu0 %v13744_v34  ;;  %9661 = vmatpush2.bf16.msra.mxu1 %v13747_v52  ;;  %v13798_v52 = vld [vmem:[#allocation6 + $0x1488] ss:$16 sps:$4 sm:$0xff]  }
 0x47b   :  { %9625 = vmatprep.subr.bf16.mxu0 %v13752_v47  ;;  %9662 = vmatprep.subr.bf16.mxu1 %v13755_v60  ;;  %v13806_v60 = vld [vmem:[#allocation6 + $0x146c] ss:$16 sps:$4 sm:$0xff]  }
 0x47e   :  { %9626 = vmatpush2.bf16.msra.mxu0 %v13750_v14  ;;  %9663 = vmatpush2.bf16.msra.mxu1 %v13753_v35  ;;  %v13809_v14 = vld [vmem:[#allocation6 + $0x16ac] ss:$16 sps:$4 sm:$0xff]  }
 0x47f   :  { %9627 = vmatprep.subr.bf16.mxu0 %v13758_v41  ;;  %9664 = vmatprep.subr.bf16.mxu1 %v13761_v63  ;;  %v13804_v63 = vld [vmem:[#allocation6 + $0x1468] ss:$16 sps:$4 sm:$0xff]  }
 0x482   :  { %9628 = vmatpush2.bf16.msra.mxu0 %v13756_v21  ;;  %9665 = vmatpush2.bf16.msra.mxu1 %v13759_v29  ;;  %v13812_v29 = vld [vmem:[#allocation6 + $0x144c] ss:$16 sps:$4 sm:$0xff]  }
 0x483   :  { %9629 = vmatprep.subr.bf16.mxu0 %v13764_v31  ;;  %9666 = vmatprep.subr.bf16.mxu1 %v13767_v20  ;;  %v13815_v31 = vld [vmem:[#allocation6 + $0x168c] ss:$16 sps:$4 sm:$0xff]   ;;  %v13813_v20 = vld [vmem:[#allocation6 + $0x1688] ss:$16 sps:$4 sm:$0xff]  }
 0x486   :  { %9630 = vmatpush2.bf16.msra.mxu0 %v13762_v39  ;;  %9667 = vmatpush2.bf16.msra.mxu1 %v13765_v40  ;;  %v13818_v39 = vld [vmem:[#allocation6 + $0x142c] ss:$16 sps:$4 sm:$0xff]  }
 0x487   :  { %9631 = vmatprep.subr.bf16.mxu0 %v13770_v48  ;;  %9668 = vmatprep.subr.bf16.mxu1 %v13773_v58  ;;  %v13821_v40 = vld [vmem:[#allocation6 + $0x166c] ss:$16 sps:$4 sm:$0xff]   ;;  %v13816_v48 = vld [vmem:[#allocation6 + $0x1428] ss:$16 sps:$4 sm:$0xff]  }
 0x488   :  { %v13819_v58 = vld [vmem:[#allocation6 + $0x1668] ss:$16 sps:$4 sm:$0xff]  }
 0x48a   :  { %9632 = vmatpush2.bf16.msra.mxu0 %v13768_v7  ;;  %9669 = vmatpush2.bf16.msra.mxu1 %v13771_v62  ;;  %v13824_v7 = vld [vmem:[#allocation6 + $0x140c] ss:$16 sps:$4 sm:$0xff]  }
 0x48b   :  { %9633 = vmatprep.subr.bf16.mxu0 %v13776_v17  ;;  %9670 = vmatprep.subr.bf16.mxu1 %v13779_v13  ;;  %v13827_v62 = vld [vmem:[#allocation6 + $0x164c] ss:$16 sps:$4 sm:$0xff]   ;;  %v13822_v17 = vld [vmem:[#allocation6 + $0x1408] ss:$16 sps:$4 sm:$0xff]  }
 0x48c   :  { %v13825_v13 = vld [vmem:[#allocation6 + $0x1648] ss:$16 sps:$4 sm:$0xff]  }
 0x48e   :  { %9634 = vmatpush2.bf16.msra.mxu0 %v13774_v6  ;;  %9671 = vmatpush2.bf16.msra.mxu1 %v13777_v12  ;;  %v13830_v6 = vld [vmem:[#allocation6 + $0x15ec] ss:$16 sps:$4 sm:$0xff]  }
 0x48f   :  { %9672 = vmatprep.subr.bf16.mxu1 %v13782_v37  ;;  %9685 = vmatprep.subr.bf16.mxu0 %v13785_v1  ;;  %v13833_v12 = vld [vmem:[#allocation6 + $0x162c] ss:$16 sps:$4 sm:$0xff]   ;;  %v13828_v37 = vld [vmem:[#allocation6 + $0x15e8] ss:$16 sps:$4 sm:$0xff]  }
 0x490   :  { %v13831_v1 = vld [vmem:[#allocation6 + $0x1628] ss:$16 sps:$4 sm:$0xff]  }
 0x491   :  { %v9391_v28 = vpop.f32.mrf.mxu0  ;;  %9636 = vmatmul.mubr.bf16.vlgmr.msra.gmra.mxu0 %v14951_v3  ;;  %v13795_v3 = vld [vmem:[#allocation6 + $0x16e8] ss:$16 sps:$4 sm:$0xff]  }
 0x492   :  { %v9392_v22 = vadd.f32 %v9391_v28, %v15104_v15  ;;  %9673 = vmatpush2.bf16.msra.mxu1 %v13780_v9  ;;  %9686 = vmatpush1.bf16.msra.mxu0 %v13783_v50  ;;  %v13800_v15 = vld [vmem:[#allocation6 + $0x148c] ss:$16 sps:$4 sm:$0xff]  }
 0x493   :  { %9717 = vmatprep.mubr.bf16.mxu0 %v14953_v18  ;;  %v9393_v53 = vpop.f32.mrf.mxu0  ;;  %9674 = vmatprep.subr.bf16.mxu1 %v13788_v2  ;;  %v13836_v9 = vld [vmem:[#allocation6 + $0x15cc] ss:$16 sps:$4 sm:$0xff]   ;;  %v13834_v2 = vld [vmem:[#allocation6 + $0x15c8] ss:$16 sps:$4 sm:$0xff]  }
 0x494   :  { %v9394_v46 = vadd.f32 %v9393_v53, %v15107_v38  ;;  %9687 = vmatprep.subr.bf16.mxu0 %v13791_v57  ;;  %v13801_v38 = vld [vmem:[#allocation6 + $0x16c8] ss:$16 sps:$4 sm:$0xff]   ;;  %v13839_v50 = vld [vmem:[#allocation6 + $0x160c] ss:$16 sps:$4 sm:$0xff]  }
 0x495   :  { %v9395_v27 = vpop.f32.mrf.mxu0  ;;  %v13837_v57 = vld [vmem:[#allocation6 + $0x1608] ss:$16 sps:$4 sm:$0xff]   ;;  %v13842_v28 = vld [vmem:[#allocation6 + $0x15ac] ss:$16 sps:$4 sm:$0xff]  }
 0x496   :  { %9675 = vmatpush2.bf16.msra.mxu1 %v13786_v61  ;;  %9688 = vmatpush1.bf16.msra.mxu0 %v13789_v0  ;;  %v13840_v61 = vld [vmem:[#allocation6 + $0x15a8] ss:$16 sps:$4 sm:$0xff]   ;;  %v13848_v53 = vld [vmem:[#allocation6 + $0x158c] ss:$16 sps:$4 sm:$0xff]  }
 0x497   :  { %v9396_v33 = vpop.f32.mrf.mxu0  ;;  %9689 = vmatprep.subr.bf16.mxu0 %v13794_v19  ;;  %9726 = vmatprep.subr.bf16.mxu1 %v13797_v55  ;;  %v13843_v0 = vld [vmem:[#allocation6 + $0x17e8] ss:$16 sps:$4 sm:$0xff]   ;;  %v13851_v19 = vld [vmem:[#allocation6 + $0x17cc] ss:$16 sps:$4 sm:$0xff]  }
 0x498   :  { %v13846_v55 = vld [vmem:[#allocation6 + $0x1588] ss:$16 sps:$4 sm:$0xff]   ;;  %v13854_v27 = vld [vmem:[#allocation6 + $0x156c] ss:$16 sps:$4 sm:$0xff]  }
 0x499   :  { %v9432_v34 = vpop.f32.mrf.mxu1  ;;  %9677 = vmatmul.mubr.bf16.vlgmr.msra.gmra.mxu1 %v14961_v25  ;;  %v13807_v25 = vld [vmem:[#allocation6 + $0x16a8] ss:$16 sps:$4 sm:$0xff]  }
 0x49a   :  { %v15114_v18 = vadd.f32 %v9432_v34, %v9392_v22  ;;  %9690 = vmatpush1.bf16.msra.mxu0 %v13792_v56  ;;  %9727 = vmatpush1.bf16.msra.mxu1 %v13795_v3  ;;  %v13845_v22 = vld [vmem:[#allocation6 + $0x17ec] ss:$16 sps:$4 sm:$0xff]   ;;  %v13852_v3 = vld [vmem:[#allocation6 + $0x1568] ss:$16 sps:$4 sm:$0xff]  }
 0x49b   :  { %9758 = vmatprep.mubr.bf16.mxu1 %v14963_v54  ;;  %v9434_v47 = vpop.f32.mrf.mxu1  ;;  %9691 = vmatprep.subr.bf16.mxu0 %v13800_v15  ;;  %v13810_v54 = vld [vmem:[#allocation6 + $0x1448] ss:$16 sps:$4 sm:$0xff]   ;;  %v13857_v56 = vld [vmem:[#allocation6 + $0x17ac] ss:$16 sps:$4 sm:$0xff]  }
 0x49c   :  { %v15117_v35 = vadd.f32 %v9434_v47, %v9394_v46  ;;  %9728 = vmatprep.subr.bf16.mxu1 %v13803_v49  ;;  %v13849_v46 = vld [vmem:[#allocation6 + $0x17c8] ss:$16 sps:$4 sm:$0xff]   ;;  %v13860_v15 = vld [vmem:[#allocation6 + $0x154c] ss:$16 sps:$4 sm:$0xff]  }
 0x49d   :  { %v9436_v41 = vpop.f32.mrf.mxu1  ;;  %v13855_v33 = vld [vmem:[#allocation6 + $0x17a8] ss:$16 sps:$4 sm:$0xff]   ;;  %v13863_v49 = vld [vmem:[#allocation6 + $0x178c] ss:$16 sps:$4 sm:$0xff]  }
 0x49e   :  { %9692 = vmatpush1.bf16.msra.mxu0 %v13798_v52  ;;  %9729 = vmatpush1.bf16.msra.mxu1 %v13801_v38  ;;  %v13858_v34 = vld [vmem:[#allocation6 + $0x1548] ss:$16 sps:$4 sm:$0xff]   ;;  %v13866_v38 = vld [vmem:[#allocation6 + $0x152c] ss:$16 sps:$4 sm:$0xff]  }
 0x49f   :  { %v9437_v21 = vpop.f32.mrf.mxu1  ;;  %9693 = vmatprep.subr.bf16.mxu0 %v13806_v60  ;;  %9730 = vmatprep.subr.bf16.mxu1 %v13809_v14  ;;  %v13861_v52 = vld [vmem:[#allocation6 + $0x1788] ss:$16 sps:$4 sm:$0xff]   ;;  %v13869_v47 = vld [vmem:[#allocation6 + $0x176c] ss:$16 sps:$4 sm:$0xff]  }
 0x4a0   :  { %v13864_v60 = vld [vmem:[#allocation6 + $0x1528] ss:$16 sps:$4 sm:$0xff]   ;;  %v13872_v41 = vld [vmem:[#allocation6 + $0x150c] ss:$16 sps:$4 sm:$0xff]  }
 0x4a1   :  { %v13867_v14 = vld [vmem:[#allocation6 + $0x1768] ss:$16 sps:$4 sm:$0xff]  }
 0x4a2   :  { %9694 = vmatpush1.bf16.msra.mxu0 %v13804_v63  ;;  %9731 = vmatpush1.bf16.msra.mxu1 %v13807_v25  ;;  %v13875_v63 = vld [vmem:[#allocation6 + $0x174c] ss:$16 sps:$4 sm:$0xff]   ;;  %v13870_v25 = vld [vmem:[#allocation6 + $0x1508] ss:$16 sps:$4 sm:$0xff]  }
 0x4a3   :  { %9695 = vmatprep.subr.bf16.mxu0 %v13812_v29  ;;  %9732 = vmatprep.subr.bf16.mxu1 %v13815_v31  ;;  %v13873_v21 = vld [vmem:[#allocation6 + $0x1748] ss:$16 sps:$4 sm:$0xff]   ;;  %v13878_v29 = vld [vmem:[#allocation6 + $0x172c] ss:$16 sps:$4 sm:$0xff]  }
 0x4a4   :  { %v13881_v31 = vld [vmem:[#allocation6 + $0x18ec] ss:$16 sps:$4 sm:$0xff]  }
 0x4a6   :  { %9696 = vmatpush1.bf16.msra.mxu0 %v13810_v54  ;;  %9733 = vmatpush1.bf16.msra.mxu1 %v13813_v20  ;;  %v13876_v54 = vld [vmem:[#allocation6 + $0x1728] ss:$16 sps:$4 sm:$0xff]  }
 0x4a7   :  { %9697 = vmatprep.subr.bf16.mxu0 %v13818_v39  ;;  %9734 = vmatprep.subr.bf16.mxu1 %v13821_v40  ;;  %v13879_v20 = vld [vmem:[#allocation6 + $0x18e8] ss:$16 sps:$4 sm:$0xff]   ;;  %v13884_v39 = vld [vmem:[#allocation6 + $0x170c] ss:$16 sps:$4 sm:$0xff]  }
 0x4a8   :  { %v13887_v40 = vld [vmem:[#allocation6 + $0x18cc] ss:$16 sps:$4 sm:$0xff]  }
 0x4aa   :  { %9698 = vmatpush1.bf16.msra.mxu0 %v13816_v48  ;;  %9735 = vmatpush1.bf16.msra.mxu1 %v13819_v58 }
 0x4ab   :  { %9699 = vmatprep.subr.bf16.mxu0 %v13824_v7  ;;  %9736 = vmatprep.subr.bf16.mxu1 %v13827_v62  ;;  %v13882_v7 = vld [vmem:[#allocation6 + $0x1708] ss:$16 sps:$4 sm:$0xff]  }
 0x4ac   :  { %v13885_v62 = vld [vmem:[#allocation6 + $0x18c8] ss:$16 sps:$4 sm:$0xff]  }
 0x4ae   :  { %9700 = vmatpush1.bf16.msra.mxu0 %v13822_v17  ;;  %9737 = vmatpush1.bf16.msra.mxu1 %v13825_v13  ;;  %v13890_v13 = vld [vmem:[#allocation6 + $0x18ac] ss:$16 sps:$4 sm:$0xff]  }
 0x4af   :  { %9701 = vmatprep.subr.bf16.mxu0 %v13830_v6  ;;  %9738 = vmatprep.subr.bf16.mxu1 %v13833_v12  ;;  %v13893_v6 = vld [vmem:[#allocation6 + $0x1aec] ss:$16 sps:$4 sm:$0xff]  }
 0x4b2   :  { %9702 = vmatpush2.bf16.msra.mxu0 %v13828_v37  ;;  %9739 = vmatpush1.bf16.msra.mxu1 %v13831_v1  ;;  %v13888_v1 = vld [vmem:[#allocation6 + $0x18a8] ss:$16 sps:$4 sm:$0xff]  }
 0x4b3   :  { %9703 = vmatprep.subr.bf16.mxu0 %v13836_v9  ;;  %9740 = vmatprep.subr.bf16.mxu1 %v13839_v50  ;;  %v13899_v50 = vld [vmem:[#allocation6 + $0x1acc] ss:$16 sps:$4 sm:$0xff]  }
 0x4b6   :  { %9704 = vmatpush2.bf16.msra.mxu0 %v13834_v2  ;;  %9741 = vmatpush1.bf16.msra.mxu1 %v13837_v57  ;;  %v13894_v57 = vld [vmem:[#allocation6 + $0x1888] ss:$16 sps:$4 sm:$0xff]  }
 0x4b7   :  { %9705 = vmatprep.subr.bf16.mxu0 %v13842_v28  ;;  %9742 = vmatprep.subr.bf16.mxu1 %v13845_v22  ;;  %v13902_v22 = vld [vmem:[#allocation6 + $0x186c] ss:$16 sps:$4 sm:$0xff]  }
 0x4ba   :  { %9706 = vmatpush2.bf16.msra.mxu0 %v13840_v61  ;;  %9743 = vmatpush2.bf16.msra.mxu1 %v13843_v0  ;;  %v13905_v61 = vld [vmem:[#allocation6 + $0x1aac] ss:$16 sps:$4 sm:$0xff]  }
 0x4bb   :  { %9707 = vmatprep.subr.bf16.mxu0 %v13848_v53  ;;  %9744 = vmatprep.subr.bf16.mxu1 %v13851_v19  ;;  %v13900_v19 = vld [vmem:[#allocation6 + $0x1868] ss:$16 sps:$4 sm:$0xff]  }
 0x4be   :  { %9708 = vmatpush2.bf16.msra.mxu0 %v13846_v55  ;;  %9745 = vmatpush2.bf16.msra.mxu1 %v13849_v46  ;;  %v13908_v46 = vld [vmem:[#allocation6 + $0x184c] ss:$16 sps:$4 sm:$0xff]  }
 0x4bf   :  { %9709 = vmatprep.subr.bf16.mxu0 %v13854_v27  ;;  %9746 = vmatprep.subr.bf16.mxu1 %v13857_v56  ;;  %v13911_v27 = vld [vmem:[#allocation6 + $0x1a8c] ss:$16 sps:$4 sm:$0xff]   ;;  %v13909_v56 = vld [vmem:[#allocation6 + $0x1a88] ss:$16 sps:$4 sm:$0xff]  }
 0x4c2   :  { %9710 = vmatpush2.bf16.msra.mxu0 %v13852_v3  ;;  %9747 = vmatpush2.bf16.msra.mxu1 %v13855_v33  ;;  %v13914_v3 = vld [vmem:[#allocation6 + $0x182c] ss:$16 sps:$4 sm:$0xff]  }
 0x4c3   :  { %9711 = vmatprep.subr.bf16.mxu0 %v13860_v15  ;;  %9748 = vmatprep.subr.bf16.mxu1 %v13863_v49  ;;  %v13917_v33 = vld [vmem:[#allocation6 + $0x1a6c] ss:$16 sps:$4 sm:$0xff]   ;;  %v13912_v15 = vld [vmem:[#allocation6 + $0x1828] ss:$16 sps:$4 sm:$0xff]  }
 0x4c4   :  { %v13915_v49 = vld [vmem:[#allocation6 + $0x1a68] ss:$16 sps:$4 sm:$0xff]  }
 0x4c6   :  { %9712 = vmatpush2.bf16.msra.mxu0 %v13858_v34  ;;  %9749 = vmatpush2.bf16.msra.mxu1 %v13861_v52  ;;  %v13920_v34 = vld [vmem:[#allocation6 + $0x180c] ss:$16 sps:$4 sm:$0xff]  }
 0x4c7   :  { %9713 = vmatprep.subr.bf16.mxu0 %v13866_v38  ;;  %9750 = vmatprep.subr.bf16.mxu1 %v13869_v47  ;;  %v13923_v52 = vld [vmem:[#allocation6 + $0x1a4c] ss:$16 sps:$4 sm:$0xff]   ;;  %v13918_v38 = vld [vmem:[#allocation6 + $0x1808] ss:$16 sps:$4 sm:$0xff]  }
 0x4c8   :  { %v13921_v47 = vld [vmem:[#allocation6 + $0x1a48] ss:$16 sps:$4 sm:$0xff]  }
 0x4ca   :  { %9714 = vmatpush2.bf16.msra.mxu0 %v13864_v60  ;;  %9751 = vmatpush2.bf16.msra.mxu1 %v13867_v14  ;;  %v13926_v60 = vld [vmem:[#allocation6 + $0x19ec] ss:$16 sps:$4 sm:$0xff]  }
 0x4cb   :  { %9715 = vmatprep.subr.bf16.mxu0 %v13872_v41  ;;  %9752 = vmatprep.subr.bf16.mxu1 %v13875_v63  ;;  %v13929_v14 = vld [vmem:[#allocation6 + $0x1a2c] ss:$16 sps:$4 sm:$0xff]   ;;  %v13924_v41 = vld [vmem:[#allocation6 + $0x19e8] ss:$16 sps:$4 sm:$0xff]  }
 0x4cc   :  { %v13927_v63 = vld [vmem:[#allocation6 + $0x1a28] ss:$16 sps:$4 sm:$0xff]  }
 0x4ce   :  { %9716 = vmatpush2.bf16.msra.mxu0 %v13870_v25  ;;  %9753 = vmatpush2.bf16.msra.mxu1 %v13873_v21  ;;  %v13932_v25 = vld [vmem:[#allocation6 + $0x19cc] ss:$16 sps:$4 sm:$0xff]  }
 0x4cf   :  { %9754 = vmatprep.subr.bf16.mxu1 %v13878_v29  ;;  %9767 = vmatprep.subr.bf16.mxu0 %v13881_v31  ;;  %v13935_v21 = vld [vmem:[#allocation6 + $0x1a0c] ss:$16 sps:$4 sm:$0xff]   ;;  %v13930_v29 = vld [vmem:[#allocation6 + $0x19c8] ss:$16 sps:$4 sm:$0xff]  }
 0x4d0   :  { %v13933_v31 = vld [vmem:[#allocation6 + $0x1a08] ss:$16 sps:$4 sm:$0xff]  }
 0x4d1   :  { %v9473_v48 = vpop.f32.mrf.mxu0  ;;  %9718 = vmatmul.mubr.bf16.vlgmr.msra.gmra.mxu0 %v14979_v30  ;;  %v13891_v30 = vld [vmem:[#allocation6 + $0x1ae8] ss:$16 sps:$4 sm:$0xff]  }
 0x4d2   :  { %v9474_v58 = vadd.f32 %v9473_v48, %v15114_v18  ;;  %9755 = vmatpush2.bf16.msra.mxu1 %v13876_v54  ;;  %9768 = vmatpush1.bf16.msra.mxu0 %v13879_v20  ;;  %v13896_v18 = vld [vmem:[#allocation6 + $0x188c] ss:$16 sps:$4 sm:$0xff]  }
 0x4d3   :  { %9799 = vmatprep.mubr.bf16.mxu0 %v14981_v51  ;;  %v9475_v17 = vpop.f32.mrf.mxu0  ;;  %9756 = vmatprep.subr.bf16.mxu1 %v13884_v39  ;;  %v13938_v54 = vld [vmem:[#allocation6 + $0x19ac] ss:$16 sps:$4 sm:$0xff]   ;;  %v13936_v39 = vld [vmem:[#allocation6 + $0x19a8] ss:$16 sps:$4 sm:$0xff]  }
 0x4d4   :  { %v9476_v12 = vadd.f32 %v9475_v17, %v15117_v35  ;;  %9769 = vmatprep.subr.bf16.mxu0 %v13887_v40  ;;  %v13897_v35 = vld [vmem:[#allocation6 + $0x1ac8] ss:$16 sps:$4 sm:$0xff]   ;;  %v13941_v20 = vld [vmem:[#allocation6 + $0x1bec] ss:$16 sps:$4 sm:$0xff]  }
 0x4d5   :  { %v9477_v37 = vpop.f32.mrf.mxu0  ;;  %v13939_v40 = vld [vmem:[#allocation6 + $0x1be8] ss:$16 sps:$4 sm:$0xff]   ;;  %v13944_v48 = vld [vmem:[#allocation6 + $0x198c] ss:$16 sps:$4 sm:$0xff]  }
 0x4d6   :  { %9757 = vmatpush2.bf16.msra.mxu1 %v13882_v7  ;;  %9770 = vmatpush1.bf16.msra.mxu0 %v13885_v62  ;;  %v13942_v7 = vld [vmem:[#allocation6 + $0x1988] ss:$16 sps:$4 sm:$0xff]   ;;  %v13950_v17 = vld [vmem:[#allocation6 + $0x196c] ss:$16 sps:$4 sm:$0xff]  }
 0x4d7   :  { %v9478_v9 = vpop.f32.mrf.mxu0  ;;  %9771 = vmatprep.subr.bf16.mxu0 %v13890_v13  ;;  %9808 = vmatprep.subr.bf16.mxu1 %v13893_v6  ;;  %v13945_v62 = vld [vmem:[#allocation6 + $0x1bc8] ss:$16 sps:$4 sm:$0xff]   ;;  %v13953_v13 = vld [vmem:[#allocation6 + $0x1bac] ss:$16 sps:$4 sm:$0xff]  }
 0x4d8   :  { %v13948_v6 = vld [vmem:[#allocation6 + $0x1968] ss:$16 sps:$4 sm:$0xff]   ;;  %v13956_v37 = vld [vmem:[#allocation6 + $0x194c] ss:$16 sps:$4 sm:$0xff]  }
 0x4d9   :  { %v9514_v2 = vpop.f32.mrf.mxu1  ;;  %9759 = vmatmul.mubr.bf16.vlgmr.msra.gmra.mxu1 %v14989_v43  ;;  %v13903_v43 = vld [vmem:[#allocation6 + $0x1aa8] ss:$16 sps:$4 sm:$0xff]  }
 0x4da   :  { %v15124_v51 = vadd.f32 %v9514_v2, %v9474_v58  ;;  %9772 = vmatpush1.bf16.msra.mxu0 %v13888_v1  ;;  %9809 = vmatpush1.bf16.msra.mxu1 %v13891_v30  ;;  %v13947_v58 = vld [vmem:[#allocation6 + $0x1bcc] ss:$16 sps:$4 sm:$0xff]   ;;  %v13954_v30 = vld [vmem:[#allocation6 + $0x1948] ss:$16 sps:$4 sm:$0xff]  }
 0x4db   :  { %9840 = vmatprep.mubr.bf16.mxu1 %v14991_v45  ;;  %v9516_v28 = vpop.f32.mrf.mxu1  ;;  %9773 = vmatprep.subr.bf16.mxu0 %v13896_v18  ;;  %v13906_v45 = vld [vmem:[#allocation6 + $0x1848] ss:$16 sps:$4 sm:$0xff]   ;;  %v13959_v1 = vld [vmem:[#allocation6 + $0x1b8c] ss:$16 sps:$4 sm:$0xff]  }
 0x4dc   :  { %v15127_v0 = vadd.f32 %v9516_v28, %v9476_v12  ;;  %9810 = vmatprep.subr.bf16.mxu1 %v13899_v50  ;;  %v13951_v12 = vld [vmem:[#allocation6 + $0x1ba8] ss:$16 sps:$4 sm:$0xff]   ;;  %v13962_v18 = vld [vmem:[#allocation6 + $0x192c] ss:$16 sps:$4 sm:$0xff]  }
 0x4dd   :  { %v9518_v53 = vpop.f32.mrf.mxu1  ;;  %v13957_v9 = vld [vmem:[#allocation6 + $0x1b88] ss:$16 sps:$4 sm:$0xff]   ;;  %v13965_v50 = vld [vmem:[#allocation6 + $0x1b6c] ss:$16 sps:$4 sm:$0xff]  }
 0x4de   :  { %9774 = vmatpush1.bf16.msra.mxu0 %v13894_v57  ;;  %9811 = vmatpush1.bf16.msra.mxu1 %v13897_v35  ;;  %v13960_v2 = vld [vmem:[#allocation6 + $0x1928] ss:$16 sps:$4 sm:$0xff]   ;;  %v13968_v35 = vld [vmem:[#allocation6 + $0x190c] ss:$16 sps:$4 sm:$0xff]  }
 0x4df   :  { %v9519_v55 = vpop.f32.mrf.mxu1  ;;  %9775 = vmatprep.subr.bf16.mxu0 %v13902_v22  ;;  %9812 = vmatprep.subr.bf16.mxu1 %v13905_v61  ;;  %v13963_v57 = vld [vmem:[#allocation6 + $0x1b68] ss:$16 sps:$4 sm:$0xff]   ;;  %v13971_v28 = vld [vmem:[#allocation6 + $0x1b4c] ss:$16 sps:$4 sm:$0xff]  }
 0x4e0   :  { %v13966_v22 = vld [vmem:[#allocation6 + $0x1908] ss:$16 sps:$4 sm:$0xff]   ;;  %v13974_v53 = vld [vmem:[#allocation6 + $0x1b2c] ss:$16 sps:$4 sm:$0xff]  }
 0x4e1   :  { %v13969_v61 = vld [vmem:[#allocation6 + $0x1b48] ss:$16 sps:$4 sm:$0xff]  }
 0x4e2   :  { %9776 = vmatpush1.bf16.msra.mxu0 %v13900_v19  ;;  %9813 = vmatpush1.bf16.msra.mxu1 %v13903_v43  ;;  %v13977_v19 = vld [vmem:[#allocation6 + $0x1cec] ss:$16 sps:$4 sm:$0xff]   ;;  %v13972_v43 = vld [vmem:[#allocation6 + $0x1b28] ss:$16 sps:$4 sm:$0xff]  }
 0x4e3   :  { %9777 = vmatprep.subr.bf16.mxu0 %v13908_v46  ;;  %9814 = vmatprep.subr.bf16.mxu1 %v13911_v27  ;;  %v13975_v55 = vld [vmem:[#allocation6 + $0x1ce8] ss:$16 sps:$4 sm:$0xff]   ;;  %v13980_v46 = vld [vmem:[#allocation6 + $0x1b0c] ss:$16 sps:$4 sm:$0xff]  }
 0x4e4   :  { %v13983_v27 = vld [vmem:[#allocation6 + $0x1ccc] ss:$16 sps:$4 sm:$0xff]  }
 0x4e6   :  { %9778 = vmatpush1.bf16.msra.mxu0 %v13906_v45  ;;  %9815 = vmatpush1.bf16.msra.mxu1 %v13909_v56 }
 0x4e7   :  { %9779 = vmatprep.subr.bf16.mxu0 %v13914_v3  ;;  %9816 = vmatprep.subr.bf16.mxu1 %v13917_v33  ;;  %v13978_v3 = vld [vmem:[#allocation6 + $0x1b08] ss:$16 sps:$4 sm:$0xff]  }
 0x4e8   :  { %v13981_v33 = vld [vmem:[#allocation6 + $0x1cc8] ss:$16 sps:$4 sm:$0xff]  }
 0x4ea   :  { %9780 = vmatpush1.bf16.msra.mxu0 %v13912_v15  ;;  %9817 = vmatpush1.bf16.msra.mxu1 %v13915_v49  ;;  %v13986_v49 = vld [vmem:[#allocation6 + $0x1cac] ss:$16 sps:$4 sm:$0xff]  }
 0x4eb   :  { %9781 = vmatprep.subr.bf16.mxu0 %v13920_v34  ;;  %9818 = vmatprep.subr.bf16.mxu1 %v13923_v52  ;;  %v13989_v34 = vld [vmem:[#allocation6 + $0x1eec] ss:$16 sps:$4 sm:$0xff]  }
 0x4ee   :  { %9782 = vmatpush1.bf16.msra.mxu0 %v13918_v38  ;;  %9819 = vmatpush1.bf16.msra.mxu1 %v13921_v47  ;;  %v13984_v47 = vld [vmem:[#allocation6 + $0x1ca8] ss:$16 sps:$4 sm:$0xff]  }
 0x4ef   :  { %9783 = vmatprep.subr.bf16.mxu0 %v13926_v60  ;;  %9820 = vmatprep.subr.bf16.mxu1 %v13929_v14  ;;  %v13995_v14 = vld [vmem:[#allocation6 + $0x1ecc] ss:$16 sps:$4 sm:$0xff]  }
 0x4f2   :  { %9784 = vmatpush2.bf16.msra.mxu0 %v13924_v41  ;;  %9821 = vmatpush1.bf16.msra.mxu1 %v13927_v63  ;;  %v13990_v63 = vld [vmem:[#allocation6 + $0x1c88] ss:$16 sps:$4 sm:$0xff]  }
 0x4f3   :  { %9785 = vmatprep.subr.bf16.mxu0 %v13932_v25  ;;  %9822 = vmatprep.subr.bf16.mxu1 %v13935_v21  ;;  %v13998_v21 = vld [vmem:[#allocation6 + $0x1c6c] ss:$16 sps:$4 sm:$0xff]  }
 0x4f6   :  { %9786 = vmatpush2.bf16.msra.mxu0 %v13930_v29  ;;  %9823 = vmatpush1.bf16.msra.mxu1 %v13933_v31  ;;  %v14001_v29 = vld [vmem:[#allocation6 + $0x1eac] ss:$16 sps:$4 sm:$0xff]  }
 0x4f7   :  { %9787 = vmatprep.subr.bf16.mxu0 %v13938_v54  ;;  %9824 = vmatprep.subr.bf16.mxu1 %v13941_v20  ;;  %v13996_v20 = vld [vmem:[#allocation6 + $0x1c68] ss:$16 sps:$4 sm:$0xff]  }
 0x4fa   :  { %9788 = vmatpush2.bf16.msra.mxu0 %v13936_v39  ;;  %9825 = vmatpush2.bf16.msra.mxu1 %v13939_v40  ;;  %v14004_v40 = vld [vmem:[#allocation6 + $0x1c4c] ss:$16 sps:$4 sm:$0xff]  }
 0x4fb   :  { %9789 = vmatprep.subr.bf16.mxu0 %v13944_v48  ;;  %9826 = vmatprep.subr.bf16.mxu1 %v13947_v58  ;;  %v14007_v48 = vld [vmem:[#allocation6 + $0x1e8c] ss:$16 sps:$4 sm:$0xff]   ;;  %v14005_v58 = vld [vmem:[#allocation6 + $0x1e88] ss:$16 sps:$4 sm:$0xff]  }
 0x4fe   :  { %9790 = vmatpush2.bf16.msra.mxu0 %v13942_v7  ;;  %9827 = vmatpush2.bf16.msra.mxu1 %v13945_v62  ;;  %v14010_v7 = vld [vmem:[#allocation6 + $0x1c2c] ss:$16 sps:$4 sm:$0xff]  }
 0x4ff   :  { %9791 = vmatprep.subr.bf16.mxu0 %v13950_v17  ;;  %9828 = vmatprep.subr.bf16.mxu1 %v13953_v13  ;;  %v14013_v62 = vld [vmem:[#allocation6 + $0x1e6c] ss:$16 sps:$4 sm:$0xff]   ;;  %v14008_v17 = vld [vmem:[#allocation6 + $0x1c28] ss:$16 sps:$4 sm:$0xff]  }
 0x500   :  { %v14011_v13 = vld [vmem:[#allocation6 + $0x1e68] ss:$16 sps:$4 sm:$0xff]  }
 0x502   :  { %9792 = vmatpush2.bf16.msra.mxu0 %v13948_v6  ;;  %9829 = vmatpush2.bf16.msra.mxu1 %v13951_v12  ;;  %v14016_v6 = vld [vmem:[#allocation6 + $0x1c0c] ss:$16 sps:$4 sm:$0xff]  }
 0x503   :  { %9793 = vmatprep.subr.bf16.mxu0 %v13956_v37  ;;  %9830 = vmatprep.subr.bf16.mxu1 %v13959_v1  ;;  %v14019_v12 = vld [vmem:[#allocation6 + $0x1e4c] ss:$16 sps:$4 sm:$0xff]   ;;  %v14014_v37 = vld [vmem:[#allocation6 + $0x1c08] ss:$16 sps:$4 sm:$0xff]  }
 0x504   :  { %v14017_v1 = vld [vmem:[#allocation6 + $0x1e48] ss:$16 sps:$4 sm:$0xff]  }
 0x506   :  { %9794 = vmatpush2.bf16.msra.mxu0 %v13954_v30  ;;  %9831 = vmatpush2.bf16.msra.mxu1 %v13957_v9  ;;  %v14022_v30 = vld [vmem:[#allocation6 + $0x1dec] ss:$16 sps:$4 sm:$0xff]  }
 0x507   :  { %9795 = vmatprep.subr.bf16.mxu0 %v13962_v18  ;;  %9832 = vmatprep.subr.bf16.mxu1 %v13965_v50  ;;  %v14025_v9 = vld [vmem:[#allocation6 + $0x1e2c] ss:$16 sps:$4 sm:$0xff]   ;;  %v14020_v18 = vld [vmem:[#allocation6 + $0x1de8] ss:$16 sps:$4 sm:$0xff]  }
 0x508   :  { %v14023_v50 = vld [vmem:[#allocation6 + $0x1e28] ss:$16 sps:$4 sm:$0xff]  }
 0x50a   :  { %9796 = vmatpush2.bf16.msra.mxu0 %v13960_v2  ;;  %9833 = vmatpush2.bf16.msra.mxu1 %v13963_v57  ;;  %v14028_v2 = vld [vmem:[#allocation6 + $0x1dcc] ss:$16 sps:$4 sm:$0xff]  }
 0x50b   :  { %9797 = vmatprep.subr.bf16.mxu0 %v13968_v35  ;;  %9834 = vmatprep.subr.bf16.mxu1 %v13971_v28  ;;  %v14031_v57 = vld [vmem:[#allocation6 + $0x1e0c] ss:$16 sps:$4 sm:$0xff]   ;;  %v14026_v35 = vld [vmem:[#allocation6 + $0x1dc8] ss:$16 sps:$4 sm:$0xff]  }
 0x50c   :  { %v14029_v28 = vld [vmem:[#allocation6 + $0x1e08] ss:$16 sps:$4 sm:$0xff]  }
 0x50e   :  { %9798 = vmatpush2.bf16.msra.mxu0 %v13966_v22  ;;  %9835 = vmatpush2.bf16.msra.mxu1 %v13969_v61  ;;  %v14034_v22 = vld [vmem:[#allocation6 + $0x1dac] ss:$16 sps:$4 sm:$0xff]  }
 0x50f   :  { %9836 = vmatprep.subr.bf16.mxu1 %v13974_v53  ;;  %9849 = vmatprep.subr.bf16.mxu0 %v13977_v19  ;;  %v14037_v61 = vld [vmem:[#allocation6 + $0x1fec] ss:$16 sps:$4 sm:$0xff]   ;;  %v14032_v53 = vld [vmem:[#allocation6 + $0x1da8] ss:$16 sps:$4 sm:$0xff]  }
 0x510   :  { %v14035_v19 = vld [vmem:[#allocation6 + $0x1fe8] ss:$16 sps:$4 sm:$0xff]  }
 0x511   :  { %v9555_v45 = vpop.f32.mrf.mxu0  ;;  %9800 = vmatmul.mubr.bf16.vlgmr.msra.gmra.mxu0 %v15003_v42  ;;  %v13987_v42 = vld [vmem:[#allocation6 + $0x1ee8] ss:$16 sps:$4 sm:$0xff]  }
 0x512   :  { %v9556_v56 = vadd.f32 %v9555_v45, %v15124_v51  ;;  %9837 = vmatpush2.bf16.msra.mxu1 %v13972_v43  ;;  %9850 = vmatpush1.bf16.msra.mxu0 %v13975_v55  ;;  %v13992_v51 = vld [vmem:[#allocation6 + $0x1c8c] ss:$16 sps:$4 sm:$0xff]  }
 0x513   :  { %9881 = vmatprep.mubr.bf16.mxu0 %v15005_v4  ;;  %v9557_v15 = vpop.f32.mrf.mxu0  ;;  %9838 = vmatprep.subr.bf16.mxu1 %v13980_v46  ;;  %v14040_v43 = vld [vmem:[#allocation6 + $0x1d8c] ss:$16 sps:$4 sm:$0xff]   ;;  %v14038_v46 = vld [vmem:[#allocation6 + $0x1d88] ss:$16 sps:$4 sm:$0xff]  }
 0x514   :  { %v9558_v52 = vadd.f32 %v9557_v15, %v15127_v0  ;;  %9851 = vmatprep.subr.bf16.mxu0 %v13983_v27  ;;  %v13993_v0 = vld [vmem:[#allocation6 + $0x1ec8] ss:$16 sps:$4 sm:$0xff]   ;;  %v14043_v55 = vld [vmem:[#allocation6 + $0x1fcc] ss:$16 sps:$4 sm:$0xff]  }
 0x515   :  { %v9559_v38 = vpop.f32.mrf.mxu0  ;;  %v14041_v27 = vld [vmem:[#allocation6 + $0x1fc8] ss:$16 sps:$4 sm:$0xff]   ;;  %v14046_v45 = vld [vmem:[#allocation6 + $0x1d6c] ss:$16 sps:$4 sm:$0xff]  }
 0x516   :  { %9839 = vmatpush2.bf16.msra.mxu1 %v13978_v3  ;;  %9852 = vmatpush1.bf16.msra.mxu0 %v13981_v33  ;;  %v14044_v3 = vld [vmem:[#allocation6 + $0x1d68] ss:$16 sps:$4 sm:$0xff]   ;;  %v14052_v15 = vld [vmem:[#allocation6 + $0x1d4c] ss:$16 sps:$4 sm:$0xff]  }
 0x517   :  { %v9560_v60 = vpop.f32.mrf.mxu0  ;;  %9853 = vmatprep.subr.bf16.mxu0 %v13986_v49  ;;  %9890 = vmatprep.subr.bf16.mxu1 %v13989_v34  ;;  %v14047_v33 = vld [vmem:[#allocation6 + $0x1fa8] ss:$16 sps:$4 sm:$0xff]   ;;  %v14055_v49 = vld [vmem:[#allocation6 + $0x1f8c] ss:$16 sps:$4 sm:$0xff]  }
 0x518   :  { %v14050_v34 = vld [vmem:[#allocation6 + $0x1d48] ss:$16 sps:$4 sm:$0xff]   ;;  %v14058_v38 = vld [vmem:[#allocation6 + $0x1d2c] ss:$16 sps:$4 sm:$0xff]  }
 0x519   :  { %v9596_v41 = vpop.f32.mrf.mxu1  ;;  %9841 = vmatmul.mubr.bf16.vlgmr.msra.gmra.mxu1 %v15013_v59  ;;  %v13999_v59 = vld [vmem:[#allocation6 + $0x1ea8] ss:$16 sps:$4 sm:$0xff]  }
 0x51a   :  { %v15134_v4 = vadd.f32 %v9596_v41, %v9556_v56  ;;  %9854 = vmatpush1.bf16.msra.mxu0 %v13984_v47  ;;  %9891 = vmatpush1.bf16.msra.mxu1 %v13987_v42  ;;  %v14049_v56 = vld [vmem:[#allocation6 + $0x1fac] ss:$16 sps:$4 sm:$0xff]   ;;  %v14056_v42 = vld [vmem:[#allocation6 + $0x1d28] ss:$16 sps:$4 sm:$0xff]  }
 0x51b   :  { %9922 = vmatprep.mubr.bf16.mxu1 %v15015_v16  ;;  %v9598_v25 = vpop.f32.mrf.mxu1  ;;  %9855 = vmatprep.subr.bf16.mxu0 %v13992_v51  ;;  %v14002_v16 = vld [vmem:[#allocation6 + $0x1c48] ss:$16 sps:$4 sm:$0xff]   ;;  %v14061_v47 = vld [vmem:[#allocation6 + $0x1f6c] ss:$16 sps:$4 sm:$0xff]  }
 0x51c   :  { %v15137_v31 = vadd.f32 %v9598_v25, %v9558_v52  ;;  %9892 = vmatprep.subr.bf16.mxu1 %v13995_v14  ;;  %v14053_v52 = vld [vmem:[#allocation6 + $0x1f88] ss:$16 sps:$4 sm:$0xff]   ;;  %v14064_v51 = vld [vmem:[#allocation6 + $0x1d0c] ss:$16 sps:$4 sm:$0xff]  }
 0x51d   :  { %v9600_v54 = vpop.f32.mrf.mxu1  ;;  %v14059_v60 = vld [vmem:[#allocation6 + $0x1f68] ss:$16 sps:$4 sm:$0xff]   ;;  %v14067_v14 = vld [vmem:[#allocation6 + $0x1f4c] ss:$16 sps:$4 sm:$0xff]  }
 0x51e   :  { %9856 = vmatpush1.bf16.msra.mxu0 %v13990_v63  ;;  %9893 = vmatpush1.bf16.msra.mxu1 %v13993_v0  ;;  %v14062_v41 = vld [vmem:[#allocation6 + $0x1d08] ss:$16 sps:$4 sm:$0xff]   ;;  %v14070_v0 = vld [vmem:[#allocation6 + $0x1f2c] ss:$16 sps:$4 sm:$0xff]  }
 0x51f   :  { %v9601_v39 = vpop.f32.mrf.mxu1  ;;  %9857 = vmatprep.subr.bf16.mxu0 %v13998_v21  ;;  %9894 = vmatprep.subr.bf16.mxu1 %v14001_v29  ;;  %v14065_v63 = vld [vmem:[#allocation6 + $0x1f48] ss:$16 sps:$4 sm:$0xff]   ;;  %v14073_v25 = vld [vmem:[#allocation6 + $0x20ec] ss:$16 sps:$4 sm:$0xff]  }
 0x520   :  { %v14068_v21 = vld [vmem:[#allocation6 + $0x1f28] ss:$16 sps:$4 sm:$0xff]   ;;  %v14076_v54 = vld [vmem:[#allocation6 + $0x1f0c] ss:$16 sps:$4 sm:$0xff]  }
 0x521   :  { %v14071_v29 = vld [vmem:[#allocation6 + $0x20e8] ss:$16 sps:$4 sm:$0xff]  }
 0x522   :  { %9858 = vmatpush1.bf16.msra.mxu0 %v13996_v20  ;;  %9895 = vmatpush1.bf16.msra.mxu1 %v13999_v59  ;;  %v14079_v20 = vld [vmem:[#allocation6 + $0x20cc] ss:$16 sps:$4 sm:$0xff]  }
 0x523   :  { %9859 = vmatprep.subr.bf16.mxu0 %v14004_v40  ;;  %9896 = vmatprep.subr.bf16.mxu1 %v14007_v48  ;;  %v14074_v40 = vld [vmem:[#allocation6 + $0x1f08] ss:$16 sps:$4 sm:$0xff]  }
 0x524   :  { %v14077_v48 = vld [vmem:[#allocation6 + $0x20c8] ss:$16 sps:$4 sm:$0xff]  }
 0x526   :  { %9860 = vmatpush1.bf16.msra.mxu0 %v14002_v16  ;;  %9897 = vmatpush1.bf16.msra.mxu1 %v14005_v58  ;;  %v14082_v58 = vld [vmem:[#allocation6 + $0x20ac] ss:$16 sps:$4 sm:$0xff]  }
 0x527   :  { %9861 = vmatprep.subr.bf16.mxu0 %v14010_v7  ;;  %9898 = vmatprep.subr.bf16.mxu1 %v14013_v62  ;;  %v14085_v7 = vld [vmem:[#allocation6 + $0x22ec] ss:$16 sps:$4 sm:$0xff]  }
 0x52a   :  { %9862 = vmatpush1.bf16.msra.mxu0 %v14008_v17  ;;  %9899 = vmatpush1.bf16.msra.mxu1 %v14011_v13  ;;  %v14080_v13 = vld [vmem:[#allocation6 + $0x20a8] ss:$16 sps:$4 sm:$0xff]  }
 0x52b   :  { %9863 = vmatprep.subr.bf16.mxu0 %v14016_v6  ;;  %9900 = vmatprep.subr.bf16.mxu1 %v14019_v12  ;;  %v14091_v12 = vld [vmem:[#allocation6 + $0x22cc] ss:$16 sps:$4 sm:$0xff]  }
 0x52e   :  { %9864 = vmatpush1.bf16.msra.mxu0 %v14014_v37  ;;  %9901 = vmatpush1.bf16.msra.mxu1 %v14017_v1  ;;  %v14086_v1 = vld [vmem:[#allocation6 + $0x2088] ss:$16 sps:$4 sm:$0xff]  }
 0x52f   :  { %9865 = vmatprep.subr.bf16.mxu0 %v14022_v30  ;;  %9902 = vmatprep.subr.bf16.mxu1 %v14025_v9  ;;  %v14094_v9 = vld [vmem:[#allocation6 + $0x206c] ss:$16 sps:$4 sm:$0xff]  }
 0x532   :  { %9866 = vmatpush2.bf16.msra.mxu0 %v14020_v18  ;;  %9903 = vmatpush1.bf16.msra.mxu1 %v14023_v50  ;;  %v14097_v18 = vld [vmem:[#allocation6 + $0x22ac] ss:$16 sps:$4 sm:$0xff]  }
 0x533   :  { %9867 = vmatprep.subr.bf16.mxu0 %v14028_v2  ;;  %9904 = vmatprep.subr.bf16.mxu1 %v14031_v57  ;;  %v14092_v57 = vld [vmem:[#allocation6 + $0x2068] ss:$16 sps:$4 sm:$0xff]  }
 0x536   :  { %9868 = vmatpush2.bf16.msra.mxu0 %v14026_v35  ;;  %9905 = vmatpush1.bf16.msra.mxu1 %v14029_v28  ;;  %v14100_v28 = vld [vmem:[#allocation6 + $0x204c] ss:$16 sps:$4 sm:$0xff]  }
 0x537   :  { %9869 = vmatprep.subr.bf16.mxu0 %v14034_v22  ;;  %9906 = vmatprep.subr.bf16.mxu1 %v14037_v61  ;;  %v14103_v22 = vld [vmem:[#allocation6 + $0x228c] ss:$16 sps:$4 sm:$0xff]   ;;  %v14101_v61 = vld [vmem:[#allocation6 + $0x2288] ss:$16 sps:$4 sm:$0xff]  }
 0x53a   :  { %9870 = vmatpush2.bf16.msra.mxu0 %v14032_v53  ;;  %9907 = vmatpush2.bf16.msra.mxu1 %v14035_v19  ;;  %v14106_v53 = vld [vmem:[#allocation6 + $0x202c] ss:$16 sps:$4 sm:$0xff]  }
 0x53b   :  { %9871 = vmatprep.subr.bf16.mxu0 %v14040_v43  ;;  %9908 = vmatprep.subr.bf16.mxu1 %v14043_v55  ;;  %v14109_v19 = vld [vmem:[#allocation6 + $0x226c] ss:$16 sps:$4 sm:$0xff]   ;;  %v14104_v43 = vld [vmem:[#allocation6 + $0x2028] ss:$16 sps:$4 sm:$0xff]  }
 0x53c   :  { %v14107_v55 = vld [vmem:[#allocation6 + $0x2268] ss:$16 sps:$4 sm:$0xff]  }
 0x53e   :  { %9872 = vmatpush2.bf16.msra.mxu0 %v14038_v46  ;;  %9909 = vmatpush2.bf16.msra.mxu1 %v14041_v27  ;;  %v14112_v46 = vld [vmem:[#allocation6 + $0x200c] ss:$16 sps:$4 sm:$0xff]  }
 0x53f   :  { %9873 = vmatprep.subr.bf16.mxu0 %v14046_v45  ;;  %9910 = vmatprep.subr.bf16.mxu1 %v14049_v56  ;;  %v14115_v27 = vld [vmem:[#allocation6 + $0x224c] ss:$16 sps:$4 sm:$0xff]   ;;  %v14110_v45 = vld [vmem:[#allocation6 + $0x2008] ss:$16 sps:$4 sm:$0xff]  }
 0x540   :  { %v14113_v56 = vld [vmem:[#allocation6 + $0x2248] ss:$16 sps:$4 sm:$0xff]  }
 0x542   :  { %9874 = vmatpush2.bf16.msra.mxu0 %v14044_v3  ;;  %9911 = vmatpush2.bf16.msra.mxu1 %v14047_v33  ;;  %v14118_v3 = vld [vmem:[#allocation6 + $0x21ec] ss:$16 sps:$4 sm:$0xff]  }
 0x543   :  { %9875 = vmatprep.subr.bf16.mxu0 %v14052_v15  ;;  %9912 = vmatprep.subr.bf16.mxu1 %v14055_v49  ;;  %v14121_v33 = vld [vmem:[#allocation6 + $0x222c] ss:$16 sps:$4 sm:$0xff]   ;;  %v14116_v15 = vld [vmem:[#allocation6 + $0x21e8] ss:$16 sps:$4 sm:$0xff]  }
 0x544   :  { %v14119_v49 = vld [vmem:[#allocation6 + $0x2228] ss:$16 sps:$4 sm:$0xff]  }
 0x546   :  { %9876 = vmatpush2.bf16.msra.mxu0 %v14050_v34  ;;  %9913 = vmatpush2.bf16.msra.mxu1 %v14053_v52  ;;  %v14124_v34 = vld [vmem:[#allocation6 + $0x21cc] ss:$16 sps:$4 sm:$0xff]  }
 0x547   :  { %9877 = vmatprep.subr.bf16.mxu0 %v14058_v38  ;;  %9914 = vmatprep.subr.bf16.mxu1 %v14061_v47  ;;  %v14127_v52 = vld [vmem:[#allocation6 + $0x220c] ss:$16 sps:$4 sm:$0xff]   ;;  %v14122_v38 = vld [vmem:[#allocation6 + $0x21c8] ss:$16 sps:$4 sm:$0xff]  }
 0x548   :  { %v14125_v47 = vld [vmem:[#allocation6 + $0x2208] ss:$16 sps:$4 sm:$0xff]  }
 0x54a   :  { %9878 = vmatpush2.bf16.msra.mxu0 %v14056_v42  ;;  %9915 = vmatpush2.bf16.msra.mxu1 %v14059_v60  ;;  %v14130_v42 = vld [vmem:[#allocation6 + $0x21ac] ss:$16 sps:$4 sm:$0xff]  }
 0x54b   :  { %9879 = vmatprep.subr.bf16.mxu0 %v14064_v51  ;;  %9916 = vmatprep.subr.bf16.mxu1 %v14067_v14  ;;  %v14133_v60 = vld [vmem:[#allocation6 + $0x23ec] ss:$16 sps:$4 sm:$0xff]   ;;  %v14128_v51 = vld [vmem:[#allocation6 + $0x21a8] ss:$16 sps:$4 sm:$0xff]  }
 0x54c   :  { %v14131_v14 = vld [vmem:[#allocation6 + $0x23e8] ss:$16 sps:$4 sm:$0xff]  }
 0x54e   :  { %9880 = vmatpush2.bf16.msra.mxu0 %v14062_v41  ;;  %9917 = vmatpush2.bf16.msra.mxu1 %v14065_v63  ;;  %v14136_v41 = vld [vmem:[#allocation6 + $0x218c] ss:$16 sps:$4 sm:$0xff]  }
 0x54f   :  { %9918 = vmatprep.subr.bf16.mxu1 %v14070_v0  ;;  %9931 = vmatprep.subr.bf16.mxu0 %v14073_v25  ;;  %v14139_v63 = vld [vmem:[#allocation6 + $0x23cc] ss:$16 sps:$4 sm:$0xff]   ;;  %v14134_v0 = vld [vmem:[#allocation6 + $0x2188] ss:$16 sps:$4 sm:$0xff]  }
 0x550   :  { %v14137_v25 = vld [vmem:[#allocation6 + $0x23c8] ss:$16 sps:$4 sm:$0xff]  }
 0x551   :  { %v9637_v59 = vpop.f32.mrf.mxu0  ;;  %9882 = vmatmul.mubr.bf16.vlgmr.msra.gmra.mxu0 %v15031_v11  ;;  %v14083_v11 = vld [vmem:[#allocation6 + $0x22e8] ss:$16 sps:$4 sm:$0xff]  }
 0x552   :  { %v9638_v39 = vadd.f32 %v9637_v59, %v15134_v4  ;;  %9919 = vmatpush2.bf16.msra.mxu1 %v14068_v21  ;;  %9932 = vmatpush1.bf16.msra.mxu0 %v14071_v29  ;;  %v14088_v4 = vld [vmem:[#allocation6 + $0x208c] ss:$16 sps:$4 sm:$0xff]  }
 0x553   :  { %9963 = vmatprep.mubr.bf16.mxu0 %v15033_v8  ;;  %v9639_v16 = vpop.f32.mrf.mxu0  ;;  %9920 = vmatprep.subr.bf16.mxu1 %v14076_v54  ;;  %v14142_v21 = vld [vmem:[#allocation6 + $0x216c] ss:$16 sps:$4 sm:$0xff]   ;;  %v14140_v54 = vld [vmem:[#allocation6 + $0x2168] ss:$16 sps:$4 sm:$0xff]  }
 0x554   :  { %v9640_v62 = vadd.f32 %v9639_v16, %v15137_v31  ;;  %9933 = vmatprep.subr.bf16.mxu0 %v14079_v20  ;;  %v14089_v31 = vld [vmem:[#allocation6 + $0x22c8] ss:$16 sps:$4 sm:$0xff]   ;;  %v14145_v29 = vld [vmem:[#allocation6 + $0x23ac] ss:$16 sps:$4 sm:$0xff]  }
 0x555   :  { %v9641_v17 = vpop.f32.mrf.mxu0  ;;  %v14143_v20 = vld [vmem:[#allocation6 + $0x23a8] ss:$16 sps:$4 sm:$0xff]   ;;  %v14148_v59 = vld [vmem:[#allocation6 + $0x214c] ss:$16 sps:$4 sm:$0xff]  }
 0x556   :  { %9921 = vmatpush2.bf16.msra.mxu1 %v14074_v40  ;;  %9934 = vmatpush1.bf16.msra.mxu0 %v14077_v48  ;;  %v14146_v40 = vld [vmem:[#allocation6 + $0x2148] ss:$16 sps:$4 sm:$0xff]   ;;  %v14154_v16 = vld [vmem:[#allocation6 + $0x212c] ss:$16 sps:$4 sm:$0xff]  }
 0x557   :  { %v9642_v6 = vpop.f32.mrf.mxu0  ;;  %9935 = vmatprep.subr.bf16.mxu0 %v14082_v58  ;;  %9972 = vmatprep.subr.bf16.mxu1 %v14085_v7  ;;  %v14149_v48 = vld [vmem:[#allocation6 + $0x2388] ss:$16 sps:$4 sm:$0xff]   ;;  %v14157_v58 = vld [vmem:[#allocation6 + $0x236c] ss:$16 sps:$4 sm:$0xff]  }
 0x558   :  { %v14152_v7 = vld [vmem:[#allocation6 + $0x2128] ss:$16 sps:$4 sm:$0xff]   ;;  %v14160_v17 = vld [vmem:[#allocation6 + $0x210c] ss:$16 sps:$4 sm:$0xff]  }
 0x559   :  { %v9678_v37 = vpop.f32.mrf.mxu1  ;;  %9923 = vmatmul.mubr.bf16.vlgmr.msra.gmra.mxu1 %v15041_v36  ;;  %v14095_v36 = vld [vmem:[#allocation6 + $0x22a8] ss:$16 sps:$4 sm:$0xff]  }
 0x55a   :  { %v15144_v8 = vadd.f32 %v9678_v37, %v9638_v39  ;;  %9936 = vmatpush1.bf16.msra.mxu0 %v14080_v13  ;;  %9973 = vmatpush1.bf16.msra.mxu1 %v14083_v11  ;;  %v14151_v39 = vld [vmem:[#allocation6 + $0x238c] ss:$16 sps:$4 sm:$0xff]   ;;  %v14158_v11 = vld [vmem:[#allocation6 + $0x2108] ss:$16 sps:$4 sm:$0xff]   ;;  %v10014_v37 = vmax.f32 %v15097_v26, 0.0 }
 0x55b   :  { %10004 = vmatprep.mubr.bf16.mxu1 %v15043_v10  ;;  %v9680_v30 = vpop.f32.mrf.mxu1  ;;  %9937 = vmatprep.subr.bf16.mxu0 %v14088_v4  ;;  %v14098_v10 = vld [vmem:[#allocation6 + $0x2048] ss:$16 sps:$4 sm:$0xff]   ;;  %v14163_v13 = vld [vmem:[#allocation6 + $0x234c] ss:$16 sps:$4 sm:$0xff]  }
 0x55c   :  { %v15147_v50 = vadd.f32 %v9680_v30, %v9640_v62  ;;  %9974 = vmatprep.subr.bf16.mxu1 %v14091_v12  ;;  %v14155_v62 = vld [vmem:[#allocation6 + $0x2368] ss:$16 sps:$4 sm:$0xff]   ;;  %v14166_v4 = vld [vmem:[#allocation6 + $0x232c] ss:$16 sps:$4 sm:$0xff]  }
 0x55d   :  { %v9682_v2 = vpop.f32.mrf.mxu1  ;;  %v14161_v6 = vld [vmem:[#allocation6 + $0x2348] ss:$16 sps:$4 sm:$0xff]   ;;  %v14172_v30 = vld [vmem:[#allocation6 + $0x230c] ss:$16 sps:$4 sm:$0xff]  }
 0x55e   :  { %9938 = vmatpush1.bf16.msra.mxu0 %v14086_v1  ;;  %9975 = vmatpush1.bf16.msra.mxu1 %v14089_v31  ;;  %v14169_v12 = vld [vmem:[#allocation9 + $0x74] ss:$8 sps:$4 sm:$0xff]   ;;  %v14167_v31 = vld [vmem:[#allocation9 + $0x70] ss:$8 sps:$4 sm:$0xff]  }
 0x55f   :  { %v9683_v35 = vpop.f32.mrf.mxu1  ;;  %9939 = vmatprep.subr.bf16.mxu0 %v14094_v9  ;;  %9976 = vmatprep.subr.bf16.mxu1 %v14097_v18  ;;  %v14164_v1 = vld [vmem:[#allocation6 + $0x2328] ss:$16 sps:$4 sm:$0xff]   ;;  %v10018_v18 = vpack.c.bf16 %v10014_v37, %v10014_v37 }
 0x560   :  { %v14175_v9 = vld [vmem:[#allocation9 + $0x64] ss:$8 sps:$4 sm:$0xff]   ;;  %v14173_v35 = vld [vmem:[#allocation9 + $0x60] ss:$8 sps:$4 sm:$0xff]  }
 0x561   :  { %v14247_v37 = vld [vmem:[#allocation9 + $0x1e4] ss:$8 sps:$4 sm:$0xff]  }
 0x562   :  { %9940 = vmatpush1.bf16.msra.mxu0 %v14092_v57  ;;  %9977 = vmatpush1.bf16.msra.mxu1 %v14095_v36  ;;  %v14170_v36 = vld [vmem:[#allocation6 + $0x2308] ss:$16 sps:$4 sm:$0xff]  }
 0x563   :  { %9941 = vmatprep.subr.bf16.mxu0 %v14100_v28  ;;  %9978 = vmatprep.subr.bf16.mxu1 %v14103_v22  ;;  %v14178_v28 = vld [vmem:[#allocation9 + $0x54] ss:$8 sps:$4 sm:$0xff]  }
 0x566   :  { %9942 = vmatpush1.bf16.msra.mxu0 %v14098_v10  ;;  %9979 = vmatpush1.bf16.msra.mxu1 %v14101_v61  ;;  %v14176_v61 = vld [vmem:[#allocation9 + $0x50] ss:$8 sps:$4 sm:$0xff]  }
 0x567   :  { %9943 = vmatprep.subr.bf16.mxu0 %v14106_v53  ;;  %9980 = vmatprep.subr.bf16.mxu1 %v14109_v19 }
 0x56a   :  { %9944 = vmatpush1.bf16.msra.mxu0 %v14104_v43  ;;  %9981 = vmatpush1.bf16.msra.mxu1 %v14107_v55  ;;  %v14179_v43 = vld [vmem:[#allocation9 + $0x40] ss:$8 sps:$4 sm:$0xff]  }
 0x56b   :  { %9945 = vmatprep.subr.bf16.mxu0 %v14112_v46  ;;  %9982 = vmatprep.subr.bf16.mxu1 %v14115_v27  ;;  %v14184_v46 = vld [vmem:[#allocation9 + $0x34] ss:$8 sps:$4 sm:$0xff]  }
 0x56e   :  { %9946 = vmatpush1.bf16.msra.mxu0 %v14110_v45  ;;  %9983 = vmatpush1.bf16.msra.mxu1 %v14113_v56  ;;  %v14182_v45 = vld [vmem:[#allocation9 + $0x30] ss:$8 sps:$4 sm:$0xff]  }
 0x56f   :  { %9947 = vmatprep.subr.bf16.mxu0 %v14118_v3  ;;  %9984 = vmatprep.subr.bf16.mxu1 %v14121_v33  ;;  %v14187_v3 = vld [vmem:[#allocation9 + $0x24] ss:$8 sps:$4 sm:$0xff]   ;;  %v14218_v33 = vld [vmem:[#allocation9 + $0x170] ss:$8 sps:$4 sm:$0xff]  }
 0x572   :  { %9948 = vmatpush2.bf16.msra.mxu0 %v14116_v15  ;;  %9985 = vmatpush1.bf16.msra.mxu1 %v14119_v49  ;;  %v14220_v15 = vld [vmem:[#allocation9 + $0x174] ss:$8 sps:$4 sm:$0xff]   ;;  %v14223_v49 = vld [vmem:[#allocation9 + $0x164] ss:$8 sps:$4 sm:$0xff]  }
 0x573   :  { %9949 = vmatprep.subr.bf16.mxu0 %v14124_v34  ;;  %9986 = vmatprep.subr.bf16.mxu1 %v14127_v52  ;;  %v14221_v34 = vld [vmem:[#allocation9 + $0x160] ss:$8 sps:$4 sm:$0xff]   ;;  %v14190_v52 = vld [vmem:[#allocation9 + $0x14] ss:$8 sps:$4 sm:$0xff]  }
 0x576   :  { %9950 = vmatpush2.bf16.msra.mxu0 %v14122_v38  ;;  %9987 = vmatpush1.bf16.msra.mxu1 %v14125_v47  ;;  %v14226_v38 = vld [vmem:[#allocation9 + $0x154] ss:$8 sps:$4 sm:$0xff]   ;;  %v14188_v47 = vld [vmem:[#allocation9 + $0x10] ss:$8 sps:$4 sm:$0xff]  }
 0x577   :  { %9951 = vmatprep.subr.bf16.mxu0 %v14130_v42  ;;  %9988 = vmatprep.subr.bf16.mxu1 %v14133_v60  ;;  %v14224_v42 = vld [vmem:[#allocation9 + $0x150] ss:$8 sps:$4 sm:$0xff]   ;;  %v14193_v60 = vld [vmem:[#allocation9 + $0x4] ss:$8 sps:$4 sm:$0xff]  }
 0x57a   :  { %9952 = vmatpush2.bf16.msra.mxu0 %v14128_v51  ;;  %9989 = vmatpush2.bf16.msra.mxu1 %v14131_v14  ;;  %v14229_v51 = vld [vmem:[#allocation9 + $0x144] ss:$8 sps:$4 sm:$0xff]   ;;  %v14191_v14 = vld [vmem:[#allocation9] ss:$8 sps:$4 sm:$0xff]  }
 0x57b   :  { %9953 = vmatprep.subr.bf16.mxu0 %v14136_v41  ;;  %9990 = vmatprep.subr.bf16.mxu1 %v14139_v63  ;;  %v14227_v41 = vld [vmem:[#allocation9 + $0x140] ss:$8 sps:$4 sm:$0xff]   ;;  %v14196_v63 = vld [vmem:[#allocation9 + $0xf4] ss:$8 sps:$4 sm:$0xff]  }
 0x57e   :  { %9954 = vmatpush2.bf16.msra.mxu0 %v14134_v0  ;;  %9991 = vmatpush2.bf16.msra.mxu1 %v14137_v25  ;;  %v14232_v0 = vld [vmem:[#allocation9 + $0x134] ss:$8 sps:$4 sm:$0xff]   ;;  %v14194_v25 = vld [vmem:[#allocation9 + $0xf0] ss:$8 sps:$4 sm:$0xff]  }
 0x57f   :  { %9955 = vmatprep.subr.bf16.mxu0 %v14142_v21  ;;  %9992 = vmatprep.subr.bf16.mxu1 %v14145_v29  ;;  %v14230_v21 = vld [vmem:[#allocation9 + $0x130] ss:$8 sps:$4 sm:$0xff]   ;;  %v14199_v29 = vld [vmem:[#allocation9 + $0xe4] ss:$8 sps:$4 sm:$0xff]  }
 0x582   :  { %9956 = vmatpush2.bf16.msra.mxu0 %v14140_v54  ;;  %9993 = vmatpush2.bf16.msra.mxu1 %v14143_v20  ;;  %v14235_v54 = vld [vmem:[#allocation9 + $0x124] ss:$8 sps:$4 sm:$0xff]   ;;  %v14197_v20 = vld [vmem:[#allocation9 + $0xe0] ss:$8 sps:$4 sm:$0xff]  }
 0x583   :  { %9957 = vmatprep.subr.bf16.mxu0 %v14148_v59  ;;  %9994 = vmatprep.subr.bf16.mxu1 %v14151_v39  ;;  %v14233_v59 = vld [vmem:[#allocation9 + $0x120] ss:$8 sps:$4 sm:$0xff]   ;;  %v14202_v39 = vld [vmem:[#allocation9 + $0xd4] ss:$8 sps:$4 sm:$0xff]  }
 0x586   :  { %9958 = vmatpush2.bf16.msra.mxu0 %v14146_v40  ;;  %9995 = vmatpush2.bf16.msra.mxu1 %v14149_v48  ;;  %v14238_v40 = vld [vmem:[#allocation9 + $0x114] ss:$8 sps:$4 sm:$0xff]   ;;  %v14200_v48 = vld [vmem:[#allocation9 + $0xd0] ss:$8 sps:$4 sm:$0xff]  }
 0x587   :  { %9959 = vmatprep.subr.bf16.mxu0 %v14154_v16  ;;  %9996 = vmatprep.subr.bf16.mxu1 %v14157_v58  ;;  %v14236_v16 = vld [vmem:[#allocation9 + $0x110] ss:$8 sps:$4 sm:$0xff]   ;;  %v14205_v58 = vld [vmem:[#allocation9 + $0xc4] ss:$8 sps:$4 sm:$0xff]  }
 0x58a   :  { %9960 = vmatpush2.bf16.msra.mxu0 %v14152_v7  ;;  %9997 = vmatpush2.bf16.msra.mxu1 %v14155_v62  ;;  %v14241_v7 = vld [vmem:[#allocation9 + $0x104] ss:$8 sps:$4 sm:$0xff]   ;;  %v14203_v62 = vld [vmem:[#allocation9 + $0xc0] ss:$8 sps:$4 sm:$0xff]  }
 0x58b   :  { %9961 = vmatprep.subr.bf16.mxu0 %v14160_v17  ;;  %9998 = vmatprep.subr.bf16.mxu1 %v14163_v13  ;;  %v14239_v17 = vld [vmem:[#allocation9 + $0x100] ss:$8 sps:$4 sm:$0xff]   ;;  %v14208_v13 = vld [vmem:[#allocation9 + $0xb4] ss:$8 sps:$4 sm:$0xff]  }
 0x58e   :  { %9962 = vmatpush2.bf16.msra.mxu0 %v14158_v11  ;;  %9999 = vmatpush2.bf16.msra.mxu1 %v14161_v6  ;;  %v14244_v11 = vld [vmem:[#allocation9 + $0x1f4] ss:$8 sps:$4 sm:$0xff]   ;;  %v14206_v6 = vld [vmem:[#allocation9 + $0xb0] ss:$8 sps:$4 sm:$0xff]  }
 0x58f   :  { %10000 = vmatprep.subr.bf16.mxu1 %v14166_v4  ;;  %10417 = vmatprep.subr.bf16.mxu0 %v14169_v12  ;;  %v14242_v4 = vld [vmem:[#allocation9 + $0x1f0] ss:$8 sps:$4 sm:$0xff]   ;;  %v14211_v12 = vld [vmem:[#allocation9 + $0xa4] ss:$8 sps:$4 sm:$0xff]  }
 0x591   :  { %v9719_v2 = vpop.f32.mrf.mxu0  ;;  %9964 = vmatmul.mubr.bf16.vlgmr.msra.gmra.mxu0 %v15054_v5  ;;  %v14181_v5 = vld [vmem:[#allocation9 + $0x44] ss:$8 sps:$4 sm:$0xff]  }
 0x592   :  { %v9720_v57 = vadd.f32 %v9719_v2, %v15144_v8  ;;  %10001 = vmatpush2.bf16.msra.mxu1 %v14164_v1  ;;  %10418 = vmatpush1.bf16.msra.mxu0 %v14167_v31  ;;  %v14209_v1 = vld [vmem:[#allocation9 + $0xa0] ss:$8 sps:$4 sm:$0xff]   ;;  %v14248_v2 = vld [vmem:[#allocation9 + $0x1d0] ss:$8 sps:$4 sm:$0xff]  }
 0x593   :  { %10449 = vmatprep.mubr.bf16.mxu0 %v10018_v18  ;;  %v9721_v26 = vpop.f32.mrf.mxu0  ;;  %10002 = vmatprep.subr.bf16.mxu1 %v14172_v30  ;;  %v14245_v31 = vld [vmem:[#allocation9 + $0x1e0] ss:$8 sps:$4 sm:$0xff]   ;;  %v14214_v30 = vld [vmem:[#allocation9 + $0x94] ss:$8 sps:$4 sm:$0xff]   ;;  %v14212_v18 = vld [vmem:[#allocation9 + $0x90] ss:$8 sps:$4 sm:$0xff]  }
 0x594   :  { %v9722_v22 = vadd.f32 %v9721_v26, %v15147_v50  ;;  %10419 = vmatprep.subr.bf16.mxu0 %v14175_v9  ;;  %v14250_v9 = vld [vmem:[#allocation9 + $0x1d4] ss:$8 sps:$4 sm:$0xff]   ;;  %v14251_v26 = vld [vmem:[#allocation9 + $0x1c0] ss:$8 sps:$4 sm:$0xff]  }
 0x595   :  { %v9723_v10 = vpop.f32.mrf.mxu0 }
 0x596   :  { %10003 = vmatpush2.bf16.msra.mxu1 %v14170_v36  ;;  %10420 = vmatpush1.bf16.msra.mxu0 %v14173_v35  ;;  %v14253_v36 = vld [vmem:[#allocation9 + $0x1c4] ss:$8 sps:$4 sm:$0xff]   ;;  %v14215_v35 = vld [vmem:[#allocation9 + $0x80] ss:$8 sps:$4 sm:$0xff]  }
 0x597   :  { %v9724_v53 = vpop.f32.mrf.mxu0  ;;  %10421 = vmatprep.subr.bf16.mxu0 %v14178_v28  ;;  %10458 = vmatprep.subr.bf16.mxu1 %v14220_v15  ;;  %v10013_v28 = vmax.f32 %v15094_v32, 0.0  ;;  %v14257_v32 = vld [vmem:[#allocation9 + $0x1a0] ss:$8 sps:$4 sm:$0xff]   ;;  %v14260_v15 = vld [vmem:[#allocation9 + $0x190] ss:$8 sps:$4 sm:$0xff]  }
 0x598   :  { %v14256_v53 = vld [vmem:[#allocation9 + $0x1b4] ss:$8 sps:$4 sm:$0xff]  }
 0x599   :  { %v9760_v19 = vpop.f32.mrf.mxu1  ;;  %10005 = vmatmul.mubr.bf16.vlgmr.msra.gmra.mxu1 %v15061_v44  ;;  %v14185_v44 = vld [vmem:[#allocation9 + $0x20] ss:$8 sps:$4 sm:$0xff]  }
 0x59a   :  { %v15154_v8 = vadd.f32 %v9760_v19, %v9720_v57  ;;  %10422 = vmatpush1.bf16.msra.mxu0 %v14176_v61  ;;  %10459 = vmatpush1.bf16.msra.mxu1 %v14218_v33  ;;  %v14217_v57 = vld [vmem:[#allocation9 + $0x84] ss:$8 sps:$4 sm:$0xff]   ;;  %v14254_v19 = vld [vmem:[#allocation9 + $0x1b0] ss:$8 sps:$4 sm:$0xff]  }
 0x59b   :  { %v9762_v55 = vpop.f32.mrf.mxu1  ;;  %10423 = vmatprep.subr.bf16.mxu0 %v14181_v5  ;;  %10460 = vmatprep.subr.bf16.mxu1 %v14223_v49 }
 0x59c   :  { %v15156_v27 = vadd.f32 %v9762_v55, %v9722_v22  ;;  %v10017_v22 = vpack.c.bf16 %v10013_v28, %v10013_v28 }
 0x59d   :  { %v9764_v50 = vpop.f32.mrf.mxu1 }
 0x59e   :  { %10424 = vmatpush1.bf16.msra.mxu0 %v14179_v43  ;;  %10461 = vmatpush1.bf16.msra.mxu1 %v14221_v34 }
 0x59f   :  { %v9765_v56 = vpop.f32.mrf.mxu1  ;;  %10425 = vmatprep.subr.bf16.mxu0 %v14184_v46  ;;  %10462 = vmatprep.subr.bf16.mxu1 %v14226_v38  ;;  %v14259_v46 = vld [vmem:[#allocation9 + $0x1a4] ss:$8 sps:$4 sm:$0xff]  }
 0x5a2   :  { %10426 = vmatpush1.bf16.msra.mxu0 %v14182_v45  ;;  %10463 = vmatpush1.bf16.msra.mxu1 %v14224_v42 }
 0x5a3   :  { %10427 = vmatprep.subr.bf16.mxu0 %v14187_v3  ;;  %10464 = vmatprep.subr.bf16.mxu1 %v14229_v51  ;;  %v14262_v3 = vld [vmem:[#allocation9 + $0x194] ss:$8 sps:$4 sm:$0xff]  }
 0x5a6   :  { %10428 = vmatpush1.bf16.msra.mxu0 %v14185_v44  ;;  %10465 = vmatpush1.bf16.msra.mxu1 %v14227_v41  ;;  %v14265_v44 = vld [vmem:[#allocation9 + $0x184] ss:$8 sps:$4 sm:$0xff]   ;;  %v14268_v41 = vld [vmem:[#allocation12 + $0x74] ss:$8 sps:$4 sm:$0xff]  }
 0x5a7   :  { %10429 = vmatprep.subr.bf16.mxu0 %v14190_v52  ;;  %10466 = vmatprep.subr.bf16.mxu1 %v14232_v0 }
 0x5aa   :  { %10430 = vmatpush1.bf16.msra.mxu0 %v14188_v47  ;;  %10467 = vmatpush1.bf16.msra.mxu1 %v14230_v21 }
 0x5ab   :  { %10431 = vmatprep.subr.bf16.mxu0 %v14193_v60  ;;  %10468 = vmatprep.subr.bf16.mxu1 %v14235_v54 }
 0x5ae   :  { %10432 = vmatpush1.bf16.msra.mxu0 %v14191_v14  ;;  %10469 = vmatpush1.bf16.msra.mxu1 %v14233_v59  ;;  %v14266_v14 = vld [vmem:[#allocation12 + $0x70] ss:$8 sps:$4 sm:$0xff]  }
 0x5af   :  { %10433 = vmatprep.subr.bf16.mxu0 %v14196_v63  ;;  %10470 = vmatprep.subr.bf16.mxu1 %v14238_v40  ;;  %v14271_v63 = vld [vmem:[#allocation12 + $0x64] ss:$8 sps:$4 sm:$0xff]   ;;  %v14275_v40 = vld [vmem:[#allocation12 + $0x40] ss:$8 sps:$4 sm:$0xff]  }
 0x5b2   :  { %10434 = vmatpush2.bf16.msra.mxu0 %v14194_v25  ;;  %10471 = vmatpush1.bf16.msra.mxu1 %v14236_v16  ;;  %v14269_v25 = vld [vmem:[#allocation12 + $0x60] ss:$8 sps:$4 sm:$0xff]   ;;  %v14278_v16 = vld [vmem:[#allocation12 + $0x30] ss:$8 sps:$4 sm:$0xff]  }
 0x5b3   :  { %10435 = vmatprep.subr.bf16.mxu0 %v14199_v29  ;;  %10472 = vmatprep.subr.bf16.mxu1 %v14241_v7  ;;  %v14274_v29 = vld [vmem:[#allocation12 + $0x54] ss:$8 sps:$4 sm:$0xff]   ;;  %v14281_v7 = vld [vmem:[#allocation12 + $0x20] ss:$8 sps:$4 sm:$0xff]  }
 0x5b6   :  { %10436 = vmatpush2.bf16.msra.mxu0 %v14197_v20  ;;  %10473 = vmatpush1.bf16.msra.mxu1 %v14239_v17  ;;  %v14272_v20 = vld [vmem:[#allocation12 + $0x50] ss:$8 sps:$4 sm:$0xff]  }
 0x5b7   :  { %10437 = vmatprep.subr.bf16.mxu0 %v14202_v39  ;;  %10474 = vmatprep.subr.bf16.mxu1 %v14244_v11  ;;  %v14277_v39 = vld [vmem:[#allocation12 + $0x44] ss:$8 sps:$4 sm:$0xff]   ;;  %v14284_v17 = vld [vmem:[#allocation12 + $0x10] ss:$8 sps:$4 sm:$0xff]   ;;  %v14287_v11 = vld [vmem:[#allocation12] ss:$8 sps:$4 sm:$0xff]  }
 0x5ba   :  { %10438 = vmatpush2.bf16.msra.mxu0 %v14200_v48  ;;  %10475 = vmatpush2.bf16.msra.mxu1 %v14242_v4  ;;  %v14280_v48 = vld [vmem:[#allocation12 + $0x34] ss:$8 sps:$4 sm:$0xff]   ;;  %v14290_v4 = vld [vmem:[#allocation12 + $0xf0] ss:$8 sps:$4 sm:$0xff]  }
 0x5bb   :  { %10439 = vmatprep.subr.bf16.mxu0 %v14205_v58  ;;  %10476 = vmatprep.subr.bf16.mxu1 %v14247_v37  ;;  %v14283_v58 = vld [vmem:[#allocation12 + $0x24] ss:$8 sps:$4 sm:$0xff]   ;;  %v14293_v37 = vld [vmem:[#allocation12 + $0xe0] ss:$8 sps:$4 sm:$0xff]  }
 0x5be   :  { %10440 = vmatpush2.bf16.msra.mxu0 %v14203_v62  ;;  %10477 = vmatpush2.bf16.msra.mxu1 %v14245_v31  ;;  %v14286_v62 = vld [vmem:[#allocation12 + $0x14] ss:$8 sps:$4 sm:$0xff]   ;;  %v14296_v31 = vld [vmem:[#allocation12 + $0xd0] ss:$8 sps:$4 sm:$0xff]  }
 0x5bf   :  { %10441 = vmatprep.subr.bf16.mxu0 %v14208_v13  ;;  %10478 = vmatprep.subr.bf16.mxu1 %v14250_v9  ;;  %v14289_v13 = vld [vmem:[#allocation12 + $0x4] ss:$8 sps:$4 sm:$0xff]   ;;  %v14299_v9 = vld [vmem:[#allocation12 + $0xc0] ss:$8 sps:$4 sm:$0xff]  }
 0x5c2   :  { %10442 = vmatpush2.bf16.msra.mxu0 %v14206_v6  ;;  %10479 = vmatpush2.bf16.msra.mxu1 %v14248_v2  ;;  %v14292_v6 = vld [vmem:[#allocation12 + $0xf4] ss:$8 sps:$4 sm:$0xff]   ;;  %v14302_v2 = vld [vmem:[#allocation12 + $0xb0] ss:$8 sps:$4 sm:$0xff]  }
 0x5c3   :  { %10443 = vmatprep.subr.bf16.mxu0 %v14211_v12  ;;  %10480 = vmatprep.subr.bf16.mxu1 %v14253_v36  ;;  %v14295_v12 = vld [vmem:[#allocation12 + $0xe4] ss:$8 sps:$4 sm:$0xff]   ;;  %v14305_v36 = vld [vmem:[#allocation12 + $0xa0] ss:$8 sps:$4 sm:$0xff]  }
 0x5c6   :  { %10444 = vmatpush2.bf16.msra.mxu0 %v14209_v1  ;;  %10481 = vmatpush2.bf16.msra.mxu1 %v14251_v26  ;;  %v14298_v1 = vld [vmem:[#allocation12 + $0xd4] ss:$8 sps:$4 sm:$0xff]  }
 0x5c7   :  { %10445 = vmatprep.subr.bf16.mxu0 %v14214_v30  ;;  %10482 = vmatprep.subr.bf16.mxu1 %v14256_v53  ;;  %v14301_v30 = vld [vmem:[#allocation12 + $0xc4] ss:$8 sps:$4 sm:$0xff]  }
 0x5ca   :  { %10446 = vmatpush2.bf16.msra.mxu0 %v14212_v18  ;;  %10483 = vmatpush2.bf16.msra.mxu1 %v14254_v19  ;;  %v14304_v18 = vld [vmem:[#allocation12 + $0xb4] ss:$8 sps:$4 sm:$0xff]  }
 0x5cb   :  { %10447 = vmatprep.subr.bf16.mxu0 %v14217_v57  ;;  %10484 = vmatprep.subr.bf16.mxu1 %v14259_v46  ;;  %v14307_v57 = vld [vmem:[#allocation12 + $0xa4] ss:$8 sps:$4 sm:$0xff]  }
 0x5ce   :  { %10448 = vmatpush2.bf16.msra.mxu0 %v14215_v35  ;;  %10485 = vmatpush2.bf16.msra.mxu1 %v14257_v32 }
 0x5cf   :  { %10486 = vmatprep.subr.bf16.mxu1 %v14262_v3  ;;  %10707 = vmatprep.subr.bf16.mxu0 %v14268_v41  ;;  %v14319_v41 = vld [vmem:[#allocation15 + $0x28] sm:$0xff]  }
 0x5d1   :  { %v9801_v10 = vpop.f32.mrf.mxu0  ;;  %10450 = vmatmul.mubr.bf16.vlgmr.msra.gmra.mxu0 %v10017_v22 }
 0x5d2   :  { %v9802_v61 = vadd.f32 %v9801_v10, %v15154_v8  ;;  %10487 = vmatpush2.bf16.msra.mxu1 %v14260_v15  ;;  %10708 = vmatpush1.bf16.msra.mxu0 %v14266_v14  ;;  %v14318_v14 = vld [vmem:[#allocation15 + $0x68] sm:$0xff]  }
 0x5d3   :  { %v9803_v5 = vpop.f32.mrf.mxu0  ;;  %10488 = vmatprep.subr.bf16.mxu1 %v14265_v44  ;;  %10709 = vmatprep.subr.bf16.mxu0 %v14271_v63  ;;  %v14320_v63 = vld [vmem:[#allocation15 + $0x60] sm:$0xff]  }
 0x5d4   :  { %v9804_v43 = vadd.f32 %v9803_v5, %v15156_v27  ;;  %v14263_v27 = vld [vmem:[#allocation9 + $0x180] ss:$8 sps:$4 sm:$0xff]  }
 0x5d5   :  { %v9805_v55 = vpop.f32.mrf.mxu0 }
 0x5d6   :  { %10489 = vmatpush2.bf16.msra.mxu1 %v14263_v27  ;;  %10710 = vmatpush1.bf16.msra.mxu0 %v14269_v25  ;;  %v14308_v27 = vld [vmem:[#allocation12 + $0x90] ss:$8 sps:$4 sm:$0xff]  }
 0x5d7   :  { %v9806_v50 = vpop.f32.mrf.mxu0  ;;  %10711 = vmatprep.subr.bf16.mxu0 %v14274_v29  ;;  %v14322_v25 = vld [vmem:[#allocation15 + $0x58] sm:$0xff]   ;;  %v14324_v29 = vld [vmem:[#allocation15 + $0x50] sm:$0xff]  }
 0x5d9   :  { %v9842_v45 = vpop.f32.mrf.mxu1 }
 0x5da   :  { %v9843_v56 = vadd.f32 %v9842_v45, %v9802_v61  ;;  %10712 = vmatpush1.bf16.msra.mxu0 %v14272_v20  ;;  %v10085_v20 = vld [vmem:[#allocation10] sm:$0x3] }
 0x5db   :  { %v9844_v33 = vpop.f32.mrf.mxu1  ;;  %10713 = vmatprep.subr.bf16.mxu0 %v14277_v39  ;;  %v10094_v39 = vrot.slane %v10085_v20, %v14734_v24 }
 0x5dc   :  { %v9845_v49 = vadd.f32 %v9844_v33, %v9804_v43 }
 0x5dd   :  { %v9846_v8 = vpop.f32.mrf.mxu1 }
 0x5de   :  { %10714 = vmatpush1.bf16.msra.mxu0 %v14275_v40 }
 0x5df   :  { %v9847_v34 = vpop.f32.mrf.mxu1  ;;  %10715 = vmatprep.subr.bf16.mxu0 %v14280_v48 }
 0x5e0   :  { %v14310_v34 = vld [vmem:[#allocation12 + $0x94] ss:$8 sps:$4 sm:$0xff]  }
 0x5e2   :  { %10716 = vmatpush1.bf16.msra.mxu0 %v14278_v16 }
 0x5e3   :  { %10717 = vmatprep.subr.bf16.mxu0 %v14283_v58 }
 0x5e6   :  { %10718 = vmatpush1.bf16.msra.mxu0 %v14281_v7 }
 0x5e7   :  { %10719 = vmatprep.subr.bf16.mxu0 %v14286_v62 }
 0x5ea   :  { %10720 = vmatpush1.bf16.msra.mxu0 %v14284_v17 }
 0x5eb   :  { %10721 = vmatprep.subr.bf16.mxu0 %v14289_v13 }
 0x5ee   :  { %10722 = vmatpush1.bf16.msra.mxu0 %v14287_v11 }
 0x5ef   :  { %10723 = vmatprep.subr.bf16.mxu0 %v14292_v6 }
 0x5f2   :  { %10724 = vmatpush2.bf16.msra.mxu0 %v14290_v4 }
 0x5f3   :  { %10725 = vmatprep.subr.bf16.mxu0 %v14295_v12 }
 0x5f6   :  { %10726 = vmatpush2.bf16.msra.mxu0 %v14293_v37  ;;  %v14326_v37 = vld [vmem:[#allocation15 + $0x48] sm:$0xff]  }
 0x5f7   :  { %10727 = vmatprep.subr.bf16.mxu0 %v14298_v1  ;;  %v14327_v1 = vld [vmem:[#allocation15 + $0x8] sm:$0xff]  }
 0x5fa   :  { %10728 = vmatpush2.bf16.msra.mxu0 %v14296_v31  ;;  %v14328_v31 = vld [vmem:[#allocation15 + $0x40] sm:$0xff]  }
 0x5fb   :  { %10729 = vmatprep.subr.bf16.mxu0 %v14301_v30  ;;  %v14329_v30 = vld [vmem:[#allocation15] sm:$0xff]  }
 0x5fe   :  { %10730 = vmatpush2.bf16.msra.mxu0 %v14299_v9  ;;  %v10535_v9 = vld [vmem:[#allocation13] sm:$0x3] }
 0x5ff   :  { %10731 = vmatprep.subr.bf16.mxu0 %v14304_v18  ;;  %v10540_v18 = vrot.slane %v10535_v9, %v14731_v23 }
 0x602   :  { %10732 = vmatpush2.bf16.msra.mxu0 %v14302_v2  ;;  %v10544_v2 = vrot.slane %v10535_v9, %v14734_v24 }
 0x603   :  { %10733 = vmatprep.subr.bf16.mxu0 %v14307_v57 }
 0x606   :  { %10734 = vmatpush2.bf16.msra.mxu0 %v14305_v36 }
 0x607   :  { %10735 = vmatprep.subr.bf16.mxu0 %v14310_v34 }
 0x60a   :  { %10736 = vmatpush2.bf16.msra.mxu0 %v14308_v27 }
 0x611   :  { %v9883_v52 = vpop.f32.mrf.mxu0 }
 0x612   :  { %v15161_v38 = vadd.f32 %v9883_v52, %v9843_v56  ;;  %v14313_v52 = vld [vmem:[#allocation12 + $0x84] ss:$8 sps:$4 sm:$0xff]  }
 0x613   :  { %v9885_v47 = vpop.f32.mrf.mxu0  ;;  %10737 = vmatprep.subr.bf16.mxu0 %v14313_v52 }
 0x614   :  { %v15163_v42 = vadd.f32 %v9885_v47, %v9845_v49  ;;  %v14314_v47 = vld [vmem:[#allocation15 + $0x78] sm:$0xff]  }
 0x615   :  { %v9887_v60 = vpop.f32.mrf.mxu0  ;;  %12293 = vmatprep.subr.bf16.mxu1 %v14314_v47 }
 0x616   :  { %v14316_v60 = vld [vmem:[#allocation15 + $0x70] sm:$0xff]  }
 0x617   :  { %v9888_v51 = vpop.f32.mrf.mxu0 }
 0x618   :  { %v14317_v51 = vld [vmem:[#allocation15 + $0x30] sm:$0xff]  }
 0x619   :  { %v9924_v0 = vpop.f32.mrf.mxu1 }
 0x61a   :  { %v9925_v22 = vadd.f32 %v9924_v0, %v15161_v38  ;;  %v14311_v38 = vld [vmem:[#allocation12 + $0x80] ss:$8 sps:$4 sm:$0xff]  }
 0x61b   :  { %v9926_v21 = vpop.f32.mrf.mxu1  ;;  %10738 = vmatpush2.bf16.msra.mxu0 %v14311_v38  ;;  %v14321_v0 = vld [vmem:[#allocation15 + $0x20] sm:$0xff]  }
 0x61c   :  { %v9927_v61 = vadd.f32 %v9926_v21, %v15163_v42  ;;  %v14315_v42 = vld [vmem:[#allocation15 + $0x38] sm:$0xff]  }
 0x61d   :  { %v9928_v54 = vpop.f32.mrf.mxu1  ;;  %v14323_v21 = vld [vmem:[#allocation15 + $0x18] sm:$0xff]  }
 0x61e   :  { %v14325_v54 = vld [vmem:[#allocation15 + $0x10] sm:$0xff]  }
 0x61f   :  { %v9929_v59 = vpop.f32.mrf.mxu1 }
 0x620   :  { %v10090_v59 = vrot.slane %v10085_v20, %v14731_v23 }
 0x651   :  { %v9965_v35 = vpop.f32.mrf.mxu0 }
 0x652   :  { %v9966_v53 = vadd.f32 %v9965_v35, %v9925_v22 }
 0x653   :  { %v9967_v26 = vpop.f32.mrf.mxu0 }
 0x654   :  { %v9968_v19 = vadd.f32 %v9967_v26, %v9927_v61 }
 0x655   :  { %v9969_v28 = vpop.f32.mrf.mxu0 }
 0x657   :  { %v9970_v10 = vpop.f32.mrf.mxu0 }
 0x659   :  { %v10006_v5 = vpop.f32.mrf.mxu1 }
 0x65a   :  { %v10007_v43 = vadd.f32 %v10006_v5, %v9966_v53 }
 0x65b   :  { %v10008_v55 = vpop.f32.mrf.mxu1 }
 0x65c   :  { %v10009_v46 = vadd.f32 %v10008_v55, %v9968_v19  ;;  %v10015_v50 = vmax.f32 %v10007_v43, 0.0  ;;  %v12276_v43 = vld [vmem:[#allocation16] ss:$0 sm:$0xff] }
 0x65d   :  { %v10010_v32 = vpop.f32.mrf.mxu1 }
 0x65e   :  { %v10016_v45 = vmax.f32 %v10009_v46, 0.0  ;;  %v10019_v33 = vpack.c.bf16 %v10015_v50, %v10015_v50 }
 0x65f   :  { %v10011_v56 = vpop.f32.mrf.mxu1 }
 0x660   :  { %v10020_v3 = vpack.c.bf16 %v10016_v45, %v10016_v45 }
 0x662   :  { %10490 = vmatprep.mubr.bf16.mxu1 %v10020_v3 }
 0x663   :  { %10491 = vmatmul.mubr.bf16.vlgmr.msra.gmra.mxu1 %v10019_v33 }
 0x664   :  { %12294 = vmatpush3.bf16.msra.mxu1 %v14315_v42 }
 0x665   :  { %12295 = vmatprep.subr.bf16.mxu1 %v14316_v60 }
 0x668   :  { %12296 = vmatpush3.bf16.msra.mxu1 %v14317_v51 }
 0x669   :  { %12297 = vmatprep.subr.bf16.mxu1 %v14318_v14 }
 0x66c   :  { %12298 = vmatpush3.bf16.msra.mxu1 %v14319_v41 }
 0x66d   :  { %12299 = vmatprep.subr.bf16.mxu1 %v14320_v63 }
 0x670   :  { %12300 = vmatpush3.bf16.msra.mxu1 %v14321_v0 }
 0x671   :  { %12301 = vmatprep.subr.bf16.mxu1 %v14322_v25 }
 0x674   :  { %12302 = vmatpush3.bf16.msra.mxu1 %v14323_v21 }
 0x675   :  { %12303 = vmatprep.subr.bf16.mxu1 %v14324_v29 }
 0x678   :  { %12304 = vmatpush3.bf16.msra.mxu1 %v14325_v54 }
 0x679   :  { %12305 = vmatprep.subr.bf16.mxu1 %v14326_v37 }
 0x67c   :  { %12306 = vmatpush3.bf16.msra.mxu1 %v14327_v1 }
 0x67d   :  { %12307 = vmatprep.subr.bf16.mxu1 %v14328_v31 }
 0x680   :  { %12308 = vmatpush3.bf16.msra.mxu1 %v14329_v30 }
 0x691   :  { %v10451_v15 = vpop.f32.mrf.mxu0 }
 0x692   :  { %v10452_v40 = vadd.f32 %v10451_v15, %v10090_v59 }
 0x693   :  { %v10453_v49 = vpop.f32.mrf.mxu0 }
 0x694   :  { %v10454_v16 = vadd.f32 %v10453_v49, %v10094_v39 }
 0x695   :  { %v10455_v8 = vpop.f32.mrf.mxu0 }
 0x697   :  { %v10456_v44 = vpop.f32.mrf.mxu0 }
 0x723   :  { %v10492_v48 = vpop.f32.mrf.mxu1 }
 0x724   :  { %v10493_v58 = vadd.f32 %v10492_v48, %v10452_v40 }
 0x725   :  { %v10494_v7 = vpop.f32.mrf.mxu1 }
 0x726   :  { %v10495_v62 = vadd.f32 %v10494_v7, %v10454_v16  ;;  %v10499_v17 = vmax.f32 %v10493_v58, 0.0 }
 0x727   :  { %v10496_v13 = vpop.f32.mrf.mxu1 }
 0x728   :  { %v10500_v11 = vmax.f32 %v10495_v62, 0.0  ;;  %v10501_v12 = vpack.c.bf16 %v10499_v17, %v10499_v17 }
 0x729   :  { %v10497_v6 = vpop.f32.mrf.mxu1 }
 0x72a   :  { %v10502_v4 = vpack.c.bf16 %v10500_v11, %v10500_v11 }
 0x72c   :  { %10739 = vmatprep.mubr.bf16.mxu0 %v10502_v4 }
 0x72d   :  { %10740 = vmatmul.mubr.bf16.vlgmr.msra.gmra.mxu0 %v10501_v12 }
 0x7ed   :  { %v10741_v57 = vpop.f32.mrf.mxu0 }
 0x7ee   :  { %v10742_v36 = vadd.f32 %v10741_v57, %v10540_v18 }
 0x7ef   :  { %v10743_v35 = vpop.f32.mrf.mxu0 }
 0x7f0   :  { %v10744_v26 = vadd.f32 %v10743_v35, %v10544_v2  ;;  %v10748_v28 = vmax.f32 %v10742_v36, 0.0 }
 0x7f1   :  { %v10745_v22 = vpop.f32.mrf.mxu0 }
 0x7f2   :  { %v10749_v10 = vmax.f32 %v10744_v26, 0.0  ;;  %v10750_v5 = vpack.c.bf16 %v10748_v28, %v10748_v28 }
 0x7f3   :  { %v10746_v61 = vpop.f32.mrf.mxu0 }
 0x7f4   :  { %v10751_v53 = vpack.c.bf16 %v10749_v10, %v10749_v10 }
 0x7f6   :  { %10919 = vmatprep.mubr.bf16.mxu1 %v10751_v53 }
 0x7f7   :  { %10920 = vmatmul.mubr.bf16.vlgmr.msra.gmra.mxu1 %v10750_v5 }
 0x8b7   :  { %v12309_v19 = vpop.f32.mrf.mxu1 }
 0x8b9   :  { %v12310_v55 = vpop.f32.mrf.mxu1 }
 0x8ba   :  { %v12311_v46 = vadd.f32 %v12310_v55, %v12309_v19 }
 0x8bb   :  { %v12312_v50 = vpop.f32.mrf.mxu1 }
 0x8bc   :  { %v10922_v23 = vadd.f32 %v12311_v46, %v12276_v43 }
 0x8bd   :  { %v12313_v32 = vpop.f32.mrf.mxu1 }
 0x8be   :  { %10927 = vst [vmem:[%s15185_s11] sm:$0xff] %v10922_v23 }
 0x8bf   :  { %10932 = vsyncpa [#allocation3], 1 }
 0x8c0   :  { %10933 = vsyncpa [#allocation5], 1 }
 0x8c1   :  { %10934 = vsyncpa [#allocation8], 1 }
 0x8c2   :  { %10935 = vsyncpa [#allocation11], 1 }
 0x8c3   :  { %10936 = vsyncpa [#allocation14], 1 }
 0x8c4   :  { %10937 = vsyncpa [#allocation17], 1 }

</bundles_post_ra>
